<compile_context>
chip_gen: v7x
topology: tpu7x:2x2x1
jax: 0.10.0
libtpu: 0.0.40
codegen_flags: <defaults>
</compile_context>

<pallas_src>
import jax
import jax.numpy as jnp
from jax import lax
from jax.experimental import pallas as pl
from jax.experimental.pallas import tpu as pltpu

EPS = 1e-5


# ----------------------------- kernels --------------------------------------

def _conv3x3_stats_kernel(p_ref, w1_ref, b1_ref, y1_ref, st_ref):
    """p_ref: (TM, 9C) bf16 im2col of relu(x); w1_ref: (9C, C) bf16."""
    y = jnp.dot(p_ref[...], w1_ref[...],
                preferred_element_type=jnp.float32) + b1_ref[...]
    y1_ref[...] = y
    # fused single-sweep partial stats for BN1
    st_ref[0:1, :] = jnp.sum(y, axis=0, keepdims=True)
    st_ref[1:2, :] = jnp.sum(y * y, axis=0, keepdims=True)


def _bn1_conv1x1_stats_kernel(y1_ref, sc1_ref, sh1_ref, w2_ref, b2_ref, st_ref):
    """BN1 (precomputed scale/shift) + ReLU + 1x1 conv; emit BN2 partial stats."""
    z = jnp.maximum(y1_ref[...] * sc1_ref[...] + sh1_ref[...], 0.0)
    y2 = jnp.dot(z.astype(jnp.bfloat16), w2_ref[...],
                 preferred_element_type=jnp.float32) + b2_ref[...]
    st_ref[0:1, :] = jnp.sum(y2, axis=0, keepdims=True)
    st_ref[1:2, :] = jnp.sum(y2 * y2, axis=0, keepdims=True)


def _bn2_residual_kernel(y1_ref, x_ref, sc1_ref, sh1_ref, w2_ref, b2_ref,
                         sc2_ref, sh2_ref, o_ref):
    """Recompute y2, apply BN2 affine, add residual."""
    z = jnp.maximum(y1_ref[...] * sc1_ref[...] + sh1_ref[...], 0.0)
    y2 = jnp.dot(z.astype(jnp.bfloat16), w2_ref[...],
                 preferred_element_type=jnp.float32) + b2_ref[...]
    o_ref[...] = x_ref[...] + y2 * sc2_ref[...] + sh2_ref[...]


# ----------------------------- wrapper ---------------------------------------

def _pick_tile_m(m, desired=512):
    for t in (desired, 1024, 512, 256, 128, 64, 32, 16, 8):
        if 0 < t <= m and m % t == 0:
            return t
    return m


def resblock_forward(x_nchw, params, tile_m=512):
    """x_nchw: (N, C, H, W) float32. Returns (N, C, H, W)."""
    w1, b1, g1, be1, w2, b2, g2, be2 = params   # w1: (3,3,C,C) HWIO; w2: (Cin,Cout)
    N, C, H, W = x_nchw.shape
    M = N * H * W
    K9 = 9 * C
    tm = _pick_tile_m(M, tile_m)
    nt = M // tm

    x_nhwc = jnp.transpose(x_nchw, (0, 2, 3, 1)).astype(jnp.float32)
    x_flat = x_nhwc.reshape(M, C)

    # ReLU -> zero-pad -> im2col on the wrapper side (relu(0)=0 so padding
    # commutes).  This trades one extra HBM pass for a single dense MXU matmul
    # per tile and trivial, halo-free M tiling in the kernel.
    hp = jnp.pad(jnp.maximum(x_nhwc, 0.0), ((0, 0), (1, 1), (1, 1), (0, 0)))
    patches = jnp.concatenate(
        [hp[:, dy:dy + H, dx:dx + W, :] for dy in range(3) for dx in range(3)],
        axis=-1).reshape(M, K9).astype(jnp.bfloat16)

    w1p = w1.reshape(K9, C).astype(jnp.bfloat16)   # rows ordered (kh, kw, cin)
    w2p = w2.astype(jnp.bfloat16)
    b1r = b1.reshape(1, C).astype(jnp.float32)
    b2r = b2.reshape(1, C).astype(jnp.float32)

    cp = pltpu.CompilerParams(dimension_semantics=("parallel",))

    # ---- pass 1: 3x3 conv + BN1 partial stats --------------------------------
    y1, st1 = pl.pallas_call(
        _conv3x3_stats_kernel,
        grid=(nt,),
        in_specs=[pl.BlockSpec((tm, K9), lambda i: (i, 0)),
                  pl.BlockSpec((K9, C), lambda i: (0, 0)),
                  pl.BlockSpec((1, C), lambda i: (0, 0))],
        out_specs=[pl.BlockSpec((tm, C), lambda i: (i, 0)),
                   pl.BlockSpec((None, 2, C), lambda i: (i, 0, 0))],
        out_shape=[jax.ShapeDtypeStruct((M, C), jnp.float32),
                   jax.ShapeDtypeStruct((nt, 2, C), jnp.float32)],
        compiler_params=cp,
    )(patches, w1p, b1r)

    mu1 = jnp.sum(st1[:, 0, :], axis=0) / M
    var1 = jnp.maximum(jnp.sum(st1[:, 1, :], axis=0) / M - mu1 * mu1, 0.0)
    inv1 = lax.rsqrt(var1 + EPS)
    sc1 = (g1 * inv1).reshape(1, C).astype(jnp.float32)
    sh1 = (be1 - mu1 * g1 * inv1).reshape(1, C).astype(jnp.float32)

    # ---- pass 2: BN1 + ReLU + 1x1 conv, BN2 partial stats --------------------
    st2 = pl.pallas_call(
        _bn1_conv1x1_stats_kernel,
        grid=(nt,),
        in_specs=[pl.BlockSpec((tm, C), lambda i: (i, 0)),
                  pl.BlockSpec((1, C), lambda i: (0, 0)),
                  pl.BlockSpec((1, C), lambda i: (0, 0)),
                  pl.BlockSpec((C, C), lambda i: (0, 0)),
                  pl.BlockSpec((1, C), lambda i: (0, 0))],
        out_specs=pl.BlockSpec((None, 2, C), lambda i: (i, 0, 0)),
        out_shape=jax.ShapeDtypeStruct((nt, 2, C), jnp.float32),
        compiler_params=cp,
    )(y1, sc1, sh1, w2p, b2r)

    mu2 = jnp.sum(st2[:, 0, :], axis=0) / M
    var2 = jnp.maximum(jnp.sum(st2[:, 1, :], axis=0) / M - mu2 * mu2, 0.0)
    inv2 = lax.rsqrt(var2 + EPS)
    sc2 = (g2 * inv2).reshape(1, C).astype(jnp.float32)
    sh2 = (be2 - mu2 * g2 * inv2).reshape(1, C).astype(jnp.float32)

    # ---- pass 3: recompute y2, BN2 affine, residual add ----------------------
    out = pl.pallas_call(
        _bn2_residual_kernel,
        grid=(nt,),
        in_specs=[pl.BlockSpec((tm, C), lambda i: (i, 0)),
                  pl.BlockSpec((tm, C), lambda i: (i, 0)),
                  pl.BlockSpec((1, C), lambda i: (0, 0)),
                  pl.BlockSpec((1, C), lambda i: (0, 0)),
                  pl.BlockSpec((C, C), lambda i: (0, 0)),
                  pl.BlockSpec((1, C), lambda i: (0, 0)),
                  pl.BlockSpec((1, C), lambda i: (0, 0)),
                  pl.BlockSpec((1, C), lambda i: (0, 0))],
        out_specs=pl.BlockSpec((tm, C), lambda i: (i, 0)),
        out_shape=jax.ShapeDtypeStruct((M, C), jnp.float32),
        compiler_params=cp,
    )(y1, x_flat, sc1, sh1, w2p, b2r, sc2, sh2)

    return jnp.transpose(out.reshape(N, H, W, C), (0, 3, 1, 2))


# ----------------------------- reference -------------------------------------

def resblock_reference(x_nchw, params):
    """Pure-JAX reference with the same mixed-precision policy as the kernel
    (bf16 matmul operands, f32 accumulation, f32 BN math)."""
    w1, b1, g1, be1, w2, b2, g2, be2 = params
    N, C, H, W = x_nchw.shape
    x = jnp.transpose(x_nchw, (0, 2, 3, 1))
    h = jnp.maximum(x, 0.0)
    y = lax.conv_general_dilated(
        h.astype(jnp.bfloat16), w1.astype(jnp.bfloat16), (1, 1), 'SAME',
        dimension_numbers=('NHWC', 'HWIO', 'NHWC'),
        preferred_element_type=jnp.float32) + b1
    mu = jnp.mean(y, axis=(0, 1, 2), keepdims=True)
    var = jnp.mean((y - mu) ** 2, axis=(0, 1, 2), keepdims=True)
    y = (y - mu) * lax.rsqrt(var + EPS) * g1 + be1
    y = jnp.maximum(y, 0.0)
    y2 = jnp.einsum('nhwc,co->nhwo', y.astype(jnp.bfloat16),
                    w2.astype(jnp.bfloat16),
                    preferred_element_type=jnp.float32) + b2
    mu2 = jnp.mean(y2, axis=(0, 1, 2), keepdims=True)
    var2 = jnp.mean((y2 - mu2) ** 2, axis=(0, 1, 2), keepdims=True)
    y2 = (y2 - mu2) * lax.rsqrt(var2 + EPS) * g2 + be2
    return jnp.transpose(x + y2, (0, 3, 1, 2))


def make_params(dim, key):
    ks = jax.random.split(key, 8)
    # Conv1: PyTorch layout (out, in, kh, kw) -> HWIO (kh, kw, in, out)
    w1_torch = 0.1 * jax.random.normal(ks[0], (dim, dim, 3, 3), jnp.float32)
    w1 = jnp.transpose(w1_torch, (2, 3, 1, 0))
    b1 = 0.1 * jax.random.normal(ks[1], (dim,), jnp.float32)
    g1 = 1.0 + 0.1 * jax.random.normal(ks[2], (dim,), jnp.float32)
    be1 = 0.1 * jax.random.normal(ks[3], (dim,), jnp.float32)
    # Conv2 (1x1): (out, in, 1, 1) -> (in, out)
    w2_torch = 0.1 * jax.random.normal(ks[4], (dim, dim, 1, 1), jnp.float32)
    w2 = jnp.transpose(w2_torch[:, :, 0, 0], (1, 0))
    b2 = 0.1 * jax.random.normal(ks[5], (dim,), jnp.float32)
    g2 = 1.0 + 0.1 * jax.random.normal(ks[6], (dim,), jnp.float32)
    be2 = 0.1 * jax.random.normal(ks[7], (dim,), jnp.float32)
    return (w1, b1, g1, be1, w2, b2, g2, be2)


if __name__ == "__main__":
    # dim=128 chosen so channels are lane-dense (multiple of 128); M = 2048
    # gives a 4-step grid with TILE_M = 512.
    N, C, H, W = 2, 128, 32, 32
    key = jax.random.PRNGKey(0)
    kx, kp = jax.random.split(key)
    x = jax.random.normal(kx, (N, C, H, W), jnp.float32)
    params = make_params(C, kp)

    fwd = jax.jit(resblock_forward)
    out = jax.block_until_ready(fwd(x, params))

    ref = jax.block_until_ready(resblock_reference(x, params))
    assert out.shape == (N, C, H, W)
    err = float(jnp.max(jnp.abs(out - ref)))
    assert jnp.allclose(out, ref, atol=2e-3, rtol=2e-3), err

    print("KERNEL_OK")
</pallas_src>

<mosaic_0001>
module attributes {stable_mosaic.version = 11 : i64} {
  func.func @_conv3x3_stats_kernel(%arg0: i32, %arg1: memref<512x1152xbf16, #tpu.memory_space<vmem>>, %arg2: memref<1152x128xbf16, #tpu.memory_space<vmem>>, %arg3: memref<1x128xf32, #tpu.memory_space<vmem>>, %arg4: memref<512x128xf32, #tpu.memory_space<vmem>>, %arg5: memref<1x2x128xf32, #tpu.memory_space<vmem>>) attributes {dimension_semantics = [#tpu.dimension_semantics<parallel>], iteration_bounds = array<i64: 4>, scalar_prefetch = 0 : i64, scratch_operands = 0 : i64, tpu.core_type = #tpu.core_type<tc>, window_params = [{transform_indices = @transform_0, window_bounds = array<i64: 512, 1152>}, {pipeline_mode = #tpu.pipeline_mode<synchronous>, transform_indices = @transform_1, window_bounds = array<i64: 1152, 128>}, {pipeline_mode = #tpu.pipeline_mode<synchronous>, transform_indices = @transform_2, window_bounds = array<i64: 1, 128>}, {transform_indices = @transform_3, window_bounds = array<i64: 512, 128>}, {transform_indices = @transform_4, window_bounds = array<i64: 1, 2, 128>}]} {
    %c0 = arith.constant 0 : index
    %c0_0 = arith.constant 0 : index
    %0 = vector.load %arg1[%c0, %c0_0] : memref<512x1152xbf16, #tpu.memory_space<vmem>>, vector<512x1152xbf16>
    %c0_1 = arith.constant 0 : index
    %c0_2 = arith.constant 0 : index
    %1 = vector.load %arg2[%c0_1, %c0_2] : memref<1152x128xbf16, #tpu.memory_space<vmem>>, vector<1152x128xbf16>
    %cst = arith.constant dense<0.000000e+00> : vector<512x128xf32>
    %2 = tpu.matmul %0, %1, %cst {dimension_numbers = #tpu.dot_dimension_numbers<[1], [0], [0], [1], [0, 0, 1, 1], [], []>} : vector<512x1152xbf16>, vector<1152x128xbf16>, vector<512x128xf32> -> vector<512x128xf32>
    %c0_3 = arith.constant 0 : index
    %c0_4 = arith.constant 0 : index
    %3 = vector.load %arg3[%c0_3, %c0_4] : memref<1x128xf32, #tpu.memory_space<vmem>>, vector<1x128xf32>
    %4 = vector.broadcast %3 : vector<1x128xf32> to vector<512x128xf32>
    %5 = arith.addf %2, %4 : vector<512x128xf32>
    %c0_5 = arith.constant 0 : index
    %c0_6 = arith.constant 0 : index
    %6 = vector.load %arg4[%c0_5, %c0_6] : memref<512x128xf32, #tpu.memory_space<vmem>>, vector<512x128xf32>
    tpu.vector_store %arg4[%c0_5, %c0_6], %5 {strides = array<i32>} : memref<512x128xf32, #tpu.memory_space<vmem>>, vector<512x128xf32>,
    %cst_7 = arith.constant dense<0.000000e+00> : vector<128xf32>
    %7 = vector.multi_reduction <add>, %5, %cst_7 [0] : vector<512x128xf32> to vector<128xf32>
    %8 = vector.shape_cast %7 : vector<128xf32> to vector<1x128xf32>
    %c0_8 = arith.constant 0 : index
    %c0_9 = arith.constant 0 : index
    %c0_10 = arith.constant 0 : index
    %9 = vector.load %arg5[%c0_8, %c0_9, %c0_10] : memref<1x2x128xf32, #tpu.memory_space<vmem>>, vector<1x1x128xf32>
    %10 = vector.shape_cast %9 : vector<1x1x128xf32> to vector<1x128xf32>
    %11 = vector.shape_cast %8 : vector<1x128xf32> to vector<1x1x128xf32>
    tpu.vector_store %arg5[%c0_8, %c0_9, %c0_10], %11 {strides = array<i32>} : memref<1x2x128xf32, #tpu.memory_space<vmem>>, vector<1x1x128xf32>,
    %12 = arith.mulf %5, %5 : vector<512x128xf32>
    %cst_11 = arith.constant dense<0.000000e+00> : vector<128xf32>
    %13 = vector.multi_reduction <add>, %12, %cst_11 [0] : vector<512x128xf32> to vector<128xf32>
    %14 = vector.shape_cast %13 : vector<128xf32> to vector<1x128xf32>
    %c0_12 = arith.constant 0 : index
    %c1 = arith.constant 1 : index
    %c0_13 = arith.constant 0 : index
    %15 = vector.load %arg5[%c0_12, %c1, %c0_13] : memref<1x2x128xf32, #tpu.memory_space<vmem>>, vector<1x1x128xf32>
    %16 = vector.shape_cast %15 : vector<1x1x128xf32> to vector<1x128xf32>
    %17 = vector.shape_cast %14 : vector<1x128xf32> to vector<1x1x128xf32>
    tpu.vector_store %arg5[%c0_12, %c1, %c0_13], %17 {strides = array<i32>} : memref<1x2x128xf32, #tpu.memory_space<vmem>>, vector<1x1x128xf32>,
    return
  }
  func.func @transform_0(%arg0: i32) -> (i32, i32) {
    %c0_i32 = arith.constant 0 : i32
    %c0_i32_0 = arith.constant 0 : i32
    return %arg0, %c0_i32 : i32, i32
  }
  func.func @transform_1(%arg0: i32) -> (i32, i32) {
    %c0_i32 = arith.constant 0 : i32
    %c0_i32_0 = arith.constant 0 : i32
    %c0_i32_1 = arith.constant 0 : i32
    return %c0_i32, %c0_i32_0 : i32, i32
  }
  func.func @transform_2(%arg0: i32) -> (i32, i32) {
    %c0_i32 = arith.constant 0 : i32
    %c0_i32_0 = arith.constant 0 : i32
    %c0_i32_1 = arith.constant 0 : i32
    return %c0_i32, %c0_i32_0 : i32, i32
  }
  func.func @transform_3(%arg0: i32) -> (i32, i32) {
    %c0_i32 = arith.constant 0 : i32
    %c0_i32_0 = arith.constant 0 : i32
    return %arg0, %c0_i32 : i32, i32
  }
  func.func @transform_4(%arg0: i32) -> (i32, i32, i32) {
    %c0_i32 = arith.constant 0 : i32
    %c0_i32_0 = arith.constant 0 : i32
    %c0_i32_1 = arith.constant 0 : i32
    return %arg0, %c0_i32, %c0_i32_0 : i32, i32, i32
  }
}

module attributes {stable_mosaic.version = 11 : i64} {
  func.func @_bn1_conv1x1_stats_kernel(%arg0: i32, %arg1: memref<512x128xf32, #tpu.memory_space<vmem>>, %arg2: memref<1x128xf32, #tpu.memory_space<vmem>>, %arg3: memref<1x128xf32, #tpu.memory_space<vmem>>, %arg4: memref<128x128xbf16, #tpu.memory_space<vmem>>, %arg5: memref<1x128xf32, #tpu.memory_space<vmem>>, %arg6: memref<1x2x128xf32, #tpu.memory_space<vmem>>) attributes {dimension_semantics = [#tpu.dimension_semantics<parallel>], iteration_bounds = array<i64: 4>, scalar_prefetch = 0 : i64, scratch_operands = 0 : i64, tpu.core_type = #tpu.core_type<tc>, window_params = [{transform_indices = @transform_0, window_bounds = array<i64: 512, 128>}, {pipeline_mode = #tpu.pipeline_mode<synchronous>, transform_indices = @transform_1, window_bounds = array<i64: 1, 128>}, {pipeline_mode = #tpu.pipeline_mode<synchronous>, transform_indices = @transform_2, window_bounds = array<i64: 1, 128>}, {pipeline_mode = #tpu.pipeline_mode<synchronous>, transform_indices = @transform_3, window_bounds = array<i64: 128, 128>}, {pipeline_mode = #tpu.pipeline_mode<synchronous>, transform_indices = @transform_4, window_bounds = array<i64: 1, 128>}, {transform_indices = @transform_5, window_bounds = array<i64: 1, 2, 128>}]} {
    %c0 = arith.constant 0 : index
    %c0_0 = arith.constant 0 : index
    %0 = vector.load %arg1[%c0, %c0_0] : memref<512x128xf32, #tpu.memory_space<vmem>>, vector<512x128xf32>
    %c0_1 = arith.constant 0 : index
    %c0_2 = arith.constant 0 : index
    %1 = vector.load %arg2[%c0_1, %c0_2] : memref<1x128xf32, #tpu.memory_space<vmem>>, vector<1x128xf32>
    %2 = vector.broadcast %1 : vector<1x128xf32> to vector<512x128xf32>
    %3 = arith.mulf %0, %2 : vector<512x128xf32>
    %c0_3 = arith.constant 0 : index
    %c0_4 = arith.constant 0 : index
    %4 = vector.load %arg3[%c0_3, %c0_4] : memref<1x128xf32, #tpu.memory_space<vmem>>, vector<1x128xf32>
    %5 = vector.broadcast %4 : vector<1x128xf32> to vector<512x128xf32>
    %6 = arith.addf %3, %5 : vector<512x128xf32>
    %cst = arith.constant 0.000000e+00 : f32
    %7 = vector.broadcast %cst : f32 to vector<512x128xf32>
    %8 = arith.maximumf %6, %7 : vector<512x128xf32>
    %9 = arith.truncf %8 : vector<512x128xf32> to vector<512x128xbf16>
    %c0_5 = arith.constant 0 : index
    %c0_6 = arith.constant 0 : index
    %10 = vector.load %arg4[%c0_5, %c0_6] : memref<128x128xbf16, #tpu.memory_space<vmem>>, vector<128x128xbf16>
    %cst_7 = arith.constant dense<0.000000e+00> : vector<512x128xf32>
    %11 = tpu.matmul %9, %10, %cst_7 {dimension_numbers = #tpu.dot_dimension_numbers<[1], [0], [0], [1], [0, 0, 1, 1], [], []>} : vector<512x128xbf16>, vector<128x128xbf16>, vector<512x128xf32> -> vector<512x128xf32>
    %c0_8 = arith.constant 0 : index
    %c0_9 = arith.constant 0 : index
    %12 = vector.load %arg5[%c0_8, %c0_9] : memref<1x128xf32, #tpu.memory_space<vmem>>, vector<1x128xf32>
    %13 = vector.broadcast %12 : vector<1x128xf32> to vector<512x128xf32>
    %14 = arith.addf %11, %13 : vector<512x128xf32>
    %cst_10 = arith.constant dense<0.000000e+00> : vector<128xf32>
    %15 = vector.multi_reduction <add>, %14, %cst_10 [0] : vector<512x128xf32> to vector<128xf32>
    %16 = vector.shape_cast %15 : vector<128xf32> to vector<1x128xf32>
    %c0_11 = arith.constant 0 : index
    %c0_12 = arith.constant 0 : index
    %c0_13 = arith.constant 0 : index
    %17 = vector.load %arg6[%c0_11, %c0_12, %c0_13] : memref<1x2x128xf32, #tpu.memory_space<vmem>>, vector<1x1x128xf32>
    %18 = vector.shape_cast %17 : vector<1x1x128xf32> to vector<1x128xf32>
    %19 = vector.shape_cast %16 : vector<1x128xf32> to vector<1x1x128xf32>
    tpu.vector_store %arg6[%c0_11, %c0_12, %c0_13], %19 {strides = array<i32>} : memref<1x2x128xf32, #tpu.memory_space<vmem>>, vector<1x1x128xf32>,
    %20 = arith.mulf %14, %14 : vector<512x128xf32>
    %cst_14 = arith.constant dense<0.000000e+00> : vector<128xf32>
    %21 = vector.multi_reduction <add>, %20, %cst_14 [0] : vector<512x128xf32> to vector<128xf32>
    %22 = vector.shape_cast %21 : vector<128xf32> to vector<1x128xf32>
    %c0_15 = arith.constant 0 : index
    %c1 = arith.constant 1 : index
    %c0_16 = arith.constant 0 : index
    %23 = vector.load %arg6[%c0_15, %c1, %c0_16] : memref<1x2x128xf32, #tpu.memory_space<vmem>>, vector<1x1x128xf32>
    %24 = vector.shape_cast %23 : vector<1x1x128xf32> to vector<1x128xf32>
    %25 = vector.shape_cast %22 : vector<1x128xf32> to vector<1x1x128xf32>
    tpu.vector_store %arg6[%c0_15, %c1, %c0_16], %25 {strides = array<i32>} : memref<1x2x128xf32, #tpu.memory_space<vmem>>, vector<1x1x128xf32>,
    return
  }
  func.func @transform_0(%arg0: i32) -> (i32, i32) {
    %c0_i32 = arith.constant 0 : i32
    %c0_i32_0 = arith.constant 0 : i32
    return %arg0, %c0_i32 : i32, i32
  }
  func.func @transform_1(%arg0: i32) -> (i32, i32) {
    %c0_i32 = arith.constant 0 : i32
    %c0_i32_0 = arith.constant 0 : i32
    %c0_i32_1 = arith.constant 0 : i32
    return %c0_i32, %c0_i32_0 : i32, i32
  }
  func.func @transform_2(%arg0: i32) -> (i32, i32) {
    %c0_i32 = arith.constant 0 : i32
    %c0_i32_0 = arith.constant 0 : i32
    %c0_i32_1 = arith.constant 0 : i32
    return %c0_i32, %c0_i32_0 : i32, i32
  }
  func.func @transform_3(%arg0: i32) -> (i32, i32) {
    %c0_i32 = arith.constant 0 : i32
    %c0_i32_0 = arith.constant 0 : i32
    %c0_i32_1 = arith.constant 0 : i32
    return %c0_i32, %c0_i32_0 : i32, i32
  }
  func.func @transform_4(%arg0: i32) -> (i32, i32) {
    %c0_i32 = arith.constant 0 : i32
    %c0_i32_0 = arith.constant 0 : i32
    %c0_i32_1 = arith.constant 0 : i32
    return %c0_i32, %c0_i32_0 : i32, i32
  }
  func.func @transform_5(%arg0: i32) -> (i32, i32, i32) {
    %c0_i32 = arith.constant 0 : i32
    %c0_i32_0 = arith.constant 0 : i32
    %c0_i32_1 = arith.constant 0 : i32
    return %arg0, %c0_i32, %c0_i32_0 : i32, i32, i32
  }
}

module attributes {stable_mosaic.version = 11 : i64} {
  func.func @_bn2_residual_kernel(%arg0: i32, %arg1: memref<512x128xf32, #tpu.memory_space<vmem>>, %arg2: memref<512x128xf32, #tpu.memory_space<vmem>>, %arg3: memref<1x128xf32, #tpu.memory_space<vmem>>, %arg4: memref<1x128xf32, #tpu.memory_space<vmem>>, %arg5: memref<128x128xbf16, #tpu.memory_space<vmem>>, %arg6: memref<1x128xf32, #tpu.memory_space<vmem>>, %arg7: memref<1x128xf32, #tpu.memory_space<vmem>>, %arg8: memref<1x128xf32, #tpu.memory_space<vmem>>, %arg9: memref<512x128xf32, #tpu.memory_space<vmem>>) attributes {dimension_semantics = [#tpu.dimension_semantics<parallel>], iteration_bounds = array<i64: 4>, scalar_prefetch = 0 : i64, scratch_operands = 0 : i64, tpu.core_type = #tpu.core_type<tc>, window_params = [{transform_indices = @transform_0, window_bounds = array<i64: 512, 128>}, {transform_indices = @transform_1, window_bounds = array<i64: 512, 128>}, {pipeline_mode = #tpu.pipeline_mode<synchronous>, transform_indices = @transform_2, window_bounds = array<i64: 1, 128>}, {pipeline_mode = #tpu.pipeline_mode<synchronous>, transform_indices = @transform_3, window_bounds = array<i64: 1, 128>}, {pipeline_mode = #tpu.pipeline_mode<synchronous>, transform_indices = @transform_4, window_bounds = array<i64: 128, 128>}, {pipeline_mode = #tpu.pipeline_mode<synchronous>, transform_indices = @transform_5, window_bounds = array<i64: 1, 128>}, {pipeline_mode = #tpu.pipeline_mode<synchronous>, transform_indices = @transform_6, window_bounds = array<i64: 1, 128>}, {pipeline_mode = #tpu.pipeline_mode<synchronous>, transform_indices = @transform_7, window_bounds = array<i64: 1, 128>}, {transform_indices = @transform_8, window_bounds = array<i64: 512, 128>}]} {
    %c0 = arith.constant 0 : index
    %c0_0 = arith.constant 0 : index
    %0 = vector.load %arg1[%c0, %c0_0] : memref<512x128xf32, #tpu.memory_space<vmem>>, vector<512x128xf32>
    %c0_1 = arith.constant 0 : index
    %c0_2 = arith.constant 0 : index
    %1 = vector.load %arg3[%c0_1, %c0_2] : memref<1x128xf32, #tpu.memory_space<vmem>>, vector<1x128xf32>
    %2 = vector.broadcast %1 : vector<1x128xf32> to vector<512x128xf32>
    %3 = arith.mulf %0, %2 : vector<512x128xf32>
    %c0_3 = arith.constant 0 : index
    %c0_4 = arith.constant 0 : index
    %4 = vector.load %arg4[%c0_3, %c0_4] : memref<1x128xf32, #tpu.memory_space<vmem>>, vector<1x128xf32>
    %5 = vector.broadcast %4 : vector<1x128xf32> to vector<512x128xf32>
    %6 = arith.addf %3, %5 : vector<512x128xf32>
    %cst = arith.constant 0.000000e+00 : f32
    %7 = vector.broadcast %cst : f32 to vector<512x128xf32>
    %8 = arith.maximumf %6, %7 : vector<512x128xf32>
    %9 = arith.truncf %8 : vector<512x128xf32> to vector<512x128xbf16>
    %c0_5 = arith.constant 0 : index
    %c0_6 = arith.constant 0 : index
    %10 = vector.load %arg5[%c0_5, %c0_6] : memref<128x128xbf16, #tpu.memory_space<vmem>>, vector<128x128xbf16>
    %cst_7 = arith.constant dense<0.000000e+00> : vector<512x128xf32>
    %11 = tpu.matmul %9, %10, %cst_7 {dimension_numbers = #tpu.dot_dimension_numbers<[1], [0], [0], [1], [0, 0, 1, 1], [], []>} : vector<512x128xbf16>, vector<128x128xbf16>, vector<512x128xf32> -> vector<512x128xf32>
    %c0_8 = arith.constant 0 : index
    %c0_9 = arith.constant 0 : index
    %12 = vector.load %arg6[%c0_8, %c0_9] : memref<1x128xf32, #tpu.memory_space<vmem>>, vector<1x128xf32>
    %13 = vector.broadcast %12 : vector<1x128xf32> to vector<512x128xf32>
    %14 = arith.addf %11, %13 : vector<512x128xf32>
    %c0_10 = arith.constant 0 : index
    %c0_11 = arith.constant 0 : index
    %15 = vector.load %arg2[%c0_10, %c0_11] : memref<512x128xf32, #tpu.memory_space<vmem>>, vector<512x128xf32>
    %c0_12 = arith.constant 0 : index
    %c0_13 = arith.constant 0 : index
    %16 = vector.load %arg7[%c0_12, %c0_13] : memref<1x128xf32, #tpu.memory_space<vmem>>, vector<1x128xf32>
    %17 = vector.broadcast %16 : vector<1x128xf32> to vector<512x128xf32>
    %18 = arith.mulf %14, %17 : vector<512x128xf32>
    %19 = arith.addf %15, %18 : vector<512x128xf32>
    %c0_14 = arith.constant 0 : index
    %c0_15 = arith.constant 0 : index
    %20 = vector.load %arg8[%c0_14, %c0_15] : memref<1x128xf32, #tpu.memory_space<vmem>>, vector<1x128xf32>
    %21 = vector.broadcast %20 : vector<1x128xf32> to vector<512x128xf32>
    %22 = arith.addf %19, %21 : vector<512x128xf32>
    %c0_16 = arith.constant 0 : index
    %c0_17 = arith.constant 0 : index
    %23 = vector.load %arg9[%c0_16, %c0_17] : memref<512x128xf32, #tpu.memory_space<vmem>>, vector<512x128xf32>
    tpu.vector_store %arg9[%c0_16, %c0_17], %22 {strides = array<i32>} : memref<512x128xf32, #tpu.memory_space<vmem>>, vector<512x128xf32>,
    return
  }
  func.func @transform_0(%arg0: i32) -> (i32, i32) {
    %c0_i32 = arith.constant 0 : i32
    %c0_i32_0 = arith.constant 0 : i32
    return %arg0, %c0_i32 : i32, i32
  }
  func.func @transform_1(%arg0: i32) -> (i32, i32) {
    %c0_i32 = arith.constant 0 : i32
    %c0_i32_0 = arith.constant 0 : i32
    return %arg0, %c0_i32 : i32, i32
  }
  func.func @transform_2(%arg0: i32) -> (i32, i32) {
    %c0_i32 = arith.constant 0 : i32
    %c0_i32_0 = arith.constant 0 : i32
    %c0_i32_1 = arith.constant 0 : i32
    return %c0_i32, %c0_i32_0 : i32, i32
  }
  func.func @transform_3(%arg0: i32) -> (i32, i32) {
    %c0_i32 = arith.constant 0 : i32
    %c0_i32_0 = arith.constant 0 : i32
    %c0_i32_1 = arith.constant 0 : i32
    return %c0_i32, %c0_i32_0 : i32, i32
  }
  func.func @transform_4(%arg0: i32) -> (i32, i32) {
    %c0_i32 = arith.constant 0 : i32
    %c0_i32_0 = arith.constant 0 : i32
    %c0_i32_1 = arith.constant 0 : i32
    return %c0_i32, %c0_i32_0 : i32, i32
  }
  func.func @transform_5(%arg0: i32) -> (i32, i32) {
    %c0_i32 = arith.constant 0 : i32
    %c0_i32_0 = arith.constant 0 : i32
    %c0_i32_1 = arith.constant 0 : i32
    return %c0_i32, %c0_i32_0 : i32, i32
  }
  func.func @transform_6(%arg0: i32) -> (i32, i32) {
    %c0_i32 = arith.constant 0 : i32
    %c0_i32_0 = arith.constant 0 : i32
    %c0_i32_1 = arith.constant 0 : i32
    return %c0_i32, %c0_i32_0 : i32, i32
  }
  func.func @transform_7(%arg0: i32) -> (i32, i32) {
    %c0_i32 = arith.constant 0 : i32
    %c0_i32_0 = arith.constant 0 : i32
    %c0_i32_1 = arith.constant 0 : i32
    return %c0_i32, %c0_i32_0 : i32, i32
  }
  func.func @transform_8(%arg0: i32) -> (i32, i32) {
    %c0_i32 = arith.constant 0 : i32
    %c0_i32_0 = arith.constant 0 : i32
    return %arg0, %c0_i32 : i32, i32
  }
}

</mosaic_0001>

<bundles_post_ra>
// kernel: resblock_forward.4
= control target key start
LH: loop header
LB: loop body
LE: loop exit
PB: predicated region body
PF: predicated region fallthrough
CT: control target
= control target key end

     0   :  { %s1356_s18 = smov 0   ;;  %s1874_s0 = inlined_call_operand.vmem [shape: f32[2048,128], index: 0, kind: input, shape index: {}]   ;;  %s1875_s1 = inlined_call_operand.vmem [shape: f32[1,128], index: 1, kind: input, shape index: {}]   ;;  %s1876_s2 = inlined_call_operand.vmem [shape: f32[1,128], index: 2, kind: input, shape index: {}]   ;;  %s1877_s3 = inlined_call_operand.vmem [shape: bf16[128,128], index: 3, kind: input, shape index: {}]   ;;  %s1878_s4 = inlined_call_operand.vmem [shape: f32[1,128], index: 4, kind: input, shape index: {}]   ;;  %s1879_s5 = inlined_call_operand.vmem [shape: f32[4,2,128], index: 5, kind: output, shape index: {}]  }
   0x1 LB: > { %s1362_s19 = sadd.s32 4294967295, %s1324_s18   ;;  %p1149_p0 = scmp.ge.s32.totalorder %s1324_s18, 1  ;;  %s1324_s18 = sphi %s1356_s18, %s15_s18  }
   0x2   : > { %p188_p1 = scmp.lt.s32.totalorder %s1324_s18, 5 }
   0x4   : > { %p189_p2 = pnand %p1149_p0, %p188_p1 }
   0x5   : > { %v1310_v0 = vld [vmem:[%s1877_s3] sm:$0xff] (!%p189_p2)   ;;  %s1150_s22 = sshll.u32 (!%p189_p2), %s1362_s19, 6  ;;  %v1311_v1 = vld [vmem:[%s1877_s3 + $0x8] sm:$0xff] (!%p189_p2)   ;;  %v1312_v2 = vld [vmem:[%s1877_s3 + $0x10] sm:$0xff] (!%p189_p2)   ;;  %p221_p4 = scmp.lt.s32.totalorder (!%p189_p2), %s1362_s19, 3 }
   0x6   : > { %192 = sbr.rel (%p189_p2) target bundleno = 396 (0x18c), region = 40  ;;  %p216_p3 = scmp.lt.s32.totalorder (!%p189_p2), %s1150_s22, 255  ;;  %1206 = vmatprep.subr.bf16.mxu0 (!%p189_p2), %v1310_v0  ;;  %1286 = vmatprep.subr.bf16.mxu1 (!%p189_p2), %v1310_v0  ;;  %v1313_v3 = vld [vmem:[%s1877_s3 + $0x18] sm:$0xff] (!%p189_p2)   ;;  %v1389_v6 = vld [vmem:[%s1875_s1] ss:$0 sm:$0xff] (!%p189_p2)  ;;  %v1315_v34 = vld [vmem:[%s1877_s3 + $0x28] sm:$0xff] (!%p189_p2)  }
   0x7   : > { %1207 = vmatpush3.bf16.msra.mxu0 (!%p189_p2), %v1310_v0  ;;  %1294 = vmatpush3.bf16.msra.mxu1 (!%p189_p2), %v1310_v0  ;;  %v1396_v9 = vld [vmem:[%s1876_s2] ss:$0 sm:$0xff] (!%p189_p2)  ;;  %v1447_v50 = vld [vmem:[%s1877_s3 + $0x30] sm:$0xff] (!%p189_p2)  }
   0x8   : > { %1208 = vmatprep.subr.bf16.mxu0 (!%p189_p2), %v1311_v1  ;;  %1287 = vmatprep.subr.bf16.mxu1 (!%p189_p2), %v1311_v1  ;;  %v1402_v11 = vld [vmem:[%s1877_s3 + $0x20] sm:$0xff] (!%p189_p2)  }
   0xb   : > { %1209 = vmatpush3.bf16.msra.mxu0 (!%p189_p2), %v1311_v1  ;;  %1295 = vmatpush3.bf16.msra.mxu1 (!%p189_p2), %v1311_v1 }
   0xc   : > { %1210 = vmatprep.subr.bf16.mxu0 (!%p189_p2), %v1312_v2  ;;  %1288 = vmatprep.subr.bf16.mxu1 (!%p189_p2), %v1312_v2 }
   0xd   : > { %s1881_s22 = smov (!%p216_p3, %s1150_s22), 255  ;;  %s1883_s19 = smov (!%p221_p4, %s1362_s19), 3 }
   0xe   : > { %s1151_s27 = sshll.u32 %s1881_s22, 3  ;;  %s1152_s24 = sshll.u32 %s1883_s19, 1 }
   0xf   : > { %s1379_s30 = scalar_lea.vmem %s1874_s0, %s1151_s27  ;;  %1211 = vmatpush3.bf16.msra.mxu0 %v1312_v2  ;;  %1296 = vmatpush3.bf16.msra.mxu1 %v1312_v2  ;;  %s224_s27 = scalar_lea.vmem %s1879_s5, %s1152_s24 }
  0x10   : > { %v226_v4 = vld [vmem:[%s1379_s30] sm:$0xff]  ;;  %v227_v5 = vld [vmem:[%s1379_s30 + $0x8] sm:$0xff]  ;;  %v228_v10 = vld [vmem:[%s1379_s30 + $0x10] sm:$0xff]  ;;  %1212 = vmatprep.subr.bf16.mxu0 %v1313_v3  ;;  %1289 = vmatprep.subr.bf16.mxu1 %v1313_v3 }
  0x11   : > { %v297_v7 = vmul.f32 %v1389_v6, %v226_v4  ;;  %v298_v8 = vmul.f32 %v1389_v6, %v227_v5  ;;  %v229_v14 = vld [vmem:[%s1379_s30 + $0x18] sm:$0xff]  ;;  %v230_v15 = vld [vmem:[%s1379_s30 + $0x20] sm:$0xff]  ;;  %v231_v16 = vld [vmem:[%s1379_s30 + $0x28] sm:$0xff]  ;;  %v299_v21 = vmul.f32 %v1389_v6, %v228_v10 }
  0x12   : > { %v232_v17 = vld [vmem:[%s1379_s30 + $0x30] sm:$0xff]  ;;  %v233_v18 = vld [vmem:[%s1379_s30 + $0x38] sm:$0xff]  ;;  %v234_v22 = vld [vmem:[%s1379_s30 + $0x40] sm:$0xff]  ;;  %v300_v24 = vmul.f32 %v1389_v6, %v229_v14  ;;  %v301_v25 = vmul.f32 %v1389_v6, %v230_v15  ;;  %v302_v29 = vmul.f32 %v1389_v6, %v231_v16 }
  0x13   : > { %v368_v12 = vadd.f32 %v1396_v9, %v297_v7  ;;  %v369_v13 = vadd.f32 %v1396_v9, %v298_v8  ;;  %v235_v23 = vld [vmem:[%s1379_s30 + $0x48] sm:$0xff]  ;;  %v236_v26 = vld [vmem:[%s1379_s30 + $0x50] sm:$0xff]  ;;  %v237_v27 = vld [vmem:[%s1379_s30 + $0x58] sm:$0xff]  ;;  %1213 = vmatpush3.bf16.msra.mxu0 %v1313_v3  ;;  %v303_v30 = vmul.f32 %v1389_v6, %v232_v17  ;;  %v304_v31 = vmul.f32 %v1389_v6, %v233_v18 }
  0x14   : > { %v238_v32 = vld [vmem:[%s1379_s30 + $0x60] sm:$0xff]  ;;  %v239_v33 = vld [vmem:[%s1379_s30 + $0x68] sm:$0xff]  ;;  %1214 = vmatprep.subr.bf16.mxu0 %v1402_v11  ;;  %v305_v35 = vmul.f32 %v1389_v6, %v234_v22  ;;  %v306_v36 = vmul.f32 %v1389_v6, %v235_v23  ;;  %v370_v37 = vadd.f32 %v1396_v9, %v299_v21  ;;  %v307_v38 = vmul.f32 %v1389_v6, %v236_v26  ;;  %v240_v44 = vld [vmem:[%s1379_s30 + $0x70] sm:$0xff] }
  0x15   : > { %v432_v19 = vmax.f32 %v368_v12, 0.0  ;;  %v433_v20 = vmax.f32 %v369_v13, 0.0  ;;  %v308_v39 = vmul.f32 %v1389_v6, %v237_v27  ;;  %v371_v40 = vadd.f32 %v1396_v9, %v300_v24  ;;  %1297 = vmatpush3.bf16.msra.mxu1 %v1313_v3  ;;  %v241_v48 = vld [vmem:[%s1379_s30 + $0x78] sm:$0xff]  ;;  %v242_v49 = vld [vmem:[%s1379_s30 + $0x80] sm:$0xff]  ;;  %v243_v55 = vld [vmem:[%s1379_s30 + $0x88] sm:$0xff] }
  0x16   : > { %v372_v41 = vadd.f32 %v1396_v9, %v301_v25  ;;  %v309_v42 = vmul.f32 %v1389_v6, %v238_v32  ;;  %v310_v43 = vmul.f32 %v1389_v6, %v239_v33  ;;  %v373_v45 = vadd.f32 %v1396_v9, %v302_v29  ;;  %1290 = vmatprep.subr.bf16.mxu1 %v1402_v11  ;;  %v244_v0 = vld [vmem:[%s1379_s30 + $0x90] sm:$0xff]  ;;  %v245_v5 = vld [vmem:[%s1379_s30 + $0x98] sm:$0xff]  ;;  %v246_v13 = vld [vmem:[%s1379_s30 + $0xa0] sm:$0xff] }
  0x17   : > { %v496_v28 = vpack.c.bf16 %v433_v20, %v432_v19  ;;  %1215 = vmatpush3.bf16.msra.mxu0 %v1402_v11  ;;  %v374_v46 = vadd.f32 %v1396_v9, %v303_v30  ;;  %v375_v47 = vadd.f32 %v1396_v9, %v304_v31  ;;  %v376_v51 = vadd.f32 %v1396_v9, %v305_v35  ;;  %v1317_v7 = vld [vmem:[%s1877_s3 + $0x38] sm:$0xff]   ;;  %v247_v18 = vld [vmem:[%s1379_s30 + $0xa8] sm:$0xff]  ;;  %v248_v25 = vld [vmem:[%s1379_s30 + $0xb0] sm:$0xff] }
  0x18   : > { %1216 = vmatprep.subr.bf16.mxu0 %v1315_v34  ;;  %v377_v52 = vadd.f32 %v1396_v9, %v306_v36  ;;  %v378_v53 = vadd.f32 %v1396_v9, %v307_v38  ;;  %v379_v54 = vadd.f32 %v1396_v9, %v308_v39  ;;  %v434_v56 = vmax.f32 %v370_v37, 0.0  ;;  %v252_v30 = vld [vmem:[%s1379_s30 + $0xd0] sm:$0xff]  ;;  %v253_v31 = vld [vmem:[%s1379_s30 + $0xd8] sm:$0xff]  ;;  %v254_v37 = vld [vmem:[%s1379_s30 + $0xe0] sm:$0xff] }
  0x19   : > { %1222 = vmatprep.mubr.bf16.mxu0 %v496_v28  ;;  %v380_v57 = vadd.f32 %v1396_v9, %v309_v42  ;;  %v381_v58 = vadd.f32 %v1396_v9, %v310_v43  ;;  %v311_v59 = vmul.f32 %v1389_v6, %v240_v44  ;;  %v435_v60 = vmax.f32 %v371_v40, 0.0  ;;  %1298 = vmatpush3.bf16.msra.mxu1 %v1402_v11  ;;  %v249_v36 = vld [vmem:[%s1379_s30 + $0xb8] sm:$0xff]  ;;  %v255_v38 = vld [vmem:[%s1379_s30 + $0xe8] sm:$0xff]  ;;  %v256_v43 = vld [vmem:[%s1379_s30 + $0xf0] sm:$0xff] }
  0x1a   : > { %v436_v61 = vmax.f32 %v372_v41, 0.0  ;;  %v312_v62 = vmul.f32 %v1389_v6, %v241_v48  ;;  %v313_v63 = vmul.f32 %v1389_v6, %v242_v49  ;;  %v437_v1 = vmax.f32 %v373_v45, 0.0  ;;  %1291 = vmatprep.subr.bf16.mxu1 %v1315_v34  ;;  %v257_v48 = vld [vmem:[%s1379_s30 + $0xf8] sm:$0xff] }
  0x1b   : > { %1217 = vmatpush3.bf16.msra.mxu0 %v1315_v34  ;;  %v438_v2 = vmax.f32 %v374_v46, 0.0  ;;  %v439_v3 = vmax.f32 %v375_v47, 0.0  ;;  %v314_v4 = vmul.f32 %v1389_v6, %v243_v55  ;;  %v440_v8 = vmax.f32 %v376_v51, 0.0 }
  0x1c   : > { %1218 = vmatprep.subr.bf16.mxu0 %v1447_v50  ;;  %v441_v10 = vmax.f32 %v377_v52, 0.0  ;;  %v442_v12 = vmax.f32 %v378_v53, 0.0  ;;  %v443_v11 = vmax.f32 %v379_v54, 0.0  ;;  %v444_v14 = vmax.f32 %v380_v57, 0.0  ;;  %v258_v53 = vld [vmem:[%s1379_s30 + $0x100] sm:$0xff] }
  0x1d   : > { %v445_v15 = vmax.f32 %v381_v58, 0.0  ;;  %v1469_v16 = vadd.f32 %v1396_v9, %v311_v59  ;;  %v315_v17 = vmul.f32 %v1389_v6, %v244_v0  ;;  %v1474_v19 = vadd.f32 %v1396_v9, %v312_v62  ;;  %1299 = vmatpush3.bf16.msra.mxu1 %v1315_v34  ;;  %v259_v62 = vld [vmem:[%s1379_s30 + $0x108] sm:$0xff] }
  0x1e   : > { %v1477_v20 = vadd.f32 %v1396_v9, %v313_v63  ;;  %v316_v21 = vmul.f32 %v1389_v6, %v245_v5  ;;  %v497_v22 = vpack.c.bf16 %v435_v60, %v434_v56  ;;  %v1482_v23 = vadd.f32 %v1396_v9, %v314_v4  ;;  %1292 = vmatprep.subr.bf16.mxu1 %v1447_v50  ;;  %v261_v4 = vld [vmem:[%s1379_s30 + $0x118] sm:$0xff] }
  0x1f   : > { %1219 = vmatpush3.bf16.msra.mxu0 %v1447_v50  ;;  %v317_v24 = vmul.f32 %v1389_v6, %v246_v13  ;;  %v498_v26 = vpack.c.bf16 %v437_v1, %v436_v61  ;;  %v1487_v27 = vpack.c.bf16 %v439_v3, %v438_v2  ;;  %v1489_v28 = vpack.c.bf16 %v441_v10, %v440_v8  ;;  %v260_v3 = vld [vmem:[%s1379_s30 + $0x110] sm:$0xff] }
  0x20   : > { %1220 = vmatprep.subr.bf16.mxu0 %v1317_v7  ;;  %v318_v29 = vmul.f32 %v1389_v6, %v247_v18  ;;  %v1494_v32 = vpack.c.bf16 %v443_v11, %v442_v12  ;;  %v1496_v33 = vpack.c.bf16 %v445_v15, %v444_v14  ;;  %v446_v34 = vmax.f32 %v1469_v16, 0.0  ;;  %v263_v11 = vld [vmem:[%s1379_s30 + $0x128] sm:$0xff]  ;;  %v264_v18 = vld [vmem:[%s1379_s30 + $0x130] sm:$0xff] }
  0x21   : > { %v1500_v35 = vadd.f32 %v1396_v9, %v315_v17  ;;  %v447_v39 = vmax.f32 %v1474_v19, 0.0  ;;  %v448_v40 = vmax.f32 %v1477_v20, 0.0  ;;  %v1508_v41 = vadd.f32 %v1396_v9, %v316_v21  ;;  %1300 = vmatpush3.bf16.msra.mxu1 %v1447_v50 }
  0x22   : > { %v319_v42 = vmul.f32 %v1389_v6, %v248_v25  ;;  %v449_v44 = vmax.f32 %v1482_v23, 0.0  ;;  %v1515_v45 = vadd.f32 %v1396_v9, %v317_v24  ;;  %v323_v46 = vmul.f32 %v1389_v6, %v252_v30  ;;  %1293 = vmatprep.subr.bf16.mxu1 %v1317_v7 }
  0x23   : > { %1221 = vmatpush3.bf16.msra.mxu0 %v1317_v7  ;;  %v324_v47 = vmul.f32 %v1389_v6, %v253_v31  ;;  %v1521_v49 = vadd.f32 %v1396_v9, %v318_v29  ;;  %v1524_v51 = vmul.f32 %v1389_v6, %v249_v36  ;;  %v325_v50 = vmul.f32 %v1389_v6, %v254_v37  ;;  %v266_v37 = vld [vmem:[%s1379_s30 + $0x140] sm:$0xff] }
  0x24   : > { %v326_v52 = vmul.f32 %v1389_v6, %v255_v38  ;;  %v450_v54 = vmax.f32 %v1500_v35, 0.0  ;;  %v394_v55 = vadd.f32 %v1396_v9, %v323_v46  ;;  %v327_v57 = vmul.f32 %v1389_v6, %v256_v43  ;;  %v282_v35 = vld [vmem:[%s1379_s30 + $0x1c0] sm:$0xff] }
  0x25   : > { %v395_v56 = vadd.f32 %v1396_v9, %v324_v47  ;;  %v451_v58 = vmax.f32 %v1508_v41, 0.0  ;;  %v396_v59 = vadd.f32 %v1396_v9, %v325_v50  ;;  %v328_v61 = vmul.f32 %v1389_v6, %v257_v48  ;;  %1301 = vmatpush3.bf16.msra.mxu1 %v1317_v7  ;;  %v262_v7 = vld [vmem:[%s1379_s30 + $0x120] sm:$0xff] }
  0x26   : > { %1223 = vmatmul.mubr.bf16.vlgmr.msra.gmra.mrb[0].mxu0 %v497_v22  ;;  %v397_v60 = vadd.f32 %v1396_v9, %v326_v52  ;;  %v458_v63 = vmax.f32 %v394_v55, 0.0  ;;  %v398_v1 = vadd.f32 %v1396_v9, %v327_v57  ;;  %v329_v2 = vmul.f32 %v1389_v6, %v258_v53  ;;  %v250_v47 = vld [vmem:[%s1379_s30 + $0xc0] sm:$0xff]  ;;  %v267_v55 = vld [vmem:[%s1379_s30 + $0x148] sm:$0xff] }
  0x27   : > { %1226 = vmatprep.mubr.bf16.mxu0 %v498_v26  ;;  %v459_v0 = vmax.f32 %v395_v56, 0.0  ;;  %v1543_v5 = vadd.f32 %v1396_v9, %v319_v42  ;;  %v460_v8 = vmax.f32 %v396_v59, 0.0  ;;  %v399_v12 = vadd.f32 %v1396_v9, %v328_v61  ;;  %v265_v26 = vld [vmem:[%s1379_s30 + $0x138] sm:$0xff]  ;;  %v268_v61 = vld [vmem:[%s1379_s30 + $0x150] sm:$0xff] }
  0x28   : > { %v461_v10 = vmax.f32 %v397_v60, 0.0  ;;  %v462_v14 = vmax.f32 %v398_v1, 0.0  ;;  %v330_v15 = vmul.f32 %v1389_v6, %v259_v62  ;;  %v400_v17 = vadd.f32 %v1396_v9, %v329_v2  ;;  %v269_v62 = vld [vmem:[%s1379_s30 + $0x158] sm:$0xff] }
  0x29   : > { %v1548_v13 = vpack.c.bf16 %v459_v0, %v458_v63  ;;  %v463_v22 = vmax.f32 %v399_v12, 0.0  ;;  %v331_v24 = vmul.f32 %v1389_v6, %v260_v3  ;;  %v332_v25 = vmul.f32 %v1389_v6, %v261_v4  ;;  %v270_v3 = vld [vmem:[%s1379_s30 + $0x160] sm:$0xff]  ;;  %v271_v4 = vld [vmem:[%s1379_s30 + $0x168] sm:$0xff] }
  0x2a   : > { %v1553_v21 = vpack.c.bf16 %v461_v10, %v460_v8  ;;  %v401_v29 = vadd.f32 %v1396_v9, %v330_v15  ;;  %v464_v30 = vmax.f32 %v400_v17, 0.0  ;;  %v333_v31 = vmul.f32 %v1389_v6, %v262_v7  ;;  %v272_v7 = vld [vmem:[%s1379_s30 + $0x170] sm:$0xff]  ;;  %v273_v17 = vld [vmem:[%s1379_s30 + $0x178] sm:$0xff] }
  0x2b   : > { %v334_v36 = vmul.f32 %v1389_v6, %v263_v11  ;;  %v1562_v38 = vpack.c.bf16 %v463_v22, %v462_v14  ;;  %v402_v42 = vadd.f32 %v1396_v9, %v331_v24  ;;  %v403_v43 = vadd.f32 %v1396_v9, %v332_v25 }
  0x2c   : > { %v335_v46 = vmul.f32 %v1389_v6, %v264_v18  ;;  %v465_v48 = vmax.f32 %v401_v29, 0.0  ;;  %v404_v50 = vadd.f32 %v1396_v9, %v333_v31  ;;  %v336_v53 = vmul.f32 %v1389_v6, %v265_v26  ;;  %v274_v26 = vld [vmem:[%s1379_s30 + $0x180] sm:$0xff]  ;;  %v251_v29 = vld [vmem:[%s1379_s30 + $0xc8] sm:$0xff] }
  0x2d   : > { %v405_v52 = vadd.f32 %v1396_v9, %v334_v36  ;;  %v466_v56 = vmax.f32 %v402_v42, 0.0  ;;  %v467_v57 = vmax.f32 %v403_v43, 0.0  ;;  %v337_v60 = vmul.f32 %v1389_v6, %v266_v37 }
  0x2e   : > { %1227 = vmatmul.mubr.bf16.gmra.mrb[4].mxu0 %v1487_v27  ;;  %v406_v59 = vadd.f32 %v1396_v9, %v335_v46  ;;  %v512_v63 = vpack.c.bf16 %v465_v48, %v464_v30  ;;  %v468_v0 = vmax.f32 %v404_v50, 0.0  ;;  %v407_v2 = vadd.f32 %v1396_v9, %v336_v53 }
  0x2f   : > { %1230 = vmatprep.mubr.bf16.mxu0 %v1489_v28  ;;  %v469_v1 = vmax.f32 %v405_v52, 0.0  ;;  %v321_v27 = vmul.f32 %v1389_v6, %v250_v47  ;;  %v513_v8 = vpack.c.bf16 %v467_v57, %v466_v56  ;;  %v338_v10 = vmul.f32 %v1389_v6, %v267_v55 }
  0x30   : > { %v408_v12 = vadd.f32 %v1396_v9, %v337_v60  ;;  %1254 = vmatprep.mubr.bf16.mxu1 %v512_v63  ;;  %v470_v11 = vmax.f32 %v406_v59, 0.0  ;;  %v339_v14 = vmul.f32 %v1389_v6, %v268_v61  ;;  %v340_v15 = vmul.f32 %v1389_v6, %v269_v62  ;;  %v275_v60 = vld [vmem:[%s1379_s30 + $0x188] sm:$0xff]  ;;  %v280_v62 = vld [vmem:[%s1379_s30 + $0x1b0] sm:$0xff] }
  0x31   : > { %v514_v28 = vpack.c.bf16 %v469_v1, %v468_v0  ;;  %1255 = vmatmul.mubr.bf16.vlgmr.msra.gmra.mrb[0].mxu1 %v513_v8  ;;  %v471_v18 = vmax.f32 %v407_v2, 0.0  ;;  %v409_v22 = vadd.f32 %v1396_v9, %v338_v10  ;;  %v341_v24 = vmul.f32 %v1389_v6, %v270_v3  ;;  %v281_v1 = vld [vmem:[%s1379_s30 + $0x1b8] sm:$0xff]  ;;  %v283_v8 = vld [vmem:[%s1379_s30 + $0x1c8] sm:$0xff] }
  0x32   : > { %v342_v25 = vmul.f32 %v1389_v6, %v271_v4  ;;  %v472_v30 = vmax.f32 %v408_v12, 0.0  ;;  %v410_v31 = vadd.f32 %v1396_v9, %v339_v14  ;;  %v411_v36 = vadd.f32 %v1396_v9, %v340_v15  ;;  %v278_v4 = vld [vmem:[%s1379_s30 + $0x1a0] sm:$0xff]  ;;  %v284_v14 = vld [vmem:[%s1379_s30 + $0x1d0] sm:$0xff]  ;;  %v285_v15 = vld [vmem:[%s1379_s30 + $0x1d8] sm:$0xff] }
  0x33   : > { %1258 = vmatprep.mubr.bf16.mxu1 %v514_v28  ;;  %v343_v37 = vmul.f32 %v1389_v6, %v272_v7  ;;  %v473_v42 = vmax.f32 %v409_v22, 0.0  ;;  %v412_v43 = vadd.f32 %v1396_v9, %v341_v24  ;;  %v344_v47 = vmul.f32 %v1389_v6, %v273_v17  ;;  %v279_v7 = vld [vmem:[%s1379_s30 + $0x1a8] sm:$0xff] }
  0x34   : > { %v413_v46 = vadd.f32 %v1396_v9, %v342_v25  ;;  %v452_v48 = vmax.f32 %v1515_v45, 0.0  ;;  %v453_v50 = vmax.f32 %v1521_v49, 0.0  ;;  %v1603_v52 = vadd.f32 %v1396_v9, %v1524_v51  ;;  %v286_v25 = vld [vmem:[%s1379_s30 + $0x1e0] sm:$0xff] }
  0x35   : > { %v345_v53 = vmul.f32 %v1389_v6, %v274_v26  ;;  %v322_v55 = vmul.f32 %v1389_v6, %v251_v29  ;;  %v515_v56 = vpack.c.bf16 %v471_v18, %v470_v11  ;;  %v474_v57 = vmax.f32 %v410_v31, 0.0  ;;  %v287_v26 = vld [vmem:[%s1379_s30 + $0x1e8] sm:$0xff] }
  0x36   : > { %1231 = vmatmul.mubr.bf16.gmra.mrb[8].mxu0 %v1494_v32  ;;  %v475_v59 = vmax.f32 %v411_v36, 0.0  ;;  %v516_v45 = vpack.c.bf16 %v473_v42, %v472_v30  ;;  %v476_v49 = vmax.f32 %v412_v43, 0.0  ;;  %v477_v61 = vmax.f32 %v413_v46, 0.0 }
  0x37   : > { %1234 = vmatprep.mubr.bf16.mxu0 %v1496_v33  ;;  %v1611_v51 = vadd.f32 %v1396_v9, %v343_v37  ;;  %v503_v32 = vpack.c.bf16 %v447_v39, %v446_v34  ;;  %v504_v63 = vpack.c.bf16 %v449_v44, %v448_v40  ;;  %v1626_v33 = vpack.c.bf16 %v451_v58, %v450_v54  ;;  %v276_v34 = vld [vmem:[%s1379_s30 + $0x190] sm:$0xff]  ;;  %v277_v44 = vld [vmem:[%s1379_s30 + $0x198] sm:$0xff] }
  0x38   : > { %v1629_v0 = vadd.f32 %v1396_v9, %v344_v47  ;;  %v454_v16 = vmax.f32 %v1543_v5, 0.0  ;;  %v1634_v19 = vadd.f32 %v1396_v9, %v321_v27  ;;  %v346_v20 = vmul.f32 %v1389_v6, %v275_v60  ;;  %v288_v37 = vld [vmem:[%s1379_s30 + $0x1f0] sm:$0xff] }
  0x39   : > { %v1638_v23 = vadd.f32 %v1396_v9, %v345_v53  ;;  %v1642_v39 = vpack.c.bf16 %v453_v50, %v452_v48  ;;  %v455_v40 = vmax.f32 %v1603_v52, 0.0  ;;  %v1646_v41 = vadd.f32 %v1396_v9, %v322_v55  ;;  %1259 = vmatmul.mubr.bf16.gmra.mrb[4].mxu1 %v515_v56  ;;  %v289_v48 = vld [vmem:[%s1379_s30 + $0x1f8] sm:$0xff] }
  0x3a   : > { %v351_v54 = vmul.f32 %v1389_v6, %v280_v62  ;;  %1262 = vmatprep.mubr.bf16.mxu1 %v516_v45  ;;  %v517_v58 = vpack.c.bf16 %v475_v59, %v474_v57  ;;  %v518_v2 = vpack.c.bf16 %v477_v61, %v476_v49  ;;  %v478_v3 = vmax.f32 %v1611_v51, 0.0 }
  0x3b   : > { %v352_v27 = vmul.f32 %v1389_v6, %v281_v1  ;;  %v479_v10 = vmax.f32 %v1629_v0, 0.0  ;;  %v347_v12 = vmul.f32 %v1389_v6, %v276_v34  ;;  %v353_v11 = vmul.f32 %v1389_v6, %v282_v35 }
  0x3c   : > { %v422_v28 = vadd.f32 %v1396_v9, %v351_v54  ;;  %v417_v17 = vadd.f32 %v1396_v9, %v346_v20  ;;  %v480_v18 = vmax.f32 %v1638_v23, 0.0  ;;  %v348_v22 = vmul.f32 %v1389_v6, %v277_v44 }
  0x3d   : > { %v423_v24 = vadd.f32 %v1396_v9, %v352_v27  ;;  %v349_v29 = vmul.f32 %v1389_v6, %v278_v4  ;;  %v354_v31 = vmul.f32 %v1389_v6, %v283_v8  ;;  %v424_v36 = vadd.f32 %v1396_v9, %v353_v11 }
  0x3e   : > { %1235 = vmatmul.mubr.bf16.gmra.mrb[12].mxu0 %v503_v32  ;;  %v486_v30 = vmax.f32 %v422_v28, 0.0  ;;  %v350_v42 = vmul.f32 %v1389_v6, %v279_v7  ;;  %v355_v46 = vmul.f32 %v1389_v6, %v284_v14  ;;  %v356_v47 = vmul.f32 %v1389_v6, %v285_v15 }
  0x3f   : > { %1238 = vmatprep.mubr.bf16.mxu0 %v504_v63  ;;  %v487_v43 = vmax.f32 %v423_v24, 0.0  ;;  %v425_v50 = vadd.f32 %v1396_v9, %v354_v31  ;;  %v488_v53 = vmax.f32 %v424_v36, 0.0  ;;  %v357_v55 = vmul.f32 %v1389_v6, %v286_v25 }
  0x40   : > { %v358_v56 = vmul.f32 %v1389_v6, %v287_v26  ;;  %v426_v59 = vadd.f32 %v1396_v9, %v355_v46  ;;  %v427_v60 = vadd.f32 %v1396_v9, %v356_v47  ;;  %v359_v45 = vmul.f32 %v1389_v6, %v288_v37 }
  0x41   : > { %v523_v57 = vpack.c.bf16 %v487_v43, %v486_v30  ;;  %1263 = vmatmul.mubr.bf16.gmra.mrb[8].mxu1 %v517_v58  ;;  %v489_v49 = vmax.f32 %v425_v50, 0.0  ;;  %v428_v61 = vadd.f32 %v1396_v9, %v357_v55  ;;  %v360_v62 = vmul.f32 %v1389_v6, %v289_v48 }
  0x42   : > { %v429_v51 = vadd.f32 %v1396_v9, %v358_v56  ;;  %1266 = vmatprep.mubr.bf16.mxu1 %v518_v2  ;;  %v481_v32 = vmax.f32 %v417_v17, 0.0  ;;  %v490_v63 = vmax.f32 %v426_v59, 0.0  ;;  %v491_v0 = vmax.f32 %v427_v60, 0.0 }
  0x43   : > { %v430_v1 = vadd.f32 %v1396_v9, %v359_v45  ;;  %v524_v20 = vpack.c.bf16 %v489_v49, %v488_v53  ;;  %v492_v23 = vmax.f32 %v428_v61, 0.0  ;;  %v431_v35 = vadd.f32 %v1396_v9, %v360_v62 }
  0x44   : > { %v493_v34 = vmax.f32 %v429_v51, 0.0  ;;  %v456_v44 = vmax.f32 %v1634_v19, 0.0  ;;  %v519_v54 = vpack.c.bf16 %v479_v10, %v478_v3  ;;  %v525_v58 = vpack.c.bf16 %v491_v0, %v490_v63 }
  0x45   : > { %v494_v4 = vmax.f32 %v430_v1, 0.0  ;;  %v418_v6 = vadd.f32 %v1396_v9, %v347_v12  ;;  %v419_v2 = vadd.f32 %v1396_v9, %v348_v22  ;;  %v495_v8 = vmax.f32 %v431_v35, 0.0 }
  0x46   : > { %1239 = vmatmul.mubr.bf16.gmra.mrb[16].mxu0 %v1626_v33  ;;  %v526_v27 = vpack.c.bf16 %v493_v34, %v492_v23  ;;  %v457_v7 = vmax.f32 %v1646_v41, 0.0  ;;  %v520_v28 = vpack.c.bf16 %v481_v32, %v480_v18  ;;  %v420_v11 = vadd.f32 %v1396_v9, %v349_v29 }
  0x47   : > { %1242 = vmatprep.mubr.bf16.mxu0 %v1642_v39  ;;  %v421_v19 = vadd.f32 %v1396_v9, %v350_v42  ;;  %v527_v3 = vpack.c.bf16 %v495_v8, %v494_v4  ;;  %v507_v33 = vpack.c.bf16 %v455_v40, %v454_v16  ;;  %v482_v10 = vmax.f32 %v418_v6, 0.0  ;;  %v1704_v9 = vld [vmem:[%s1878_s4] ss:$0 sm:$0xff] }
  0x48   : > { %v483_v12 = vmax.f32 %v419_v2, 0.0  ;;  %v508_v14 = vpack.c.bf16 %v457_v7, %v456_v44  ;;  %v484_v15 = vmax.f32 %v420_v11, 0.0 }
  0x49   : > { %1267 = vmatmul.mubr.bf16.gmra.mrb[12].mxu1 %v519_v54  ;;  %v485_v39 = vmax.f32 %v421_v19, 0.0 }
  0x4a   : > { %1270 = vmatprep.mubr.bf16.mxu1 %v520_v28  ;;  %v521_v41 = vpack.c.bf16 %v483_v12, %v482_v10 }
  0x4b   : > { %v522_v17 = vpack.c.bf16 %v485_v39, %v484_v15 }
  0x4e   : > { %1243 = vmatmul.mubr.bf16.gmra.mrb[20].mxu0 %v507_v33 }
  0x4f   : > { %1246 = vmatprep.mubr.bf16.mxu0 %v508_v14 }
  0x51   : > { %1271 = vmatmul.mubr.bf16.gmra.mrb[16].mxu1 %v521_v41 }
  0x52   : > { %1274 = vmatprep.mubr.bf16.mxu1 %v522_v17 }
  0x56   : > { %1247 = vmatmul.mubr.bf16.gmra.mrb[24].mxu0 %v1548_v13 }
  0x57   : > { %1250 = vmatprep.mubr.bf16.mxu0 %v1553_v21 }
  0x59   : > { %1275 = vmatmul.mubr.bf16.gmra.mrb[20].mxu1 %v523_v57 }
  0x5a   : > { %1278 = vmatprep.mubr.bf16.mxu1 %v524_v20 }
  0x5e   : > { %1251 = vmatmul.mubr.bf16.gmra.mrb[28].mxu0 %v1562_v38 }
  0x61   : > { %1279 = vmatmul.mubr.bf16.gmra.mrb[24].mxu1 %v525_v58 }
  0x62   : > { %1282 = vmatprep.mubr.bf16.mxu1 %v526_v27 }
  0x69   : > { %1283 = vmatmul.mubr.bf16.gmra.mrb[28].mxu1 %v527_v3 }
  0xf9   : > { %v1224_v5 = vpop.f32.mrb[0].mxu0 }
  0xfa   : > { %v633_v52 = vpop.f32.mrb[1].mxu0  ;;  %v642_v21 = vadd.f32 %v1224_v5, %v1704_v9 }
  0xfb   : > { %v634_v16 = vadd.f32 %v1704_v9, %v633_v52  ;;  %v1225_v40 = vpop.f32.mrb[2].mxu0 }
  0xfc   : > { %v636_v13 = vpop.f32.mrb[3].mxu0  ;;  %v645_v38 = vadd.f32 %v1225_v40, %v1704_v9  ;;  %v960_v26 = vmul.f32 %v642_v21, %v642_v21 }
  0xfd   : > { %v637_v18 = vadd.f32 %v1704_v9, %v636_v13  ;;  %v958_v22 = vmul.f32 %v634_v16, %v634_v16 }
  0xfe   : > { %v961_v37 = vmul.f32 %v645_v38, %v645_v38 }
  0xff   : > { %v888_v24 = vadd.f32 %v637_v18, %v634_v16  ;;  %v959_v25 = vmul.f32 %v637_v18, %v637_v18 }
 0x101   : > { %v889_v29 = vadd.f32 %v888_v24, %v642_v21  ;;  %v1022_v30 = vadd.f32 %v959_v25, %v958_v22  ;;  %v1228_v31 = vpop.f32.mrb[4].mxu0 }
 0x102   : > { %v649_v36 = vpop.f32.mrb[5].mxu0  ;;  %v658_v48 = vadd.f32 %v1228_v31, %v1704_v9 }
 0x103   : > { %v1023_v42 = vadd.f32 %v1022_v30, %v960_v26  ;;  %v650_v43 = vadd.f32 %v1704_v9, %v649_v36  ;;  %v890_v46 = vadd.f32 %v889_v29, %v645_v38  ;;  %v1229_v47 = vpop.f32.mrb[6].mxu0 }
 0x104   : > { %v652_v50 = vpop.f32.mrb[7].mxu0  ;;  %v1713_v59 = vpop.f32.mrb[0].mxu1  ;;  %v661_v49 = vadd.f32 %v1229_v47, %v1704_v9  ;;  %v964_v63 = vmul.f32 %v658_v48, %v658_v48 }
 0x105   : > { %v891_v53 = vadd.f32 %v890_v46, %v650_v43  ;;  %v962_v55 = vmul.f32 %v650_v43, %v650_v43  ;;  %v1024_v56 = vadd.f32 %v1023_v42, %v961_v37  ;;  %v653_v57 = vadd.f32 %v1704_v9, %v652_v50  ;;  %v1715_v60 = vpop.f32.mrb[1].mxu1 }
 0x106   : > { %v1718_v62 = vpop.f32.mrb[2].mxu1  ;;  %v965_v34 = vmul.f32 %v661_v49, %v661_v49 }
 0x107   : > { %v1025_v45 = vadd.f32 %v1024_v56, %v962_v55  ;;  %v892_v61 = vadd.f32 %v891_v53, %v653_v57  ;;  %v963_v51 = vmul.f32 %v653_v57, %v653_v57  ;;  %v1720_v32 = vpop.f32.mrb[3].mxu1 }
 0x109   : > { %v893_v0 = vadd.f32 %v892_v61, %v658_v48  ;;  %v1026_v1 = vadd.f32 %v1025_v45, %v963_v51  ;;  %v1232_v20 = vpop.f32.mrb[8].mxu0 }
 0x10a   : > { %v665_v23 = vpop.f32.mrb[9].mxu0  ;;  %v674_v4 = vadd.f32 %v1232_v20, %v1704_v9 }
 0x10b   : > { %v1027_v35 = vadd.f32 %v1026_v1, %v964_v63  ;;  %v666_v44 = vadd.f32 %v1704_v9, %v665_v23  ;;  %v894_v54 = vadd.f32 %v893_v0, %v661_v49  ;;  %v1233_v58 = vpop.f32.mrb[10].mxu0 }
 0x10c   : > { %v668_v6 = vpop.f32.mrb[11].mxu0  ;;  %v1725_v28 = vpop.f32.mrb[4].mxu1  ;;  %v677_v3 = vadd.f32 %v1233_v58, %v1704_v9  ;;  %v968_v15 = vmul.f32 %v674_v4, %v674_v4 }
 0x10d   : > { %v895_v2 = vadd.f32 %v894_v54, %v666_v44  ;;  %v966_v27 = vmul.f32 %v666_v44, %v666_v44  ;;  %v1028_v8 = vadd.f32 %v1027_v35, %v965_v34  ;;  %v669_v7 = vadd.f32 %v1704_v9, %v668_v6  ;;  %v1727_v11 = vpop.f32.mrb[5].mxu1 }
 0x10e   : > { %v1730_v12 = vpop.f32.mrb[6].mxu1  ;;  %v969_v52 = vmul.f32 %v677_v3, %v677_v3 }
 0x10f   : > { %v1029_v19 = vadd.f32 %v1028_v8, %v966_v27  ;;  %v896_v33 = vadd.f32 %v895_v2, %v669_v7  ;;  %v967_v10 = vmul.f32 %v669_v7, %v669_v7  ;;  %v1732_v14 = vpop.f32.mrb[7].mxu1 }
 0x111   : > { %v897_v39 = vadd.f32 %v896_v33, %v674_v4  ;;  %v1030_v41 = vadd.f32 %v1029_v19, %v967_v10  ;;  %v1236_v17 = vpop.f32.mrb[12].mxu0 }
 0x112   : > { %v681_v5 = vpop.f32.mrb[13].mxu0  ;;  %v690_v18 = vadd.f32 %v1236_v17, %v1704_v9 }
 0x113   : > { %v1031_v16 = vadd.f32 %v1030_v41, %v968_v15  ;;  %v682_v40 = vadd.f32 %v1704_v9, %v681_v5  ;;  %v898_v13 = vadd.f32 %v897_v39, %v677_v3  ;;  %v1237_v21 = vpop.f32.mrb[14].mxu0 }
 0x114   : > { %v684_v22 = vpop.f32.mrb[15].mxu0  ;;  %v1737_v29 = vpop.f32.mrb[8].mxu1  ;;  %v693_v36 = vadd.f32 %v1237_v21, %v1704_v9  ;;  %v972_v47 = vmul.f32 %v690_v18, %v690_v18 }
 0x115   : > { %v899_v38 = vadd.f32 %v898_v13, %v682_v40  ;;  %v970_v24 = vmul.f32 %v682_v40, %v682_v40  ;;  %v1032_v25 = vadd.f32 %v1031_v16, %v969_v52  ;;  %v685_v26 = vadd.f32 %v1704_v9, %v684_v22  ;;  %v1739_v30 = vpop.f32.mrb[9].mxu1 }
 0x116   : > { %v1742_v43 = vpop.f32.mrb[10].mxu1  ;;  %v973_v56 = vmul.f32 %v693_v36, %v693_v36 }
 0x117   : > { %v1033_v31 = vadd.f32 %v1032_v25, %v970_v24  ;;  %v900_v37 = vadd.f32 %v899_v38, %v685_v26  ;;  %v971_v42 = vmul.f32 %v685_v26, %v685_v26  ;;  %v1744_v46 = vpop.f32.mrb[11].mxu1 }
 0x119   : > { %v901_v48 = vadd.f32 %v900_v37, %v690_v18  ;;  %v1034_v50 = vadd.f32 %v1033_v31, %v971_v42  ;;  %v1240_v53 = vpop.f32.mrb[16].mxu0 }
 0x11a   : > { %v697_v55 = vpop.f32.mrb[17].mxu0  ;;  %v706_v51 = vadd.f32 %v1240_v53, %v1704_v9 }
 0x11b   : > { %v1035_v57 = vadd.f32 %v1034_v50, %v972_v47  ;;  %v698_v45 = vadd.f32 %v1704_v9, %v697_v55  ;;  %v902_v49 = vadd.f32 %v901_v48, %v693_v36  ;;  %v1241_v61 = vpop.f32.mrb[18].mxu0 }
 0x11c   : > { %v700_v63 = vpop.f32.mrb[19].mxu0  ;;  %v1749_v34 = vpop.f32.mrb[12].mxu1  ;;  %v709_v54 = vadd.f32 %v1241_v61, %v1704_v9  ;;  %v976_v27 = vmul.f32 %v706_v51, %v706_v51 }
 0x11d   : > { %v903_v0 = vadd.f32 %v902_v49, %v698_v45  ;;  %v974_v1 = vmul.f32 %v698_v45, %v698_v45  ;;  %v1036_v20 = vadd.f32 %v1035_v57, %v973_v56  ;;  %v701_v23 = vadd.f32 %v1704_v9, %v700_v63  ;;  %v1751_v35 = vpop.f32.mrb[13].mxu1 }
 0x11e   : > { %v1754_v6 = vpop.f32.mrb[14].mxu1  ;;  %v977_v33 = vmul.f32 %v709_v54, %v709_v54 }
 0x11f   : > { %v1037_v44 = vadd.f32 %v1036_v20, %v974_v1  ;;  %v904_v58 = vadd.f32 %v903_v0, %v701_v23  ;;  %v975_v4 = vmul.f32 %v701_v23, %v701_v23  ;;  %v1756_v2 = vpop.f32.mrb[15].mxu1 }
 0x121   : > { %v905_v8 = vadd.f32 %v904_v58, %v706_v51  ;;  %v1038_v7 = vadd.f32 %v1037_v44, %v975_v4  ;;  %v1244_v19 = vpop.f32.mrb[20].mxu0 }
 0x122   : > { %v713_v3 = vpop.f32.mrb[21].mxu0  ;;  %v722_v17 = vadd.f32 %v1244_v19, %v1704_v9 }
 0x123   : > { %v1039_v10 = vadd.f32 %v1038_v7, %v976_v27  ;;  %v714_v15 = vadd.f32 %v1704_v9, %v713_v3  ;;  %v906_v39 = vadd.f32 %v905_v8, %v709_v54  ;;  %v1245_v41 = vpop.f32.mrb[22].mxu0 }
 0x124   : > { %v716_v5 = vpop.f32.mrb[23].mxu0  ;;  %v1761_v21 = vpop.f32.mrb[16].mxu1  ;;  %v725_v38 = vadd.f32 %v1245_v41, %v1704_v9  ;;  %v980_v36 = vmul.f32 %v722_v17, %v722_v17 }
 0x125   : > { %v907_v52 = vadd.f32 %v906_v39, %v714_v15  ;;  %v978_v16 = vmul.f32 %v714_v15, %v714_v15  ;;  %v1040_v40 = vadd.f32 %v1039_v10, %v977_v33  ;;  %v717_v13 = vadd.f32 %v1704_v9, %v716_v5  ;;  %v1763_v18 = vpop.f32.mrb[17].mxu1 }
 0x126   : > { %v1766_v26 = vpop.f32.mrb[18].mxu1  ;;  %v981_v50 = vmul.f32 %v725_v38, %v725_v38 }
 0x127   : > { %v1041_v22 = vadd.f32 %v1040_v40, %v978_v16  ;;  %v908_v24 = vadd.f32 %v907_v52, %v717_v13  ;;  %v979_v25 = vmul.f32 %v717_v13, %v717_v13  ;;  %v1768_v31 = vpop.f32.mrb[19].mxu1 }
 0x129   : > { %v909_v37 = vadd.f32 %v908_v24, %v722_v17  ;;  %v1042_v42 = vadd.f32 %v1041_v22, %v979_v25  ;;  %v1248_v47 = vpop.f32.mrb[24].mxu0  ;;  %v762_v24 = vadd.f32 %v1704_v9, %v1715_v60  ;;  %v765_v60 = vadd.f32 %v1704_v9, %v1720_v32 }
 0x12a   : > { %v729_v48 = vpop.f32.mrb[25].mxu0  ;;  %v738_v45 = vadd.f32 %v1248_v47, %v1704_v9 }
 0x12b   : > { %v1043_v53 = vadd.f32 %v1042_v42, %v980_v36  ;;  %v730_v55 = vadd.f32 %v1704_v9, %v729_v48  ;;  %v910_v56 = vadd.f32 %v909_v37, %v725_v38  ;;  %v1249_v57 = vpop.f32.mrb[26].mxu0 }
 0x12c   : > { %v732_v49 = vpop.f32.mrb[27].mxu0  ;;  %v1773_v1 = vpop.f32.mrb[20].mxu1  ;;  %v741_v44 = vadd.f32 %v1249_v57, %v1704_v9  ;;  %v984_v8 = vmul.f32 %v738_v45, %v738_v45  ;;  %v990_v57 = vmul.f32 %v762_v24, %v762_v24 }
 0x12d   : > { %v911_v61 = vadd.f32 %v910_v56, %v730_v55  ;;  %v982_v51 = vmul.f32 %v730_v55, %v730_v55  ;;  %v1044_v63 = vadd.f32 %v1043_v53, %v981_v50  ;;  %v733_v0 = vadd.f32 %v1704_v9, %v732_v49  ;;  %v1775_v20 = vpop.f32.mrb[21].mxu1 }
 0x12e   : > { %v1778_v4 = vpop.f32.mrb[22].mxu1  ;;  %v985_v10 = vmul.f32 %v741_v44, %v741_v44 }
 0x12f   : > { %v1045_v23 = vadd.f32 %v1044_v63, %v982_v51  ;;  %v912_v54 = vadd.f32 %v911_v61, %v733_v0  ;;  %v983_v58 = vmul.f32 %v733_v0, %v733_v0  ;;  %v1780_v27 = vpop.f32.mrb[23].mxu1  ;;  %v770_v51 = vadd.f32 %v1713_v59, %v1704_v9 }
 0x131   : > { %v913_v7 = vadd.f32 %v912_v54, %v738_v45  ;;  %v1046_v19 = vadd.f32 %v1045_v23, %v983_v58  ;;  %v1252_v3 = vpop.f32.mrb[28].mxu0  ;;  %v992_v59 = vmul.f32 %v770_v51, %v770_v51 }
 0x132   : > { %v745_v33 = vpop.f32.mrb[29].mxu0  ;;  %v754_v5 = vadd.f32 %v1252_v3, %v1704_v9 }
 0x133   : > { %v1047_v15 = vadd.f32 %v1046_v19, %v984_v8  ;;  %v746_v39 = vadd.f32 %v1704_v9, %v745_v33  ;;  %v914_v41 = vadd.f32 %v913_v7, %v741_v44  ;;  %v1253_v17 = vpop.f32.mrb[30].mxu0  ;;  %v773_v44 = vadd.f32 %v1718_v62, %v1704_v9 }
 0x134   : > { %v748_v52 = vpop.f32.mrb[31].mxu0  ;;  %v1785_v38 = vpop.f32.mrb[24].mxu1  ;;  %v757_v37 = vadd.f32 %v1253_v17, %v1704_v9  ;;  %v988_v53 = vmul.f32 %v754_v5, %v754_v5  ;;  %v991_v7 = vmul.f32 %v765_v60, %v765_v60  ;;  %v778_v19 = vadd.f32 %v1704_v9, %v1727_v11 }
 0x135   : > { %v915_v16 = vadd.f32 %v914_v41, %v746_v39  ;;  %v986_v40 = vmul.f32 %v746_v39, %v746_v39  ;;  %v1048_v13 = vadd.f32 %v1047_v15, %v985_v10  ;;  %v749_v22 = vadd.f32 %v1704_v9, %v748_v52  ;;  %v1789_v25 = vpop.f32.mrb[25].mxu1 }
 0x136   : > { %v1792_v48 = vpop.f32.mrb[26].mxu1  ;;  %v989_v45 = vmul.f32 %v757_v37, %v757_v37  ;;  %v993_v15 = vmul.f32 %v773_v44, %v773_v44  ;;  %v994_v17 = vmul.f32 %v778_v19, %v778_v19  ;;  %v781_v62 = vadd.f32 %v1704_v9, %v1732_v14 }
 0x137   : > { %v1049_v36 = vadd.f32 %v1048_v13, %v986_v40  ;;  %v916_v42 = vadd.f32 %v915_v16, %v749_v22  ;;  %v987_v47 = vmul.f32 %v749_v22, %v749_v22  ;;  %v1794_v50 = vpop.f32.mrb[27].mxu1  ;;  %v789_v11 = vadd.f32 %v1730_v12, %v1704_v9 }
 0x138   : > { %v995_v22 = vmul.f32 %v781_v62, %v781_v62 }
 0x139   : > { %v917_v55 = vadd.f32 %v916_v42, %v754_v5  ;;  %v1050_v56 = vadd.f32 %v1049_v36, %v987_v47  ;;  %v786_v5 = vadd.f32 %v1725_v28, %v1704_v9  ;;  %v997_v47 = vmul.f32 %v789_v11, %v789_v11 }
 0x13a   : > { %v797_v28 = vadd.f32 %v1704_v9, %v1744_v46 }
 0x13b   : > { %v1051_v49 = vadd.f32 %v1050_v56, %v988_v53  ;;  %v918_v61 = vadd.f32 %v917_v55, %v757_v37  ;;  %v996_v36 = vmul.f32 %v786_v5, %v786_v5  ;;  %v802_v56 = vadd.f32 %v1737_v29, %v1704_v9 }
 0x13c   : > { %v1800_v23 = vpop.f32.mrb[28].mxu1  ;;  %v813_v29 = vadd.f32 %v1704_v9, %v1756_v2 }
 0x13d   : > { %v919_v63 = vadd.f32 %v918_v61, %v762_v24  ;;  %v1052_v0 = vadd.f32 %v1051_v49, %v989_v45  ;;  %v1804_v54 = vpop.f32.mrb[29].mxu1  ;;  %v794_v24 = vadd.f32 %v1704_v9, %v1739_v30  ;;  %v805_v45 = vadd.f32 %v1742_v43, %v1704_v9 }
 0x13e   : > { %v1808_v3 = vpop.f32.mrb[30].mxu1  ;;  %v999_v61 = vmul.f32 %v797_v28, %v797_v28 }
 0x13f   : > { %v1053_v58 = vadd.f32 %v1052_v0, %v990_v57  ;;  %v920_v8 = vadd.f32 %v919_v63, %v765_v60  ;;  %v1810_v32 = vpop.f32.mrb[31].mxu1  ;;  %v998_v55 = vmul.f32 %v794_v24, %v794_v24  ;;  %v810_v60 = vadd.f32 %v1704_v9, %v1751_v35 }
 0x141   : > { %v921_v33 = vadd.f32 %v920_v8, %v770_v51  ;;  %v1054_v10 = vadd.f32 %v1053_v58, %v991_v7  ;;  %v1000_v51 = vmul.f32 %v802_v56, %v802_v56  ;;  %v1002_v8 = vmul.f32 %v810_v60, %v810_v60 }
 0x142   : > { %v818_v7 = vadd.f32 %v1749_v34, %v1704_v9  ;;  %v829_v34 = vadd.f32 %v1704_v9, %v1768_v31 }
 0x143   : > { %v1055_v39 = vadd.f32 %v1054_v10, %v992_v59  ;;  %v922_v41 = vadd.f32 %v921_v33, %v773_v44  ;;  %v1001_v44 = vmul.f32 %v805_v45, %v805_v45  ;;  %v821_v59 = vadd.f32 %v1754_v6, %v1704_v9 }
 0x144   : > { %v1003_v10 = vmul.f32 %v813_v29, %v813_v29 }
 0x145   : > { %v923_v52 = vadd.f32 %v922_v41, %v778_v19  ;;  %v1056_v16 = vadd.f32 %v1055_v39, %v993_v15  ;;  %v826_v15 = vadd.f32 %v1704_v9, %v1763_v18  ;;  %v1004_v39 = vmul.f32 %v818_v7, %v818_v7 }
 0x147   : > { %v1057_v40 = vadd.f32 %v1056_v16, %v994_v17  ;;  %v924_v13 = vadd.f32 %v923_v52, %v781_v62  ;;  %v1005_v62 = vmul.f32 %v821_v59, %v821_v59  ;;  %v1006_v52 = vmul.f32 %v826_v15, %v826_v15 }
 0x148   : > { %v834_v16 = vadd.f32 %v1761_v21, %v1704_v9  ;;  %v845_v21 = vadd.f32 %v1704_v9, %v1780_v27 }
 0x149   : > { %v925_v37 = vadd.f32 %v924_v13, %v786_v5  ;;  %v1058_v42 = vadd.f32 %v1057_v40, %v995_v22  ;;  %v837_v40 = vadd.f32 %v1766_v26, %v1704_v9  ;;  %v1007_v22 = vmul.f32 %v829_v34, %v829_v34 }
 0x14b   : > { %v1059_v53 = vadd.f32 %v1058_v42, %v996_v36  ;;  %v926_v14 = vadd.f32 %v925_v37, %v789_v11  ;;  %v1008_v36 = vmul.f32 %v834_v16, %v834_v16 }
 0x14d   : > { %v927_v12 = vadd.f32 %v926_v14, %v794_v24  ;;  %v1060_v57 = vadd.f32 %v1059_v53, %v997_v47  ;;  %v842_v24 = vadd.f32 %v1704_v9, %v1775_v20  ;;  %v1009_v47 = vmul.f32 %v837_v40, %v837_v40 }
 0x14f   : > { %v1061_v49 = vadd.f32 %v1060_v57, %v998_v55  ;;  %v928_v30 = vadd.f32 %v927_v12, %v797_v28  ;;  %v1010_v14 = vmul.f32 %v842_v24, %v842_v24  ;;  %v850_v55 = vadd.f32 %v1773_v1, %v1704_v9 }
 0x150   : > { %v1011_v57 = vmul.f32 %v845_v21, %v845_v21  ;;  %v861_v1 = vadd.f32 %v1704_v9, %v1794_v50 }
 0x151   : > { %v929_v63 = vadd.f32 %v928_v30, %v802_v56  ;;  %v1062_v0 = vadd.f32 %v1061_v49, %v999_v61  ;;  %v853_v56 = vadd.f32 %v1778_v4, %v1704_v9  ;;  %v1012_v49 = vmul.f32 %v850_v55, %v850_v55 }
 0x153   : > { %v1063_v58 = vadd.f32 %v1062_v0, %v1000_v51  ;;  %v930_v46 = vadd.f32 %v929_v63, %v805_v45  ;;  %v858_v45 = vadd.f32 %v1704_v9, %v1789_v25  ;;  %v866_v0 = vadd.f32 %v1785_v38, %v1704_v9 }
 0x154   : > { %v877_v38 = vadd.f32 %v1704_v9, %v1810_v32 }
 0x155   : > { %v931_v43 = vadd.f32 %v930_v46, %v810_v60  ;;  %v1064_v19 = vadd.f32 %v1063_v58, %v1001_v44  ;;  %v1013_v60 = vmul.f32 %v853_v56, %v853_v56  ;;  %v1014_v63 = vmul.f32 %v858_v45, %v858_v45 }
 0x156   : > { %v869_v58 = vadd.f32 %v1792_v48, %v1704_v9  ;;  %v882_v48 = vadd.f32 %v1800_v23, %v1704_v9 }
 0x157   : > { %v1065_v33 = vadd.f32 %v1064_v19, %v1002_v8  ;;  %v932_v35 = vadd.f32 %v931_v43, %v813_v29  ;;  %v1015_v8 = vmul.f32 %v861_v1, %v861_v1  ;;  %v874_v29 = vadd.f32 %v1704_v9, %v1804_v54 }
 0x158   : > { %v885_v54 = vadd.f32 %v1808_v3, %v1704_v9 }
 0x159   : > { %v933_v41 = vadd.f32 %v932_v35, %v818_v7  ;;  %v1066_v17 = vadd.f32 %v1065_v33, %v1003_v10  ;;  %v1016_v7 = vmul.f32 %v866_v0, %v866_v0  ;;  %v1018_v35 = vmul.f32 %v874_v29, %v874_v29 }
 0x15b   : > { %v1067_v5 = vadd.f32 %v1066_v17, %v1004_v39  ;;  %v934_v2 = vadd.f32 %v933_v41, %v821_v59  ;;  %v1017_v59 = vmul.f32 %v869_v58, %v869_v58  ;;  %v1019_v17 = vmul.f32 %v877_v38, %v877_v38 }
 0x15d   : > { %v935_v6 = vadd.f32 %v934_v2, %v826_v15  ;;  %v1068_v11 = vadd.f32 %v1067_v5, %v1005_v62  ;;  %v1020_v62 = vmul.f32 %v882_v48, %v882_v48 }
 0x15f   : > { %v1069_v13 = vadd.f32 %v1068_v11, %v1006_v52  ;;  %v936_v18 = vadd.f32 %v935_v6, %v829_v34  ;;  %v1021_v52 = vmul.f32 %v885_v54, %v885_v54 }
 0x161   : > { %v937_v37 = vadd.f32 %v936_v18, %v834_v16  ;;  %v1070_v42 = vadd.f32 %v1069_v13, %v1007_v22 }
 0x163   : > { %v1071_v53 = vadd.f32 %v1070_v42, %v1008_v36  ;;  %v938_v31 = vadd.f32 %v937_v37, %v837_v40 }
 0x165   : > { %v939_v26 = vadd.f32 %v938_v31, %v842_v24  ;;  %v1072_v28 = vadd.f32 %v1071_v53, %v1009_v47 }
 0x167   : > { %v1073_v12 = vadd.f32 %v1072_v28, %v1010_v14  ;;  %v940_v20 = vadd.f32 %v939_v26, %v845_v21 }
 0x169   : > { %v941_v30 = vadd.f32 %v940_v20, %v850_v55  ;;  %v1074_v61 = vadd.f32 %v1073_v12, %v1011_v57 }
 0x16b   : > { %v1075_v51 = vadd.f32 %v1074_v61, %v1012_v49  ;;  %v942_v27 = vadd.f32 %v941_v30, %v853_v56 }
 0x16d   : > { %v943_v4 = vadd.f32 %v942_v27, %v858_v45  ;;  %v1076_v44 = vadd.f32 %v1075_v51, %v1013_v60 }
 0x16f   : > { %v1077_v46 = vadd.f32 %v1076_v44, %v1014_v63  ;;  %v944_v25 = vadd.f32 %v943_v4, %v861_v1 }
 0x171   : > { %v945_v43 = vadd.f32 %v944_v25, %v866_v0  ;;  %v1078_v19 = vadd.f32 %v1077_v46, %v1015_v8 }
 0x173   : > { %v1079_v50 = vadd.f32 %v1078_v19, %v1016_v7  ;;  %v946_v33 = vadd.f32 %v945_v43, %v869_v58 }
 0x175   : > { %v947_v10 = vadd.f32 %v946_v33, %v874_v29  ;;  %v1080_v15 = vadd.f32 %v1079_v50, %v1017_v59 }
 0x177   : > { %v1081_v39 = vadd.f32 %v1080_v15, %v1018_v35  ;;  %v948_v41 = vadd.f32 %v947_v10, %v877_v38 }
 0x179   : > { %v949_v5 = vadd.f32 %v948_v41, %v882_v48  ;;  %v1082_v2 = vadd.f32 %v1081_v39, %v1019_v17 }
 0x17b   : > { %v950_v34 = vadd.f32 %v949_v5, %v885_v54  ;;  %v1083_v16 = vadd.f32 %v1082_v2, %v1020_v62 }
 0x17d   : > { %v951_v32 = vrot.slane %v950_v34, 4  ;;  %v1084_v6 = vadd.f32 %v1083_v16, %v1021_v52 }
 0x17f   : > { %v952_v23 = vadd.f32 %v951_v32, %v950_v34  ;;  %v1085_v11 = vrot.slane %v1084_v6, 4 }
 0x181   : > { %v953_v40 = vrot.slane %v952_v23, 2  ;;  %v1086_v13 = vadd.f32 %v1085_v11, %v1084_v6 }
 0x183   : > { %v954_v18 = vadd.f32 %v953_v40, %v952_v23  ;;  %v1087_v22 = vrot.slane %v1086_v13, 2 }
 0x185   : > { %v955_v9 = vrot.slane %v954_v18, 1  ;;  %v1088_v3 = vadd.f32 %v1087_v22, %v1086_v13 }
 0x187   : > { %v956_v24 = vadd.f32 %v955_v9, %v954_v18  ;;  %v1089_v36 = vrot.slane %v1088_v3, 1 }
 0x189   : > { %957 = vst [vmem:[%s224_s27] sm:$0x1] %v956_v24  ;;  %v1090_v37 = vadd.f32 %v1089_v36, %v1088_v3 }
 0x18b   : > { %1091 = vst [vmem:[%s224_s27 + $0x1] sm:$0x1] %v1090_v37 }
 0x18c PF: > { %s15_s18 = sadd.s32 1, %s1324_s18  }
 0x18d   : > { %p12_p5 = scmp.ge.s32.totalorder %s15_s18, 6  }
 0x18f   :  { %14 = sbr.rel (!%p12_p5) target bundleno = 1 (0x1), region = 70 }

// kernel: resblock_forward.5
= control target key start
LH: loop header
LB: loop body
LE: loop exit
PB: predicated region body
PF: predicated region fallthrough
CT: control target
= control target key end

     0   :  { %13 = vsyncpa [#allocation3], 0  ;;  %s2467_s0 = inlined_call_operand.vmem [shape: f32[2048,128], index: 0, kind: input, shape index: {}]   ;;  %s2468_s1 = inlined_call_operand.vmem [shape: f32[2048,128], index: 1, kind: input, shape index: {}]   ;;  %s2469_s2 = inlined_call_operand.vmem [shape: f32[1,128], index: 2, kind: input, shape index: {}]   ;;  %s2470_s3 = inlined_call_operand.vmem [shape: f32[1,128], index: 3, kind: input, shape index: {}]   ;;  %s2471_s4 = inlined_call_operand.vmem [shape: bf16[128,128], index: 4, kind: input, shape index: {}]   ;;  %s2472_s5 = inlined_call_operand.vmem [shape: f32[1,128], index: 5, kind: input, shape index: {}]   ;;  %s2473_s6 = inlined_call_operand.vmem [shape: f32[1,128], index: 6, kind: input, shape index: {}]   ;;  %s2474_s7 = inlined_call_operand.vmem [shape: f32[1,128], index: 7, kind: input, shape index: {}]   ;;  %s2475_s8 = inlined_call_operand.hbm [shape: f32[2048,128], index: 8, kind: output, shape index: {}]  }
   0x1   :  { %15 = vsyncpa [#allocation3 + $0x1], 0  ;;  %s1739_s27 = smov 0   ;;  %s1741_s28 = smov 0  }
   0x2   :  { %s1743_s29 = smov 0   ;;  %s1745_s30 = smov 0  }
   0x3 LB: > { %s1760_s9 = sadd.s32 4294967295, %s1689_s30   ;;  %s1414_s10 = sadd.s32 4294967294, %s1689_s30   ;;  %s1689_s30 = sphi %s1745_s30, %s2481_s30   ;;  %s1685_s29 = sphi %s1743_s29, %s2480_s29   ;;  %s1681_s28 = sphi %s1741_s28, %s2479_s28   ;;  %s1677_s27 = sphi %s1739_s27, %s2478_s27  }
   0x4   : > { %s1764_s11 = sadd.s32 1, %s1689_s30   ;;  %s206_s12 = sadd.s32 1, %s1685_s29 }
   0x5   : > { %s203_s13 = ssub.s32 %s1689_s30, %s1764_s11  ;;  %p216_p0 = scmp.ne.s32.totalorder %s1685_s29, %s1681_s28 }
   0x6   : > { %p204_p1 = scmp.eq.s32.totalorder %s203_s13, 0  ;;  %p217_p2 = scmp.eq.s32.totalorder %s1760_s9, 3 }
   0x7   : > { %p222_p3 = scmp.ne.s32.totalorder %s1681_s28, %s1677_s27  ;;  %p223_p4 = scmp.eq.s32.totalorder %s1414_s10, 3 }
   0x8   : > { %s1775_s14 = scalar_select %p204_p1, %s1685_s29, %s206_s12  }
   0x9   : > { %p1777_p5 = por %p217_p2, %p216_p0  ;;  %p1781_p6 = por %p223_p4, %p222_p3 }
   0xa   : > { %p1417_p7 = scmp.ge.s32.totalorder %s1689_s30, 1  ;;  %p277_p8 = scmp.lt.s32.totalorder %s1689_s30, 5 }
   0xc   : > { %p278_p9 = pnand %p1417_p7, %p277_p8 }
   0xd   : > { %v1619_v0 = vld [vmem:[%s2471_s4] sm:$0xff] (!%p278_p9)   ;;  %s1419_s19 = sshll.u32 (!%p278_p9), %s1760_s9, 6  ;;  %v1620_v1 = vld [vmem:[%s2471_s4 + $0x8] sm:$0xff] (!%p278_p9)   ;;  %v1621_v2 = vld [vmem:[%s2471_s4 + $0x10] sm:$0xff] (!%p278_p9)   ;;  %s313_s25 = sand.u32 (!%p278_p9), 1, %s1681_s28  }
   0xe   : > { %281 = sbr.rel (%p278_p9) target bundleno = 347 (0x15b), region = 52  ;;  %p317_p10 = scmp.lt.s32.totalorder (!%p278_p9), %s1419_s19, 255  ;;  %1482 = vmatprep.subr.bf16.mxu0 (!%p278_p9), %v1619_v0  ;;  %1562 = vmatprep.subr.bf16.mxu1 (!%p278_p9), %v1619_v0  ;;  %v1622_v3 = vld [vmem:[%s2471_s4 + $0x18] sm:$0xff] (!%p278_p9)   ;;  %v1815_v6 = vld [vmem:[%s2469_s2] ss:$0 sm:$0xff] (!%p278_p9)  ;;  %v1624_v39 = vld [vmem:[%s2471_s4 + $0x28] sm:$0xff] (!%p278_p9)  }
   0xf   : > { %1483 = vmatpush3.bf16.msra.mxu0 (!%p278_p9), %v1619_v0  ;;  %1570 = vmatpush3.bf16.msra.mxu1 (!%p278_p9), %v1619_v0  ;;  %v1822_v9 = vld [vmem:[%s2470_s3] ss:$0 sm:$0xff] (!%p278_p9)  ;;  %v1625_v56 = vld [vmem:[%s2471_s4 + $0x30] sm:$0xff] (!%p278_p9)   ;;  %s1441_s18 = sshll.u32 (!%p278_p9), %s1760_s9, 13  ;;  %s2426_s22 = scalar_lea.sflag (!%p278_p9), [#allocation3], %s313_s25 }
  0x10   : > { %1484 = vmatprep.subr.bf16.mxu0 (!%p278_p9), %v1620_v1  ;;  %1563 = vmatprep.subr.bf16.mxu1 (!%p278_p9), %v1620_v1  ;;  %v1623_v21 = vld [vmem:[%s2471_s4 + $0x20] sm:$0xff] (!%p278_p9)   ;;  %s2412_s21 = scalar_lea.hbm (!%p278_p9), %s2475_s8, %s1441_s18  ;;  %s1691_s26 = smov (!%p278_p9), [#allocation2]  }
  0x11   : > { %s1631_s12 = sshll.u32 (!%p278_p9), %s1691_s26, 4  ;;  %s1632_s12 = int_to_ptr.vmem [resolvable:$false] %s1631_s12 }
  0x13   : > { %1485 = vmatpush3.bf16.msra.mxu0 (!%p278_p9), %v1620_v1  ;;  %1571 = vmatpush3.bf16.msra.mxu1 (!%p278_p9), %v1620_v1 }
  0x14   : > { %1486 = vmatprep.subr.bf16.mxu0 (!%p278_p9), %v1621_v2  ;;  %1564 = vmatprep.subr.bf16.mxu1 (!%p278_p9), %v1621_v2 }
  0x15   : > { %s2483_s19 = smov (!%p317_p10, %s1419_s19), 255 }
  0x16   : > { %s1420_s24 = sshll.u32 %s2483_s19, 3  ;;  %s2091_s19 = sshll.u32 %s313_s25, 9 }
  0x17   : > { %s1805_s10 = scalar_lea.vmem %s2467_s0, %s1420_s24  ;;  %1487 = vmatpush3.bf16.msra.mxu0 %v1621_v2  ;;  %1572 = vmatpush3.bf16.msra.mxu1 %v1621_v2  ;;  %s2075_s23 = scalar_lea.vmem %s2468_s1, %s1420_s24 }
  0x18   : > { %v330_v4 = vld [vmem:[%s1805_s10] sm:$0xff]  ;;  %v331_v5 = vld [vmem:[%s1805_s10 + $0x8] sm:$0xff]  ;;  %v332_v14 = vld [vmem:[%s1805_s10 + $0x10] sm:$0xff]  ;;  %1488 = vmatprep.subr.bf16.mxu0 %v1622_v3  ;;  %1565 = vmatprep.subr.bf16.mxu1 %v1622_v3  ;;  %s2121_s17 = scalar_lea.vmem [#allocation2], %s2091_s19  ;;  %s1633_s19 = scalar_lea.vmem %s1632_s12, 16384 }
  0x19   : > { %v401_v7 = vmul.f32 %v1815_v6, %v330_v4  ;;  %v402_v8 = vmul.f32 %v1815_v6, %v331_v5  ;;  %v362_v10 = vld [vmem:[%s1805_s10 + $0x100] sm:$0xff]  ;;  %v363_v11 = vld [vmem:[%s1805_s10 + $0x108] sm:$0xff]  ;;  %v333_v15 = vld [vmem:[%s1805_s10 + $0x18] sm:$0xff]  ;;  %v403_v19 = vmul.f32 %v1815_v6, %v332_v14 }
  0x1a   : > { %v433_v12 = vmul.f32 %v1815_v6, %v362_v10  ;;  %v434_v13 = vmul.f32 %v1815_v6, %v363_v11  ;;  %v364_v16 = vld [vmem:[%s1805_s10 + $0x110] sm:$0xff]  ;;  %v365_v20 = vld [vmem:[%s1805_s10 + $0x118] sm:$0xff]  ;;  %v404_v24 = vmul.f32 %v1815_v6, %v333_v15  ;;  %v334_v25 = vld [vmem:[%s1805_s10 + $0x20] sm:$0xff] }
  0x1b   : > { %v472_v17 = vadd.f32 %v1822_v9, %v401_v7  ;;  %v473_v18 = vadd.f32 %v1822_v9, %v402_v8  ;;  %v435_v28 = vmul.f32 %v1815_v6, %v364_v16  ;;  %v335_v29 = vld [vmem:[%s1805_s10 + $0x28] sm:$0xff]  ;;  %v436_v32 = vmul.f32 %v1815_v6, %v365_v20  ;;  %v366_v33 = vld [vmem:[%s1805_s10 + $0x120] sm:$0xff]  ;;  %1489 = vmatpush3.bf16.msra.mxu0 %v1622_v3  ;;  %v336_v38 = vld [vmem:[%s1805_s10 + $0x30] sm:$0xff] }
  0x1c   : > { %v504_v22 = vadd.f32 %v1822_v9, %v433_v12  ;;  %v505_v23 = vadd.f32 %v1822_v9, %v434_v13  ;;  %v367_v34 = vld [vmem:[%s1805_s10 + $0x128] sm:$0xff]  ;;  %1573 = vmatpush3.bf16.msra.mxu1 %v1622_v3  ;;  %v474_v36 = vadd.f32 %v1822_v9, %v403_v19  ;;  %v405_v37 = vmul.f32 %v1815_v6, %v334_v25  ;;  %v337_v43 = vld [vmem:[%s1805_s10 + $0x38] sm:$0xff]  ;;  %v368_v47 = vld [vmem:[%s1805_s10 + $0x130] sm:$0xff] }
  0x1d   : > { %v536_v26 = vmax.f32 %v472_v17, 0.0  ;;  %v537_v27 = vmax.f32 %v473_v18, 0.0  ;;  %1490 = vmatprep.subr.bf16.mxu0 %v1623_v21  ;;  %1566 = vmatprep.subr.bf16.mxu1 %v1623_v21  ;;  %v475_v41 = vadd.f32 %v1822_v9, %v404_v24  ;;  %v406_v42 = vmul.f32 %v1815_v6, %v335_v29  ;;  %v369_v52 = vld [vmem:[%s1805_s10 + $0x138] sm:$0xff]  ;;  %v338_v61 = vld [vmem:[%s1805_s10 + $0x40] sm:$0xff]  ;;  %v339_v1 = vld [vmem:[%s1805_s10 + $0x48] sm:$0xff] }
  0x1e   : > { %v568_v30 = vmax.f32 %v504_v22, 0.0  ;;  %v569_v31 = vmax.f32 %v505_v23, 0.0  ;;  %v506_v44 = vadd.f32 %v1822_v9, %v435_v28  ;;  %v437_v45 = vmul.f32 %v1815_v6, %v366_v33  ;;  %v370_v7 = vld [vmem:[%s1805_s10 + $0x140] sm:$0xff]  ;;  %v371_v8 = vld [vmem:[%s1805_s10 + $0x148] sm:$0xff]  ;;  %v340_v14 = vld [vmem:[%s1805_s10 + $0x50] sm:$0xff] }
  0x1f   : > { %v600_v35 = vpack.c.bf16 %v537_v27, %v536_v26  ;;  %v438_v46 = vmul.f32 %v1815_v6, %v367_v34  ;;  %v507_v48 = vadd.f32 %v1822_v9, %v436_v32  ;;  %v476_v49 = vadd.f32 %v1822_v9, %v405_v37  ;;  %1491 = vmatpush3.bf16.msra.mxu0 %v1623_v21  ;;  %v341_v15 = vld [vmem:[%s1805_s10 + $0x58] sm:$0xff] }
  0x20   : > { %v616_v40 = vpack.c.bf16 %v569_v31, %v568_v30  ;;  %v477_v50 = vadd.f32 %v1822_v9, %v406_v42  ;;  %v407_v51 = vmul.f32 %v1815_v6, %v336_v38  ;;  %1574 = vmatpush3.bf16.msra.mxu1 %v1623_v21  ;;  %v508_v53 = vadd.f32 %v1822_v9, %v437_v45  ;;  %v1626_v16 = vld [vmem:[%s2471_s4 + $0x38] sm:$0xff]   ;;  %v372_v21 = vld [vmem:[%s1805_s10 + $0x150] sm:$0xff]  ;;  %v342_v31 = vld [vmem:[%s1805_s10 + $0x60] sm:$0xff] }
  0x21   : > { %1498 = vmatprep.mubr.bf16.mxu0 %v600_v35  ;;  %v509_v54 = vadd.f32 %v1822_v9, %v438_v46  ;;  %v408_v55 = vmul.f32 %v1815_v6, %v337_v43  ;;  %1492 = vmatprep.subr.bf16.mxu0 %v1624_v39  ;;  %v538_v57 = vmax.f32 %v474_v36, 0.0  ;;  %v539_v58 = vmax.f32 %v475_v41, 0.0  ;;  %v373_v26 = vld [vmem:[%s1805_s10 + $0x158] sm:$0xff]  ;;  %v343_v35 = vld [vmem:[%s1805_s10 + $0x68] sm:$0xff]  ;;  %v344_v45 = vld [vmem:[%s1805_s10 + $0x70] sm:$0xff] }
  0x22   : > { %1530 = vmatprep.mubr.bf16.mxu1 %v616_v40  ;;  %1567 = vmatprep.subr.bf16.mxu1 %v1624_v39  ;;  %v478_v59 = vadd.f32 %v1822_v9, %v407_v51  ;;  %v439_v60 = vmul.f32 %v1815_v6, %v368_v47  ;;  %v570_v62 = vmax.f32 %v506_v44, 0.0  ;;  %v440_v0 = vmul.f32 %v1815_v6, %v369_v52  ;;  %v375_v40 = vld [vmem:[%s1805_s10 + $0x168] sm:$0xff] }
  0x23   : > { %v479_v63 = vadd.f32 %v1822_v9, %v408_v55  ;;  %v571_v2 = vmax.f32 %v507_v48, 0.0  ;;  %v540_v3 = vmax.f32 %v476_v49, 0.0  ;;  %v541_v4 = vmax.f32 %v477_v50, 0.0  ;;  %1493 = vmatpush3.bf16.msra.mxu0 %v1624_v39  ;;  %v345_v50 = vld [vmem:[%s1805_s10 + $0x78] sm:$0xff] }
  0x24   : > { %v510_v5 = vadd.f32 %v1822_v9, %v439_v60  ;;  %1575 = vmatpush3.bf16.msra.mxu1 %v1624_v39  ;;  %v572_v10 = vmax.f32 %v508_v53, 0.0  ;;  %v573_v11 = vmax.f32 %v509_v54, 0.0  ;;  %v511_v12 = vadd.f32 %v1822_v9, %v440_v0  ;;  %1494 = vmatprep.subr.bf16.mxu0 %v1625_v56  ;;  %v374_v39 = vld [vmem:[%s1805_s10 + $0x160] sm:$0xff] }
  0x25   : > { %v409_v13 = vmul.f32 %v1815_v6, %v338_v61  ;;  %1568 = vmatprep.subr.bf16.mxu1 %v1625_v56  ;;  %v601_v17 = vpack.c.bf16 %v539_v58, %v538_v57  ;;  %v542_v18 = vmax.f32 %v478_v59, 0.0  ;;  %v543_v19 = vmax.f32 %v479_v63, 0.0  ;;  %v376_v59 = vld [vmem:[%s1805_s10 + $0x170] sm:$0xff] }
  0x26   : > { %v410_v20 = vmul.f32 %v1815_v6, %v339_v1  ;;  %v574_v22 = vmax.f32 %v510_v5, 0.0  ;;  %v575_v23 = vmax.f32 %v511_v12, 0.0  ;;  %v441_v24 = vmul.f32 %v1815_v6, %v370_v7  ;;  %v346_v5 = vld [vmem:[%s1805_s10 + $0x80] sm:$0xff]  ;;  %v347_v12 = vld [vmem:[%s1805_s10 + $0x88] sm:$0xff] }
  0x27   : > { %v442_v25 = vmul.f32 %v1815_v6, %v371_v8  ;;  %v617_v27 = vpack.c.bf16 %v571_v2, %v570_v62  ;;  %v602_v28 = vpack.c.bf16 %v541_v4, %v540_v3  ;;  %v411_v29 = vmul.f32 %v1815_v6, %v340_v14  ;;  %1495 = vmatpush3.bf16.msra.mxu0 %v1625_v56  ;;  %v377_v4 = vld [vmem:[%s1805_s10 + $0x178] sm:$0xff] }
  0x28   : > { %v412_v30 = vmul.f32 %v1815_v6, %v341_v15  ;;  %1576 = vmatpush3.bf16.msra.mxu1 %v1625_v56  ;;  %v618_v32 = vpack.c.bf16 %v573_v11, %v572_v10  ;;  %v1896_v33 = vadd.f32 %v1822_v9, %v409_v13  ;;  %v443_v34 = vmul.f32 %v1815_v6, %v372_v21  ;;  %v378_v13 = vld [vmem:[%s1805_s10 + $0x180] sm:$0xff] }
  0x29   : > { %1496 = vmatprep.subr.bf16.mxu0 %v1626_v16  ;;  %1569 = vmatprep.subr.bf16.mxu1 %v1626_v16  ;;  %v1900_v36 = vpack.c.bf16 %v543_v19, %v542_v18  ;;  %v481_v37 = vadd.f32 %v1822_v9, %v410_v20  ;;  %v444_v38 = vmul.f32 %v1815_v6, %v373_v26  ;;  %v379_v18 = vld [vmem:[%s1805_s10 + $0x188] sm:$0xff]  ;;  %v348_v19 = vld [vmem:[%s1805_s10 + $0x90] sm:$0xff] }
  0x2a   : > { %v1906_v41 = vpack.c.bf16 %v575_v23, %v574_v22  ;;  %v512_v42 = vadd.f32 %v1822_v9, %v441_v24  ;;  %v513_v43 = vadd.f32 %v1822_v9, %v442_v25  ;;  %v413_v44 = vmul.f32 %v1815_v6, %v342_v31  ;;  %v349_v24 = vld [vmem:[%s1805_s10 + $0x98] sm:$0xff] }
  0x2b   : > { %v482_v46 = vadd.f32 %v1822_v9, %v411_v29  ;;  %v483_v47 = vadd.f32 %v1822_v9, %v412_v30  ;;  %v514_v48 = vadd.f32 %v1822_v9, %v443_v34  ;;  %v414_v49 = vmul.f32 %v1815_v6, %v343_v35  ;;  %1497 = vmatpush3.bf16.msra.mxu0 %v1626_v16  ;;  %v380_v29 = vld [vmem:[%s1805_s10 + $0x190] sm:$0xff]  ;;  %v381_v34 = vld [vmem:[%s1805_s10 + $0x198] sm:$0xff] }
  0x2c   : > { %1577 = vmatpush3.bf16.msra.mxu1 %v1626_v16  ;;  %v544_v51 = vmax.f32 %v1896_v33, 0.0  ;;  %v515_v52 = vadd.f32 %v1822_v9, %v444_v38  ;;  %v445_v53 = vmul.f32 %v1815_v6, %v374_v39  ;;  %v446_v54 = vmul.f32 %v1815_v6, %v375_v40  ;;  %v350_v40 = vld [vmem:[%s1805_s10 + $0xa0] sm:$0xff] }
  0x2d   : > { %v545_v55 = vmax.f32 %v481_v37, 0.0  ;;  %v484_v56 = vadd.f32 %v1822_v9, %v413_v44  ;;  %v485_v57 = vadd.f32 %v1822_v9, %v414_v49  ;;  %v415_v58 = vmul.f32 %v1815_v6, %v344_v45 }
  0x2e   : > { %v576_v60 = vmax.f32 %v512_v42, 0.0  ;;  %v516_v61 = vadd.f32 %v1822_v9, %v445_v53  ;;  %v517_v62 = vadd.f32 %v1822_v9, %v446_v54  ;;  %v416_v63 = vmul.f32 %v1815_v6, %v345_v50  ;;  %1499 = vmatmul.mubr.bf16.vlgmr.msra.gmra.mrb[0].mxu0 %v601_v17  ;;  %v382_v50 = vld [vmem:[%s1805_s10 + $0x1a0] sm:$0xff] }
  0x2f   : > { %1531 = vmatmul.mubr.bf16.vlgmr.msra.gmra.mrb[0].mxu1 %v617_v27  ;;  %v577_v0 = vmax.f32 %v513_v43, 0.0  ;;  %v546_v1 = vmax.f32 %v482_v46, 0.0  ;;  %v547_v2 = vmax.f32 %v483_v47, 0.0  ;;  %v486_v3 = vadd.f32 %v1822_v9, %v415_v58  ;;  %1502 = vmatprep.mubr.bf16.mxu0 %v602_v28  ;;  %v351_v46 = vld [vmem:[%s1805_s10 + $0xa8] sm:$0xff] }
  0x30   : > { %1534 = vmatprep.mubr.bf16.mxu1 %v618_v32  ;;  %v578_v7 = vmax.f32 %v514_v48, 0.0  ;;  %v579_v8 = vmax.f32 %v515_v52, 0.0  ;;  %v487_v10 = vadd.f32 %v1822_v9, %v416_v63  ;;  %v447_v11 = vmul.f32 %v1815_v6, %v376_v59 }
  0x31   : > { %v548_v14 = vmax.f32 %v484_v56, 0.0  ;;  %v549_v15 = vmax.f32 %v485_v57, 0.0  ;;  %v580_v16 = vmax.f32 %v516_v61, 0.0  ;;  %v581_v17 = vmax.f32 %v517_v62, 0.0 }
  0x32   : > { %v550_v20 = vmax.f32 %v486_v3, 0.0  ;;  %v551_v21 = vmax.f32 %v487_v10, 0.0  ;;  %v448_v22 = vmul.f32 %v1815_v6, %v377_v4  ;;  %v417_v23 = vmul.f32 %v1815_v6, %v346_v5  ;;  %v384_v10 = vld [vmem:[%s1805_s10 + $0x1b0] sm:$0xff] }
  0x33   : > { %v604_v25 = vpack.c.bf16 %v545_v55, %v544_v51  ;;  %v620_v26 = vpack.c.bf16 %v577_v0, %v576_v60  ;;  %v418_v27 = vmul.f32 %v1815_v6, %v347_v12  ;;  %v449_v28 = vmul.f32 %v1815_v6, %v378_v13  ;;  %v383_v51 = vld [vmem:[%s1805_s10 + $0x1a8] sm:$0xff]  ;;  %v352_v55 = vld [vmem:[%s1805_s10 + $0xb0] sm:$0xff] }
  0x34   : > { %v605_v30 = vpack.c.bf16 %v547_v2, %v546_v1  ;;  %v518_v31 = vadd.f32 %v1822_v9, %v447_v11  ;;  %v450_v32 = vmul.f32 %v1815_v6, %v379_v18  ;;  %v419_v33 = vmul.f32 %v1815_v6, %v348_v19  ;;  %v353_v2 = vld [vmem:[%s1805_s10 + $0xb8] sm:$0xff] }
  0x35   : > { %v621_v35 = vpack.c.bf16 %v579_v8, %v578_v7  ;;  %v606_v37 = vpack.c.bf16 %v549_v15, %v548_v14  ;;  %v622_v38 = vpack.c.bf16 %v581_v17, %v580_v16  ;;  %v420_v39 = vmul.f32 %v1815_v6, %v349_v24  ;;  %v385_v15 = vld [vmem:[%s1805_s10 + $0x1b8] sm:$0xff] }
  0x36   : > { %v1949_v42 = vpack.c.bf16 %v551_v21, %v550_v20  ;;  %v519_v43 = vadd.f32 %v1822_v9, %v448_v22  ;;  %v488_v44 = vadd.f32 %v1822_v9, %v417_v23  ;;  %v451_v45 = vmul.f32 %v1815_v6, %v380_v29  ;;  %1503 = vmatmul.mubr.bf16.gmra.mrb[4].mxu0 %v1900_v36  ;;  %v354_v20 = vld [vmem:[%s1805_s10 + $0xc0] sm:$0xff]  ;;  %v355_v21 = vld [vmem:[%s1805_s10 + $0xc8] sm:$0xff] }
  0x37   : > { %1535 = vmatmul.mubr.bf16.gmra.mrb[4].mxu1 %v1906_v41  ;;  %v489_v47 = vadd.f32 %v1822_v9, %v418_v27  ;;  %v520_v48 = vadd.f32 %v1822_v9, %v449_v28  ;;  %v452_v49 = vmul.f32 %v1815_v6, %v381_v34  ;;  %1506 = vmatprep.mubr.bf16.mxu0 %v604_v25  ;;  %v582_v52 = vmax.f32 %v518_v31, 0.0  ;;  %v386_v25 = vld [vmem:[%s1805_s10 + $0x1c0] sm:$0xff] }
  0x38   : > { %1538 = vmatprep.mubr.bf16.mxu1 %v620_v26  ;;  %v521_v53 = vadd.f32 %v1822_v9, %v450_v32  ;;  %v490_v54 = vadd.f32 %v1822_v9, %v419_v33  ;;  %v421_v36 = vmul.f32 %v1815_v6, %v350_v40  ;;  %v491_v41 = vadd.f32 %v1822_v9, %v420_v39  ;;  %v356_v26 = vld [vmem:[%s1805_s10 + $0xd0] sm:$0xff]  ;;  %v387_v32 = vld [vmem:[%s1805_s10 + $0x1c8] sm:$0xff] }
  0x39   : > { %v522_v56 = vadd.f32 %v1822_v9, %v451_v45  ;;  %v523_v57 = vadd.f32 %v1822_v9, %v452_v49  ;;  %v422_v58 = vmul.f32 %v1815_v6, %v351_v46  ;;  %v583_v59 = vmax.f32 %v519_v43, 0.0  ;;  %v389_v45 = vld [vmem:[%s1805_s10 + $0x1d8] sm:$0xff] }
  0x3a   : > { %v492_v60 = vadd.f32 %v1822_v9, %v421_v36  ;;  %v453_v61 = vmul.f32 %v1815_v6, %v382_v50  ;;  %v454_v62 = vmul.f32 %v1815_v6, %v383_v51  ;;  %v552_v63 = vmax.f32 %v488_v44, 0.0  ;;  %v358_v50 = vld [vmem:[%s1805_s10 + $0xe0] sm:$0xff]  ;;  %v359_v36 = vld [vmem:[%s1805_s10 + $0xe8] sm:$0xff] }
  0x3b   : > { %v553_v0 = vmax.f32 %v489_v47, 0.0  ;;  %v493_v1 = vadd.f32 %v1822_v9, %v422_v58  ;;  %v423_v3 = vmul.f32 %v1815_v6, %v352_v55  ;;  %v584_v4 = vmax.f32 %v520_v48, 0.0  ;;  %v390_v58 = vld [vmem:[%s1805_s10 + $0x1e0] sm:$0xff] }
  0x3c   : > { %v585_v5 = vmax.f32 %v521_v53, 0.0  ;;  %v524_v7 = vadd.f32 %v1822_v9, %v453_v61  ;;  %v525_v8 = vadd.f32 %v1822_v9, %v454_v62  ;;  %v554_v11 = vmax.f32 %v490_v54, 0.0 }
  0x3d   : > { %v555_v12 = vmax.f32 %v491_v41, 0.0  ;;  %v586_v13 = vmax.f32 %v522_v56, 0.0  ;;  %v587_v14 = vmax.f32 %v523_v57, 0.0  ;;  %v623_v16 = vpack.c.bf16 %v583_v59, %v582_v52  ;;  %v391_v59 = vld [vmem:[%s1805_s10 + $0x1e8] sm:$0xff] }
  0x3e   : > { %v556_v17 = vmax.f32 %v492_v60, 0.0  ;;  %v557_v18 = vmax.f32 %v493_v1, 0.0  ;;  %v424_v19 = vmul.f32 %v1815_v6, %v353_v2  ;;  %1507 = vmatmul.mubr.bf16.gmra.mrb[8].mxu0 %v605_v30  ;;  %v608_v22 = vpack.c.bf16 %v553_v0, %v552_v63  ;;  %v357_v30 = vld [vmem:[%s1805_s10 + $0xd8] sm:$0xff]  ;;  %v360_v0 = vld [vmem:[%s1805_s10 + $0xf0] sm:$0xff] }
  0x3f   : > { %1539 = vmatmul.mubr.bf16.gmra.mrb[8].mxu1 %v621_v35  ;;  %v1984_v23 = vadd.f32 %v1822_v9, %v423_v3  ;;  %v455_v24 = vmul.f32 %v1815_v6, %v384_v10  ;;  %1510 = vmatprep.mubr.bf16.mxu0 %v606_v37  ;;  %v624_v27 = vpack.c.bf16 %v585_v5, %v584_v4  ;;  %v588_v28 = vmax.f32 %v524_v7, 0.0  ;;  %v388_v37 = vld [vmem:[%s1805_s10 + $0x1d0] sm:$0xff]  ;;  %v361_v5 = vld [vmem:[%s1805_s10 + $0xf8] sm:$0xff] }
  0x40   : > { %1542 = vmatprep.mubr.bf16.mxu1 %v622_v38  ;;  %v589_v29 = vmax.f32 %v525_v8, 0.0  ;;  %v456_v31 = vmul.f32 %v1815_v6, %v385_v15  ;;  %v1992_v33 = vpack.c.bf16 %v555_v12, %v554_v11  ;;  %v1994_v34 = vpack.c.bf16 %v587_v14, %v586_v13 }
  0x41   : > { %v425_v35 = vmul.f32 %v1815_v6, %v354_v20  ;;  %v426_v39 = vmul.f32 %v1815_v6, %v355_v21  ;;  %v1999_v38 = vpack.c.bf16 %v557_v18, %v556_v17  ;;  %v2002_v40 = vadd.f32 %v1822_v9, %v424_v19 }
  0x42   : > { %v457_v43 = vmul.f32 %v1815_v6, %v386_v25  ;;  %v427_v44 = vmul.f32 %v1815_v6, %v356_v26  ;;  %v558_v46 = vmax.f32 %v1984_v23, 0.0  ;;  %v2009_v47 = vadd.f32 %v1822_v9, %v455_v24  ;;  %v2068_v23 = vld [vmem:[%s2472_s5] ss:$0 sm:$0xff] }
  0x43   : > { %v458_v48 = vmul.f32 %v1815_v6, %v387_v32  ;;  %v428_v49 = vmul.f32 %v1815_v6, %v357_v30  ;;  %v626_v51 = vpack.c.bf16 %v589_v29, %v588_v28  ;;  %v2015_v52 = vadd.f32 %v1822_v9, %v456_v31 }
  0x44   : > { %v498_v53 = vadd.f32 %v1822_v9, %v427_v44  ;;  %v459_v54 = vmul.f32 %v1815_v6, %v388_v37  ;;  %v2021_v55 = vadd.f32 %v1822_v9, %v425_v35  ;;  %v2024_v41 = vadd.f32 %v1822_v9, %v426_v39 }
  0x45   : > { %v499_v56 = vadd.f32 %v1822_v9, %v428_v49  ;;  %v460_v57 = vmul.f32 %v1815_v6, %v389_v45  ;;  %v528_v60 = vadd.f32 %v1822_v9, %v457_v43  ;;  %v429_v63 = vmul.f32 %v1815_v6, %v358_v50 }
  0x46   : > { %v562_v61 = vmax.f32 %v498_v53, 0.0  ;;  %v530_v62 = vadd.f32 %v1822_v9, %v459_v54  ;;  %1511 = vmatmul.mubr.bf16.gmra.mrb[12].mxu0 %v1949_v42  ;;  %v529_v1 = vadd.f32 %v1822_v9, %v458_v48  ;;  %v430_v4 = vmul.f32 %v1815_v6, %v359_v36  ;;  %v392_v42 = vld [vmem:[%s1805_s10 + $0x1f0] sm:$0xff] }
  0x47   : > { %1543 = vmatmul.mubr.bf16.gmra.mrb[12].mxu1 %v623_v16  ;;  %v563_v2 = vmax.f32 %v499_v56, 0.0  ;;  %v531_v3 = vadd.f32 %v1822_v9, %v460_v57  ;;  %1514 = vmatprep.mubr.bf16.mxu0 %v608_v22  ;;  %v500_v8 = vadd.f32 %v1822_v9, %v429_v63  ;;  %v461_v10 = vmul.f32 %v1815_v6, %v390_v58  ;;  %v393_v16 = vld [vmem:[%s1805_s10 + $0x1f8] sm:$0xff]  ;;  %v994_v57 = vld [vmem:[%s2075_s23 + $0x10] sm:$0xff]  ;;  %s1340_s10 = sshll.u32 %s2121_s17, 4  ;;  %s2414_s10 = int_to_ptr.vmem [resolvable:$true] %s1340_s10 }
  0x48   : > { %1546 = vmatprep.mubr.bf16.mxu1 %v624_v27  ;;  %v594_v7 = vmax.f32 %v530_v62, 0.0  ;;  %v462_v11 = vmul.f32 %v1815_v6, %v391_v59  ;;  %v501_v14 = vadd.f32 %v1822_v9, %v430_v4  ;;  %v431_v15 = vmul.f32 %v1815_v6, %v360_v0  ;;  %v1026_v58 = vld [vmem:[%s2075_s23 + $0x110] sm:$0xff]  ;;  %p1634_p0 = scmp.lt.s32.totalorder %s2414_s10, %s1632_s12 }
  0x49   : > { %v613_v12 = vpack.c.bf16 %v563_v2, %v562_v61  ;;  %v595_v13 = vmax.f32 %v531_v3, 0.0  ;;  %v564_v17 = vmax.f32 %v500_v8, 0.0  ;;  %v532_v18 = vadd.f32 %v1822_v9, %v461_v10  ;;  %v1024_v2 = vld [vmem:[%s2075_s23 + $0x100] sm:$0xff] }
  0x4a   : > { %v533_v19 = vadd.f32 %v1822_v9, %v462_v11  ;;  %v432_v20 = vmul.f32 %v1815_v6, %v361_v5  ;;  %v565_v22 = vmax.f32 %v501_v14, 0.0  ;;  %v502_v24 = vadd.f32 %v1822_v9, %v431_v15  ;;  %v2102_v8 = vld [vmem:[%s2474_s7] ss:$0 sm:$0xff] }
  0x4b   : > { %v629_v21 = vpack.c.bf16 %v595_v13, %v594_v7  ;;  %v463_v25 = vmul.f32 %v1815_v6, %v392_v42  ;;  %v596_v26 = vmax.f32 %v532_v18, 0.0  ;;  %v464_v29 = vmul.f32 %v1815_v6, %v393_v16  ;;  %v995_v42 = vld [vmem:[%s2075_s23 + $0x18] sm:$0xff] }
  0x4c   : > { %v597_v27 = vmax.f32 %v533_v19, 0.0  ;;  %v503_v28 = vadd.f32 %v1822_v9, %v432_v20  ;;  %v559_v31 = vmax.f32 %v2002_v40, 0.0  ;;  %v614_v32 = vpack.c.bf16 %v565_v22, %v564_v17  ;;  %v993_v19 = vld [vmem:[%s2075_s23 + $0x8] sm:$0xff] }
  0x4d   : > { %v566_v30 = vmax.f32 %v502_v24, 0.0  ;;  %v534_v35 = vadd.f32 %v1822_v9, %v463_v25  ;;  %v590_v39 = vmax.f32 %v2009_v47, 0.0  ;;  %v535_v44 = vadd.f32 %v1822_v9, %v464_v29  ;;  %v1025_v20 = vld [vmem:[%s2075_s23 + $0x108] sm:$0xff] }
  0x4e   : > { %v630_v37 = vpack.c.bf16 %v597_v27, %v596_v26  ;;  %v567_v43 = vmax.f32 %v503_v28, 0.0  ;;  %1515 = vmatmul.mubr.bf16.gmra.mrb[16].mxu0 %v1992_v33  ;;  %v591_v45 = vmax.f32 %v2015_v52, 0.0  ;;  %v560_v6 = vmax.f32 %v2021_v55, 0.0 }
  0x4f   : > { %1547 = vmatmul.mubr.bf16.gmra.mrb[16].mxu1 %v1994_v34  ;;  %v561_v40 = vmax.f32 %v2024_v41, 0.0  ;;  %v598_v48 = vmax.f32 %v534_v35, 0.0  ;;  %1518 = vmatprep.mubr.bf16.mxu0 %v1999_v38  ;;  %v592_v49 = vmax.f32 %v528_v60, 0.0  ;;  %v593_v47 = vmax.f32 %v529_v1, 0.0  ;;  %v992_v1 = vld [vmem:[%s2075_s23] sm:$0xff] }
  0x50   : > { %1550 = vmatprep.mubr.bf16.mxu1 %v626_v51  ;;  %v615_v50 = vpack.c.bf16 %v567_v43, %v566_v30  ;;  %v599_v53 = vmax.f32 %v535_v44, 0.0  ;;  %v611_v9 = vpack.c.bf16 %v559_v31, %v558_v46  ;;  %v627_v33 = vpack.c.bf16 %v591_v45, %v590_v39  ;;  %v2081_v46 = vld [vmem:[%s2473_s6] ss:$0 sm:$0xff] }
  0x51   : > { %v612_v34 = vpack.c.bf16 %v561_v40, %v560_v6  ;;  %v628_v52 = vpack.c.bf16 %v593_v47, %v592_v49 }
  0x52   : > { %v631_v54 = vpack.c.bf16 %v599_v53, %v598_v48  ;;  %v1030_v53 = vld [vmem:[%s2075_s23 + $0x130] sm:$0xff] }
  0x56   : > { %1519 = vmatmul.mubr.bf16.gmra.mrb[20].mxu0 %v611_v9 }
  0x57   : > { %1551 = vmatmul.mubr.bf16.gmra.mrb[20].mxu1 %v627_v33  ;;  %1522 = vmatprep.mubr.bf16.mxu0 %v612_v34 }
  0x58   : > { %1554 = vmatprep.mubr.bf16.mxu1 %v628_v52 }
  0x5e   : > { %1523 = vmatmul.mubr.bf16.gmra.mrb[24].mxu0 %v613_v12  ;;  %v1027_v12 = vld [vmem:[%s2075_s23 + $0x118] sm:$0xff] }
  0x5f   : > { %1555 = vmatmul.mubr.bf16.gmra.mrb[24].mxu1 %v629_v21  ;;  %1526 = vmatprep.mubr.bf16.mxu0 %v614_v32 }
  0x60   : > { %1558 = vmatprep.mubr.bf16.mxu1 %v630_v37 }
  0x66   : > { %1527 = vmatmul.mubr.bf16.gmra.mrb[28].mxu0 %v615_v50  ;;  %v998_v50 = vld [vmem:[%s2075_s23 + $0x30] sm:$0xff] }
  0x67   : > { %1559 = vmatmul.mubr.bf16.gmra.mrb[28].mxu1 %v631_v54 }
 0x101   : > { %v1500_v38 = vpop.f32.mrb[0].mxu0 }
 0x102   : > { %v1532_v51 = vpop.f32.mrb[0].mxu1  ;;  %v746_v36 = vadd.f32 %v1500_v38, %v2068_v23  ;;  %v737_v41 = vpop.f32.mrb[1].mxu0 }
 0x103   : > { %v874_v55 = vadd.f32 %v1532_v51, %v2068_v23  ;;  %v865_v56 = vpop.f32.mrb[1].mxu1  ;;  %v738_v59 = vadd.f32 %v2068_v23, %v737_v41  ;;  %v1501_v61 = vpop.f32.mrb[2].mxu0  ;;  %v996_v51 = vld [vmem:[%s2075_s23 + $0x20] sm:$0xff] }
 0x104   : > { %v866_v60 = vadd.f32 %v2068_v23, %v865_v56  ;;  %v1533_v62 = vpop.f32.mrb[2].mxu1  ;;  %v1065_v63 = vmul.f32 %v2081_v46, %v746_v36  ;;  %v749_v3 = vadd.f32 %v1501_v61, %v2068_v23  ;;  %v740_v5 = vpop.f32.mrb[3].mxu0  ;;  %v1028_v36 = vld [vmem:[%s2075_s23 + $0x120] sm:$0xff]  ;;  %v1031_v61 = vld [vmem:[%s2075_s23 + $0x138] sm:$0xff] }
 0x105   : > { %v1097_v0 = vmul.f32 %v2081_v46, %v874_v55  ;;  %v877_v4 = vadd.f32 %v1533_v62, %v2068_v23  ;;  %v868_v7 = vpop.f32.mrb[3].mxu1  ;;  %v1063_v10 = vmul.f32 %v2081_v46, %v738_v59  ;;  %v741_v13 = vadd.f32 %v2068_v23, %v740_v5  ;;  %v1029_v5 = vld [vmem:[%s2075_s23 + $0x128] sm:$0xff] }
 0x106   : > { %v1095_v11 = vmul.f32 %v2081_v46, %v866_v60  ;;  %v869_v14 = vadd.f32 %v2068_v23, %v868_v7  ;;  %v1129_v15 = vadd.f32 %v1065_v63, %v994_v57  ;;  %v1066_v17 = vmul.f32 %v2081_v46, %v749_v3  ;;  %v999_v60 = vld [vmem:[%s2075_s23 + $0x38] sm:$0xff] }
 0x107   : > { %v1161_v16 = vadd.f32 %v1097_v0, %v1026_v58  ;;  %v1098_v18 = vmul.f32 %v2081_v46, %v877_v4  ;;  %v1127_v21 = vadd.f32 %v1063_v10, %v992_v1  ;;  %v1064_v24 = vmul.f32 %v2081_v46, %v741_v13  ;;  %v997_v4 = vld [vmem:[%s2075_s23 + $0x28] sm:$0xff] }
 0x108   : > { %v1159_v22 = vadd.f32 %v1095_v11, %v1024_v2  ;;  %v1096_v25 = vmul.f32 %v2081_v46, %v869_v14  ;;  %v1200_v26 = vadd.f32 %v2102_v8, %v1129_v15  ;;  %v1130_v28 = vadd.f32 %v1066_v17, %v995_v42 }
 0x109   : > { %v1232_v27 = vadd.f32 %v2102_v8, %v1161_v16  ;;  %v1162_v29 = vadd.f32 %v1098_v18, %v1027_v12  ;;  %v1198_v31 = vadd.f32 %v2102_v8, %v1127_v21  ;;  %v1128_v30 = vadd.f32 %v1064_v24, %v993_v19  ;;  %v1504_v39 = vpop.f32.mrb[4].mxu0 }
 0x10a   : > { %v1230_v32 = vadd.f32 %v2102_v8, %v1159_v22  ;;  %v1160_v35 = vadd.f32 %v1096_v25, %v1025_v20  ;;  %v1536_v37 = vpop.f32.mrb[4].mxu1  ;;  %1264 = vst [vmem:[%s2121_s17 + $0x10] sm:$0xff] %v1200_v26  ;;  %v1201_v43 = vadd.f32 %v2102_v8, %v1130_v28  ;;  %v762_v45 = vadd.f32 %v1504_v39, %v2068_v23  ;;  %v753_v40 = vpop.f32.mrb[5].mxu0 }
 0x10b   : > { %1296 = vst [vmem:[%s2121_s17 + $0x110] sm:$0xff] %v1232_v27  ;;  %v1233_v44 = vadd.f32 %v2102_v8, %v1162_v29  ;;  %v890_v6 = vadd.f32 %v1536_v37, %v2068_v23  ;;  %v881_v48 = vpop.f32.mrb[5].mxu1  ;;  %1262 = vst [vmem:[%s2121_s17] sm:$0xff] %v1198_v31  ;;  %v1199_v49 = vadd.f32 %v2102_v8, %v1128_v30  ;;  %v1505_v33 = vpop.f32.mrb[6].mxu0  ;;  %v1034_v30 = vld [vmem:[%s2075_s23 + $0x150] sm:$0xff] }
 0x10c   : > { %1294 = vst [vmem:[%s2121_s17 + $0x100] sm:$0xff] %v1230_v32  ;;  %v1231_v47 = vadd.f32 %v2102_v8, %v1160_v35  ;;  %v754_v54 = vadd.f32 %v2068_v23, %v753_v40  ;;  %v882_v9 = vadd.f32 %v2068_v23, %v881_v48  ;;  %v1537_v34 = vpop.f32.mrb[6].mxu1  ;;  %1265 = vst [vmem:[%s2121_s17 + $0x18] sm:$0xff] %v1201_v43  ;;  %v756_v56 = vpop.f32.mrb[7].mxu0  ;;  %v1002_v32 = vld [vmem:[%s2075_s23 + $0x50] sm:$0xff]  ;;  %v1032_v40 = vld [vmem:[%s2075_s23 + $0x140] sm:$0xff] }
 0x10d   : > { %1297 = vst [vmem:[%s2121_s17 + $0x118] sm:$0xff] %v1233_v44  ;;  %v1069_v52 = vmul.f32 %v2081_v46, %v762_v45  ;;  %v1101_v38 = vmul.f32 %v2081_v46, %v890_v6  ;;  %v765_v55 = vadd.f32 %v1505_v33, %v2068_v23  ;;  %v893_v41 = vadd.f32 %v1537_v34, %v2068_v23  ;;  %v884_v57 = vpop.f32.mrb[7].mxu1  ;;  %v1000_v6 = vld [vmem:[%s2075_s23 + $0x40] sm:$0xff]  ;;  %v1035_v33 = vld [vmem:[%s2075_s23 + $0x158] sm:$0xff] }
 0x10e   : > { %1263 = vst [vmem:[%s2121_s17 + $0x8] sm:$0xff] %v1199_v49  ;;  %1295 = vst [vmem:[%s2121_s17 + $0x108] sm:$0xff] %v1231_v47  ;;  %v1067_v58 = vmul.f32 %v2081_v46, %v754_v54  ;;  %v1099_v59 = vmul.f32 %v2081_v46, %v882_v9  ;;  %v757_v62 = vadd.f32 %v2068_v23, %v756_v56  ;;  %v1003_v9 = vld [vmem:[%s2075_s23 + $0x58] sm:$0xff]  ;;  %v1033_v56 = vld [vmem:[%s2075_s23 + $0x148] sm:$0xff] }
 0x10f   : > { %v885_v63 = vadd.f32 %v2068_v23, %v884_v57  ;;  %v1133_v0 = vadd.f32 %v1069_v52, %v998_v50  ;;  %v1165_v1 = vadd.f32 %v1101_v38, %v1030_v53  ;;  %v1070_v2 = vmul.f32 %v2081_v46, %v765_v55 }
 0x110   : > { %v1102_v3 = vmul.f32 %v2081_v46, %v893_v41  ;;  %v1131_v7 = vadd.f32 %v1067_v58, %v996_v51  ;;  %v1163_v10 = vadd.f32 %v1099_v59, %v1028_v36  ;;  %v1068_v11 = vmul.f32 %v2081_v46, %v757_v62  ;;  %v1001_v41 = vld [vmem:[%s2075_s23 + $0x48] sm:$0xff] }
 0x111   : > { %v1100_v42 = vmul.f32 %v2081_v46, %v885_v63  ;;  %v1204_v12 = vadd.f32 %v2102_v8, %v1133_v0  ;;  %v1236_v13 = vadd.f32 %v2102_v8, %v1165_v1  ;;  %v1134_v14 = vadd.f32 %v1070_v2, %v999_v60  ;;  %v1508_v20 = vpop.f32.mrb[8].mxu0 }
 0x112   : > { %v1166_v15 = vadd.f32 %v1102_v3, %v1031_v61  ;;  %v1202_v16 = vadd.f32 %v2102_v8, %v1131_v7  ;;  %v1234_v17 = vadd.f32 %v2102_v8, %v1163_v10  ;;  %v1132_v18 = vadd.f32 %v1068_v11, %v997_v4  ;;  %v1540_v21 = vpop.f32.mrb[8].mxu1  ;;  %v769_v27 = vpop.f32.mrb[9].mxu0 }
 0x113   : > { %v1164_v19 = vadd.f32 %v1100_v42, %v1029_v5  ;;  %1268 = vst [vmem:[%s2121_s17 + $0x30] sm:$0xff] %v1204_v12  ;;  %1300 = vst [vmem:[%s2121_s17 + $0x130] sm:$0xff] %v1236_v13  ;;  %v1205_v22 = vadd.f32 %v2102_v8, %v1134_v14  ;;  %v778_v25 = vadd.f32 %v1508_v20, %v2068_v23  ;;  %v897_v28 = vpop.f32.mrb[9].mxu1  ;;  %v1509_v37 = vpop.f32.mrb[10].mxu0 }
 0x114   : > { %v1237_v24 = vadd.f32 %v2102_v8, %v1166_v15  ;;  %v906_v26 = vadd.f32 %v1540_v21, %v2068_v23  ;;  %1266 = vst [vmem:[%s2121_s17 + $0x20] sm:$0xff] %v1202_v16  ;;  %1298 = vst [vmem:[%s2121_s17 + $0x120] sm:$0xff] %v1234_v17  ;;  %v1203_v29 = vadd.f32 %v2102_v8, %v1132_v18  ;;  %v1541_v43 = vpop.f32.mrb[10].mxu1  ;;  %v772_v47 = vpop.f32.mrb[11].mxu0  ;;  %v1006_v17 = vld [vmem:[%s2075_s23 + $0x70] sm:$0xff] }
 0x115   : > { %v1235_v31 = vadd.f32 %v2102_v8, %v1164_v19  ;;  %v770_v35 = vadd.f32 %v2068_v23, %v769_v27  ;;  %v898_v39 = vadd.f32 %v2068_v23, %v897_v28  ;;  %1269 = vst [vmem:[%s2121_s17 + $0x38] sm:$0xff] %v1205_v22  ;;  %v1073_v44 = vmul.f32 %v2081_v46, %v778_v25  ;;  %v900_v50 = vpop.f32.mrb[11].mxu1  ;;  %v1038_v18 = vld [vmem:[%s2075_s23 + $0x170] sm:$0xff]  ;;  %v1036_v27 = vld [vmem:[%s2075_s23 + $0x160] sm:$0xff] }
 0x116   : > { %1301 = vst [vmem:[%s2121_s17 + $0x138] sm:$0xff] %v1237_v24  ;;  %v1105_v45 = vmul.f32 %v2081_v46, %v906_v26  ;;  %v781_v48 = vadd.f32 %v1509_v37, %v2068_v23  ;;  %v909_v49 = vadd.f32 %v1541_v43, %v2068_v23  ;;  %1267 = vst [vmem:[%s2121_s17 + $0x28] sm:$0xff] %v1203_v29  ;;  %v1004_v26 = vld [vmem:[%s2075_s23 + $0x60] sm:$0xff]  ;;  %v1039_v37 = vld [vmem:[%s2075_s23 + $0x178] sm:$0xff] }
 0x117   : > { %1299 = vst [vmem:[%s2121_s17 + $0x128] sm:$0xff] %v1235_v31  ;;  %v1071_v53 = vmul.f32 %v2081_v46, %v770_v35  ;;  %v1103_v54 = vmul.f32 %v2081_v46, %v898_v39  ;;  %v773_v34 = vadd.f32 %v2068_v23, %v772_v47  ;;  %v901_v52 = vadd.f32 %v2068_v23, %v900_v50  ;;  %v1007_v39 = vld [vmem:[%s2075_s23 + $0x78] sm:$0xff]  ;;  %v1037_v47 = vld [vmem:[%s2075_s23 + $0x168] sm:$0xff] }
 0x118   : > { %v1137_v38 = vadd.f32 %v1073_v44, %v1002_v32  ;;  %v1169_v51 = vadd.f32 %v1105_v45, %v1034_v30  ;;  %v1074_v36 = vmul.f32 %v2081_v46, %v781_v48  ;;  %v1106_v55 = vmul.f32 %v2081_v46, %v909_v49  ;;  %v1005_v49 = vld [vmem:[%s2075_s23 + $0x68] sm:$0xff] }
 0x119   : > { %v1135_v57 = vadd.f32 %v1071_v53, %v1000_v6  ;;  %v1167_v58 = vadd.f32 %v1103_v54, %v1032_v40  ;;  %v1072_v59 = vmul.f32 %v2081_v46, %v773_v34  ;;  %v1104_v60 = vmul.f32 %v2081_v46, %v901_v52  ;;  %v1512_v5 = vpop.f32.mrb[12].mxu0 }
 0x11a   : > { %v1208_v61 = vadd.f32 %v2102_v8, %v1137_v38  ;;  %v1240_v62 = vadd.f32 %v2102_v8, %v1169_v51  ;;  %v1138_v63 = vadd.f32 %v1074_v36, %v1003_v9  ;;  %v1170_v0 = vadd.f32 %v1106_v55, %v1035_v33  ;;  %v1544_v7 = vpop.f32.mrb[12].mxu1  ;;  %v785_v13 = vpop.f32.mrb[13].mxu0 }
 0x11b   : > { %v1206_v1 = vadd.f32 %v2102_v8, %v1135_v57  ;;  %v1238_v2 = vadd.f32 %v2102_v8, %v1167_v58  ;;  %v1136_v3 = vadd.f32 %v1072_v59, %v1001_v41  ;;  %v1168_v4 = vadd.f32 %v1104_v60, %v1033_v56  ;;  %v913_v14 = vpop.f32.mrb[13].mxu1  ;;  %v1513_v21 = vpop.f32.mrb[14].mxu0 }
 0x11c   : > { %1272 = vst [vmem:[%s2121_s17 + $0x50] sm:$0xff] %v1208_v61  ;;  %1304 = vst [vmem:[%s2121_s17 + $0x150] sm:$0xff] %v1240_v62  ;;  %v1209_v10 = vadd.f32 %v2102_v8, %v1138_v63  ;;  %v1241_v11 = vadd.f32 %v2102_v8, %v1170_v0  ;;  %v794_v42 = vadd.f32 %v1512_v5, %v2068_v23  ;;  %v1545_v22 = vpop.f32.mrb[14].mxu1  ;;  %v788_v31 = vpop.f32.mrb[15].mxu0 }
 0x11d   : > { %v922_v12 = vadd.f32 %v1544_v7, %v2068_v23  ;;  %1270 = vst [vmem:[%s2121_s17 + $0x40] sm:$0xff] %v1206_v1  ;;  %1302 = vst [vmem:[%s2121_s17 + $0x140] sm:$0xff] %v1238_v2  ;;  %v1207_v15 = vadd.f32 %v2102_v8, %v1136_v3  ;;  %v1239_v16 = vadd.f32 %v2102_v8, %v1168_v4  ;;  %v916_v32 = vpop.f32.mrb[15].mxu1  ;;  %v1010_v2 = vld [vmem:[%s2075_s23 + $0x90] sm:$0xff] }
 0x11e   : > { %v786_v19 = vadd.f32 %v2068_v23, %v785_v13  ;;  %v914_v20 = vadd.f32 %v2068_v23, %v913_v14  ;;  %1273 = vst [vmem:[%s2121_s17 + $0x58] sm:$0xff] %v1209_v10  ;;  %1305 = vst [vmem:[%s2121_s17 + $0x158] sm:$0xff] %v1241_v11  ;;  %v1077_v24 = vmul.f32 %v2081_v46, %v794_v42  ;;  %v1042_v3 = vld [vmem:[%s2075_s23 + $0x190] sm:$0xff]  ;;  %v1040_v13 = vld [vmem:[%s2075_s23 + $0x180] sm:$0xff] }
 0x11f   : > { %v1109_v25 = vmul.f32 %v2081_v46, %v922_v12  ;;  %v797_v28 = vadd.f32 %v1513_v21, %v2068_v23  ;;  %v925_v29 = vadd.f32 %v1545_v22, %v2068_v23  ;;  %1271 = vst [vmem:[%s2121_s17 + $0x48] sm:$0xff] %v1207_v15  ;;  %1303 = vst [vmem:[%s2121_s17 + $0x148] sm:$0xff] %v1239_v16  ;;  %v1008_v12 = vld [vmem:[%s2075_s23 + $0x80] sm:$0xff]  ;;  %v1043_v21 = vld [vmem:[%s2075_s23 + $0x198] sm:$0xff] }
 0x120   : > { %v1075_v30 = vmul.f32 %v2081_v46, %v786_v19  ;;  %v1107_v35 = vmul.f32 %v2081_v46, %v914_v20  ;;  %v789_v43 = vadd.f32 %v2068_v23, %v788_v31  ;;  %v917_v44 = vadd.f32 %v2068_v23, %v916_v32  ;;  %v1011_v20 = vld [vmem:[%s2075_s23 + $0x98] sm:$0xff]  ;;  %v1041_v31 = vld [vmem:[%s2075_s23 + $0x188] sm:$0xff] }
 0x121   : > { %v1141_v45 = vadd.f32 %v1077_v24, %v1006_v17  ;;  %v1173_v6 = vadd.f32 %v1109_v25, %v1038_v18  ;;  %v1078_v40 = vmul.f32 %v2081_v46, %v797_v28  ;;  %v1110_v48 = vmul.f32 %v2081_v46, %v925_v29  ;;  %v1516_v56 = vpop.f32.mrb[16].mxu0  ;;  %v1009_v29 = vld [vmem:[%s2075_s23 + $0x88] sm:$0xff] }
 0x122   : > { %v1139_v50 = vadd.f32 %v1075_v30, %v1004_v26  ;;  %v1171_v53 = vadd.f32 %v1107_v35, %v1036_v27  ;;  %v1076_v54 = vmul.f32 %v2081_v46, %v789_v43  ;;  %v1108_v9 = vmul.f32 %v2081_v46, %v917_v44  ;;  %v1548_v57 = vpop.f32.mrb[16].mxu1  ;;  %v801_v62 = vpop.f32.mrb[17].mxu0 }
 0x123   : > { %v1212_v33 = vadd.f32 %v2102_v8, %v1141_v45  ;;  %v1244_v34 = vadd.f32 %v2102_v8, %v1173_v6  ;;  %v1142_v52 = vadd.f32 %v1078_v40, %v1007_v39  ;;  %v1174_v38 = vadd.f32 %v1110_v48, %v1039_v37  ;;  %v929_v63 = vpop.f32.mrb[17].mxu1  ;;  %v1517_v7 = vpop.f32.mrb[18].mxu0 }
 0x124   : > { %v1210_v51 = vadd.f32 %v2102_v8, %v1139_v50  ;;  %v1242_v36 = vadd.f32 %v2102_v8, %v1171_v53  ;;  %v1140_v55 = vadd.f32 %v1076_v54, %v1005_v49  ;;  %v1172_v41 = vadd.f32 %v1108_v9, %v1037_v47  ;;  %v1549_v10 = vpop.f32.mrb[18].mxu1  ;;  %v804_v16 = vpop.f32.mrb[19].mxu0 }
 0x125   : > { %1276 = vst [vmem:[%s2121_s17 + $0x70] sm:$0xff] %v1212_v33  ;;  %1308 = vst [vmem:[%s2121_s17 + $0x170] sm:$0xff] %v1244_v34  ;;  %v1213_v58 = vadd.f32 %v2102_v8, %v1142_v52  ;;  %v1245_v59 = vadd.f32 %v2102_v8, %v1174_v38  ;;  %v810_v60 = vadd.f32 %v1516_v56, %v2068_v23  ;;  %v932_v17 = vpop.f32.mrb[19].mxu1 }
 0x126   : > { %v938_v61 = vadd.f32 %v1548_v57, %v2068_v23  ;;  %1274 = vst [vmem:[%s2121_s17 + $0x60] sm:$0xff] %v1210_v51  ;;  %1306 = vst [vmem:[%s2121_s17 + $0x160] sm:$0xff] %v1242_v36  ;;  %v1211_v0 = vadd.f32 %v2102_v8, %v1140_v55  ;;  %v1243_v1 = vadd.f32 %v2102_v8, %v1172_v41  ;;  %v1014_v36 = vld [vmem:[%s2075_s23 + $0xb0] sm:$0xff] }
 0x127   : > { %v802_v4 = vadd.f32 %v2068_v23, %v801_v62  ;;  %v930_v5 = vadd.f32 %v2068_v23, %v929_v63  ;;  %1277 = vst [vmem:[%s2121_s17 + $0x78] sm:$0xff] %v1213_v58  ;;  %1309 = vst [vmem:[%s2121_s17 + $0x178] sm:$0xff] %v1245_v59  ;;  %v1081_v11 = vmul.f32 %v2081_v46, %v810_v60  ;;  %v1046_v55 = vld [vmem:[%s2075_s23 + $0x1b0] sm:$0xff]  ;;  %v1044_v62 = vld [vmem:[%s2075_s23 + $0x1a0] sm:$0xff] }
 0x128   : > { %v1113_v42 = vmul.f32 %v2081_v46, %v938_v61  ;;  %v813_v14 = vadd.f32 %v1517_v7, %v2068_v23  ;;  %v941_v15 = vadd.f32 %v1549_v10, %v2068_v23  ;;  %1275 = vst [vmem:[%s2121_s17 + $0x68] sm:$0xff] %v1211_v0  ;;  %1307 = vst [vmem:[%s2121_s17 + $0x168] sm:$0xff] %v1243_v1  ;;  %v1012_v61 = vld [vmem:[%s2075_s23 + $0xa0] sm:$0xff]  ;;  %v1047_v7 = vld [vmem:[%s2075_s23 + $0x1b8] sm:$0xff] }
 0x129   : > { %v1079_v18 = vmul.f32 %v2081_v46, %v802_v4  ;;  %v1111_v19 = vmul.f32 %v2081_v46, %v930_v5  ;;  %v805_v22 = vadd.f32 %v2068_v23, %v804_v16  ;;  %v933_v24 = vadd.f32 %v2068_v23, %v932_v17  ;;  %v1520_v47 = vpop.f32.mrb[20].mxu0  ;;  %v1015_v5 = vld [vmem:[%s2075_s23 + $0xb8] sm:$0xff]  ;;  %v1045_v16 = vld [vmem:[%s2075_s23 + $0x1a8] sm:$0xff] }
 0x12a   : > { %v1145_v25 = vadd.f32 %v1081_v11, %v1010_v2  ;;  %v1177_v26 = vadd.f32 %v1113_v42, %v1042_v3  ;;  %v1082_v27 = vmul.f32 %v2081_v46, %v813_v14  ;;  %v1114_v28 = vmul.f32 %v2081_v46, %v941_v15  ;;  %v1552_v50 = vpop.f32.mrb[20].mxu1  ;;  %v817_v34 = vpop.f32.mrb[21].mxu0  ;;  %v1013_v15 = vld [vmem:[%s2075_s23 + $0xa8] sm:$0xff] }
 0x12b   : > { %v1143_v32 = vadd.f32 %v1079_v18, %v1008_v12  ;;  %v1175_v30 = vadd.f32 %v1111_v19, %v1040_v13  ;;  %v1080_v35 = vmul.f32 %v2081_v46, %v805_v22  ;;  %v1112_v39 = vmul.f32 %v2081_v46, %v933_v24  ;;  %v945_v52 = vpop.f32.mrb[21].mxu1  ;;  %v1521_v57 = vpop.f32.mrb[22].mxu0 }
 0x12c   : > { %v1216_v37 = vadd.f32 %v2102_v8, %v1145_v25  ;;  %v1248_v43 = vadd.f32 %v2102_v8, %v1177_v26  ;;  %v1146_v44 = vadd.f32 %v1082_v27, %v1011_v20  ;;  %v1178_v45 = vadd.f32 %v1114_v28, %v1043_v21  ;;  %v1553_v58 = vpop.f32.mrb[22].mxu1  ;;  %v820_v1 = vpop.f32.mrb[23].mxu0 }
 0x12d   : > { %v1214_v6 = vadd.f32 %v2102_v8, %v1143_v32  ;;  %v1246_v40 = vadd.f32 %v2102_v8, %v1175_v30  ;;  %v1144_v48 = vadd.f32 %v1080_v35, %v1009_v29  ;;  %v1176_v49 = vadd.f32 %v1112_v39, %v1041_v31  ;;  %v948_v2 = vpop.f32.mrb[23].mxu1 }
 0x12e   : > { %1280 = vst [vmem:[%s2121_s17 + $0x90] sm:$0xff] %v1216_v37  ;;  %1312 = vst [vmem:[%s2121_s17 + $0x190] sm:$0xff] %v1248_v43  ;;  %v1217_v53 = vadd.f32 %v2102_v8, %v1146_v44  ;;  %v1249_v54 = vadd.f32 %v2102_v8, %v1178_v45  ;;  %v826_v9 = vadd.f32 %v1520_v47, %v2068_v23 }
 0x12f   : > { %v954_v33 = vadd.f32 %v1552_v50, %v2068_v23  ;;  %1278 = vst [vmem:[%s2121_s17 + $0x80] sm:$0xff] %v1214_v6  ;;  %1310 = vst [vmem:[%s2121_s17 + $0x180] sm:$0xff] %v1246_v40  ;;  %v1215_v38 = vadd.f32 %v2102_v8, %v1144_v48  ;;  %v1247_v51 = vadd.f32 %v2102_v8, %v1176_v49  ;;  %v1018_v40 = vld [vmem:[%s2075_s23 + $0xd0] sm:$0xff] }
 0x130   : > { %v818_v41 = vadd.f32 %v2068_v23, %v817_v34  ;;  %v946_v56 = vadd.f32 %v2068_v23, %v945_v52  ;;  %1281 = vst [vmem:[%s2121_s17 + $0x98] sm:$0xff] %v1217_v53  ;;  %1313 = vst [vmem:[%s2121_s17 + $0x198] sm:$0xff] %v1249_v54  ;;  %v1085_v59 = vmul.f32 %v2081_v46, %v826_v9  ;;  %v1050_v48 = vld [vmem:[%s2075_s23 + $0x1d0] sm:$0xff]  ;;  %v1048_v34 = vld [vmem:[%s2075_s23 + $0x1c0] sm:$0xff] }
 0x131   : > { %v1117_v60 = vmul.f32 %v2081_v46, %v954_v33  ;;  %v829_v63 = vadd.f32 %v1521_v57, %v2068_v23  ;;  %v957_v0 = vadd.f32 %v1553_v58, %v2068_v23  ;;  %1279 = vst [vmem:[%s2121_s17 + $0x88] sm:$0xff] %v1215_v38  ;;  %1311 = vst [vmem:[%s2121_s17 + $0x188] sm:$0xff] %v1247_v51  ;;  %v1524_v31 = vpop.f32.mrb[24].mxu0  ;;  %v1016_v33 = vld [vmem:[%s2075_s23 + $0xc0] sm:$0xff]  ;;  %v1051_v57 = vld [vmem:[%s2075_s23 + $0x1d8] sm:$0xff] }
 0x132   : > { %v1083_v3 = vmul.f32 %v2081_v46, %v818_v41  ;;  %v1115_v4 = vmul.f32 %v2081_v46, %v946_v56  ;;  %v821_v10 = vadd.f32 %v2068_v23, %v820_v1  ;;  %v949_v11 = vadd.f32 %v2068_v23, %v948_v2  ;;  %v1556_v32 = vpop.f32.mrb[24].mxu1  ;;  %v833_v43 = vpop.f32.mrb[25].mxu0  ;;  %v1019_v56 = vld [vmem:[%s2075_s23 + $0xd8] sm:$0xff]  ;;  %v1049_v1 = vld [vmem:[%s2075_s23 + $0x1c8] sm:$0xff] }
 0x133   : > { %v1149_v42 = vadd.f32 %v1085_v59, %v1014_v36  ;;  %v1181_v12 = vadd.f32 %v1117_v60, %v1046_v55  ;;  %v1086_v13 = vmul.f32 %v2081_v46, %v829_v63  ;;  %v1118_v14 = vmul.f32 %v2081_v46, %v957_v0  ;;  %v961_v44 = vpop.f32.mrb[25].mxu1  ;;  %v1525_v50 = vpop.f32.mrb[26].mxu0  ;;  %v1017_v0 = vld [vmem:[%s2075_s23 + $0xc8] sm:$0xff] }
 0x134   : > { %v1147_v17 = vadd.f32 %v1083_v3, %v1012_v61  ;;  %v1179_v18 = vadd.f32 %v1115_v4, %v1044_v62  ;;  %v1084_v19 = vmul.f32 %v2081_v46, %v821_v10  ;;  %v1116_v20 = vmul.f32 %v2081_v46, %v949_v11  ;;  %v1557_v53 = vpop.f32.mrb[26].mxu1  ;;  %v836_v51 = vpop.f32.mrb[27].mxu0 }
 0x135   : > { %v1220_v21 = vadd.f32 %v2102_v8, %v1149_v42  ;;  %v1252_v22 = vadd.f32 %v2102_v8, %v1181_v12  ;;  %v1150_v24 = vadd.f32 %v1086_v13, %v1015_v5  ;;  %v1182_v25 = vadd.f32 %v1118_v14, %v1047_v7  ;;  %v964_v36 = vpop.f32.mrb[27].mxu1 }
 0x136   : > { %v1218_v26 = vadd.f32 %v2102_v8, %v1147_v17  ;;  %v1250_v27 = vadd.f32 %v2102_v8, %v1179_v18  ;;  %v1148_v28 = vadd.f32 %v1084_v19, %v1013_v15  ;;  %v1180_v29 = vadd.f32 %v1116_v20, %v1045_v16 }
 0x137   : > { %1284 = vst [vmem:[%s2121_s17 + $0xb0] sm:$0xff] %v1220_v21  ;;  %1316 = vst [vmem:[%s2121_s17 + $0x1b0] sm:$0xff] %v1252_v22  ;;  %v1221_v30 = vadd.f32 %v2102_v8, %v1150_v24  ;;  %v1253_v35 = vadd.f32 %v2102_v8, %v1182_v25  ;;  %v842_v39 = vadd.f32 %v1524_v31, %v2068_v23 }
 0x138   : > { %v970_v37 = vadd.f32 %v1556_v32, %v2068_v23  ;;  %1282 = vst [vmem:[%s2121_s17 + $0xa0] sm:$0xff] %v1218_v26  ;;  %1314 = vst [vmem:[%s2121_s17 + $0x1a0] sm:$0xff] %v1250_v27  ;;  %v1219_v45 = vadd.f32 %v2102_v8, %v1148_v28  ;;  %v1251_v6 = vadd.f32 %v2102_v8, %v1180_v29  ;;  %v1022_v27 = vld [vmem:[%s2075_s23 + $0xf0] sm:$0xff] }
 0x139   : > { %v834_v49 = vadd.f32 %v2068_v23, %v833_v43  ;;  %v962_v47 = vadd.f32 %v2068_v23, %v961_v44  ;;  %1285 = vst [vmem:[%s2121_s17 + $0xb8] sm:$0xff] %v1221_v30  ;;  %1317 = vst [vmem:[%s2121_s17 + $0x1b8] sm:$0xff] %v1253_v35  ;;  %v1089_v54 = vmul.f32 %v2081_v46, %v842_v39  ;;  %v1528_v16 = vpop.f32.mrb[28].mxu0  ;;  %v1054_v28 = vld [vmem:[%s2075_s23 + $0x1f0] sm:$0xff]  ;;  %v1052_v43 = vld [vmem:[%s2075_s23 + $0x1e0] sm:$0xff] }
 0x13a   : > { %v1121_v9 = vmul.f32 %v2081_v46, %v970_v37  ;;  %v845_v52 = vadd.f32 %v1525_v50, %v2068_v23  ;;  %v973_v38 = vadd.f32 %v1557_v53, %v2068_v23  ;;  %1283 = vst [vmem:[%s2121_s17 + $0xa8] sm:$0xff] %v1219_v45  ;;  %1315 = vst [vmem:[%s2121_s17 + $0x1a8] sm:$0xff] %v1251_v6  ;;  %v1560_v17 = vpop.f32.mrb[28].mxu1  ;;  %v849_v22 = vpop.f32.mrb[29].mxu0  ;;  %v1020_v37 = vld [vmem:[%s2075_s23 + $0xe0] sm:$0xff]  ;;  %v1055_v50 = vld [vmem:[%s2075_s23 + $0x1f8] sm:$0xff] }
 0x13b   : > { %v1087_v55 = vmul.f32 %v2081_v46, %v834_v49  ;;  %v1119_v41 = vmul.f32 %v2081_v46, %v962_v47  ;;  %v837_v58 = vadd.f32 %v2068_v23, %v836_v51  ;;  %v965_v59 = vadd.f32 %v2068_v23, %v964_v36  ;;  %v977_v24 = vpop.f32.mrb[29].mxu1  ;;  %v1529_v32 = vpop.f32.mrb[30].mxu0  ;;  %v1023_v47 = vld [vmem:[%s2075_s23 + $0xf8] sm:$0xff]  ;;  %v1053_v51 = vld [vmem:[%s2075_s23 + $0x1e8] sm:$0xff] }
 0x13c   : > { %v1153_v60 = vadd.f32 %v1089_v54, %v1018_v40  ;;  %v1185_v61 = vadd.f32 %v1121_v9, %v1050_v48  ;;  %v1090_v62 = vmul.f32 %v2081_v46, %v845_v52  ;;  %v1122_v63 = vmul.f32 %v2081_v46, %v973_v38  ;;  %v1561_v30 = vpop.f32.mrb[30].mxu1  ;;  %v852_v6 = vpop.f32.mrb[31].mxu0  ;;  %v1021_v38 = vld [vmem:[%s2075_s23 + $0xe8] sm:$0xff]  ;;  %s1627_s23 = scalar_lea.vmem %s2414_s10, 8192 }
 0x13d   : > { %v1151_v2 = vadd.f32 %v1087_v55, %v1016_v33  ;;  %v1183_v3 = vadd.f32 %v1119_v41, %v1048_v34  ;;  %v1088_v4 = vmul.f32 %v2081_v46, %v837_v58  ;;  %v1120_v5 = vmul.f32 %v2081_v46, %v965_v59  ;;  %v980_v40 = vpop.f32.mrb[31].mxu1  ;;  %p1628_p11 = scmp.ne.s32.totalorder %s2414_s10, %s1627_s23  ;;  %p1635_p1 = scmp.lt.s32.totalorder %s1633_s19, %s1627_s23 }
 0x13e   : > { %v1224_v7 = vadd.f32 %v2102_v8, %v1153_v60  ;;  %v1256_v10 = vadd.f32 %v2102_v8, %v1185_v61  ;;  %v1154_v11 = vadd.f32 %v1090_v62, %v1019_v56  ;;  %v1186_v42 = vadd.f32 %v1122_v63, %v1051_v57 }
 0x13f   : > { %v1222_v12 = vadd.f32 %v2102_v8, %v1151_v2  ;;  %v1254_v13 = vadd.f32 %v2102_v8, %v1183_v3  ;;  %v1152_v14 = vadd.f32 %v1088_v4, %v1017_v0  ;;  %v1184_v15 = vadd.f32 %v1120_v5, %v1049_v1  ;;  %p1629_p12 = pnand %p1628_p11, %p1777_p5  ;;  %p1636_p2 = por %p1635_p1, %p1634_p0 }
 0x140   : > { %1288 = vst [vmem:[%s2121_s17 + $0xd0] sm:$0xff] %v1224_v7  ;;  %1320 = vst [vmem:[%s2121_s17 + $0x1d0] sm:$0xff] %v1256_v10  ;;  %v1225_v18 = vadd.f32 %v2102_v8, %v1154_v11  ;;  %v1257_v19 = vadd.f32 %v2102_v8, %v1186_v42  ;;  %v858_v20 = vadd.f32 %v1528_v16, %v2068_v23 }
 0x141   : > { %v986_v21 = vadd.f32 %v1560_v17, %v2068_v23  ;;  %1286 = vst [vmem:[%s2121_s17 + $0xc0] sm:$0xff] %v1222_v12  ;;  %1318 = vst [vmem:[%s2121_s17 + $0x1c0] sm:$0xff] %v1254_v13  ;;  %v1223_v25 = vadd.f32 %v2102_v8, %v1152_v14  ;;  %v1255_v26 = vadd.f32 %v2102_v8, %v1184_v15  ;;  %p1630_p13 = pneg %p1629_p12 }
 0x142   : > { %v850_v29 = vadd.f32 %v2068_v23, %v849_v22  ;;  %v978_v31 = vadd.f32 %v2068_v23, %v977_v24  ;;  %1289 = vst [vmem:[%s2121_s17 + $0xd8] sm:$0xff] %v1225_v18  ;;  %1321 = vst [vmem:[%s2121_s17 + $0x1d8] sm:$0xff] %v1257_v19  ;;  %v1093_v35 = vmul.f32 %v2081_v46, %v858_v20 }
 0x143   : > { %v1125_v39 = vmul.f32 %v2081_v46, %v986_v21  ;;  %v861_v44 = vadd.f32 %v1529_v32, %v2068_v23  ;;  %v989_v45 = vadd.f32 %v1561_v30, %v2068_v23  ;;  %1287 = vst [vmem:[%s2121_s17 + $0xc8] sm:$0xff] %v1223_v25  ;;  %1319 = vst [vmem:[%s2121_s17 + $0x1c8] sm:$0xff] %v1255_v26  ;;  %p1637_p3 = pnand %p1636_p2, %p1630_p13 }
 0x144   : > { %v1091_v48 = vmul.f32 %v2081_v46, %v850_v29  ;;  %v1123_v49 = vmul.f32 %v2081_v46, %v978_v31  ;;  %v853_v53 = vadd.f32 %v2068_v23, %v852_v6  ;;  %v981_v54 = vadd.f32 %v2068_v23, %v980_v40 }
 0x145   : > { %v1157_v9 = vadd.f32 %v1093_v35, %v1022_v27  ;;  %v1189_v33 = vadd.f32 %v1125_v39, %v1054_v28  ;;  %v1094_v34 = vmul.f32 %v2081_v46, %v861_v44  ;;  %v1126_v52 = vmul.f32 %v2081_v46, %v989_v45 }
 0x146   : > { %v1155_v36 = vadd.f32 %v1091_v48, %v1020_v37  ;;  %v1187_v55 = vadd.f32 %v1123_v49, %v1052_v43  ;;  %v1092_v41 = vmul.f32 %v2081_v46, %v853_v53  ;;  %v1124_v56 = vmul.f32 %v2081_v46, %v981_v54 }
 0x147   : > { %v1228_v23 = vadd.f32 %v2102_v8, %v1157_v9  ;;  %v1260_v57 = vadd.f32 %v2102_v8, %v1189_v33  ;;  %v1158_v58 = vadd.f32 %v1094_v34, %v1023_v47  ;;  %v1190_v59 = vadd.f32 %v1126_v52, %v1055_v50 }
 0x148   : > { %v1226_v60 = vadd.f32 %v2102_v8, %v1155_v36  ;;  %v1258_v61 = vadd.f32 %v2102_v8, %v1187_v55  ;;  %v1156_v62 = vadd.f32 %v1092_v41, %v1021_v38  ;;  %v1188_v46 = vadd.f32 %v1124_v56, %v1053_v51 }
 0x149   : > { %1292 = vst [vmem:[%s2121_s17 + $0xf0] sm:$0xff] %v1228_v23  ;;  %1324 = vst [vmem:[%s2121_s17 + $0x1f0] sm:$0xff] %v1260_v57  ;;  %v1229_v63 = vadd.f32 %v2102_v8, %v1158_v58  ;;  %v1261_v0 = vadd.f32 %v2102_v8, %v1190_v59 }
 0x14a   : > { %1290 = vst [vmem:[%s2121_s17 + $0xe0] sm:$0xff] %v1226_v60  ;;  %1322 = vst [vmem:[%s2121_s17 + $0x1e0] sm:$0xff] %v1258_v61  ;;  %v1227_v1 = vadd.f32 %v2102_v8, %v1156_v62  ;;  %v1259_v2 = vadd.f32 %v2102_v8, %v1188_v46 }
 0x14b   : > { %1293 = vst [vmem:[%s2121_s17 + $0xf8] sm:$0xff] %v1229_v63  ;;  %1325 = vst [vmem:[%s2121_s17 + $0x1f8] sm:$0xff] %v1261_v0 }
 0x14c   : > { %1291 = vst [vmem:[%s2121_s17 + $0xe8] sm:$0xff] %v1227_v1  ;;  %1323 = vst [vmem:[%s2121_s17 + $0x1e8] sm:$0xff] %v1259_v2 }
 0x14d   : > { %1640 = shalt.err (!%p1637_p3)
}
 0x14e   : > { %s1641_s25 = scalar_lea.hbm %s2412_s21, 8192  ;;  %s1645_s17 = scalar_lea.hbm %s2475_s8, 32768 }
 0x14f   : > { %p1642_p4 = scmp.ne.s32.totalorder %s2412_s21, %s1641_s25  ;;  %p1646_p9 = scmp.lt.u32.totalorder %s2412_s21, %s2475_s8 }
 0x150   : > { %p1647_p10 = scmp.lt.u32.totalorder %s1645_s17, %s1641_s25  ;;  %p1649_p12 = scmp.lt.u32.totalorder %s1641_s25, %s2412_s21 }
 0x151   : > { %p1643_p7 = pnand %p1642_p4, %p1777_p5 }
 0x152   : > { %p1648_p11 = por %p1647_p10, %p1646_p9 }
 0x153   : > { %p1644_p8 = pneg %p1643_p7 }
 0x154   : > { %p1650_p13 = por %p1649_p12, %p1648_p11 }
 0x156   : > { %p1651_p0 = pnand %p1650_p13, %p1644_p8 }
 0x158   : > { %1654 = shalt.err (!%p1651_p0)
}
 0x159   : > { %s1692_s20 = smov 128   ;;  %s1693_s23 = smov 8  }
 0x15a   : > { %1578 = dma.vmem_to_hbm [thread:$0]  (%p1777_p5), %s2414_s10, 8192, %s2412_s21, %s2426_s22, %s1692_s20, %s1692_s20, %s1693_s23  }
 0x15b PF: > { %p1584_p1 = scmp.ge.s32.totalorder %s1689_s30, 2  ;;  %s1355_s26 = sand.u32 1, %s1677_s27  }
 0x15c   : > { %s1356_s12 = scalar_lea.sflag [#allocation3], %s1355_s26 }
 0x15d   : > { %p1581_p2 = pnand %p1584_p1, %p1781_p6 }
 0x15f   : > { %1672 = dma.done.wait (!%p1581_p2), %s1356_s12, 8192  }
 0x160   : > { %1674 = vsyncadd (!%p1581_p2), %s1356_s12, 4294959104  ;;  %p18_p3 = scmp.ge.s32.totalorder %s1764_s11, 6   ;;  %s2478_s27 = smov %s1681_s28 }
 0x161   : > { %s2479_s28 = smov %s1685_s29  ;;  %s2480_s29 = smov %s1775_s14 }
 0x162   : > { %s2481_s30 = smov %s1764_s11  ;;  %20 = sbr.rel (!%p18_p3) target bundleno = 3 (0x3), region = 90 }
 0x169   :  { %1361 = vsyncpa [#allocation3], 1 }
 0x16a   :  { %1363 = vsyncpa [#allocation3 + $0x1], 1 }

// kernel: resblock_forward.3
= control target key start
LH: loop header
LB: loop body
LE: loop exit
PB: predicated region body
PF: predicated region fallthrough
CT: control target
= control target key end

     0   :  { %s5833_s15 = smov 0   ;;  %s7016_s0 = inlined_call_operand.vmem [shape: bf16[2048,1152], index: 0, kind: input, shape index: {}]   ;;  %s7017_s1 = inlined_call_operand.vmem [shape: bf16[1152,128], index: 1, kind: input, shape index: {}]   ;;  %s7018_s2 = inlined_call_operand.vmem [shape: f32[1,128], index: 2, kind: input, shape index: {}]   ;;  %s7019_s3 = inlined_call_operand.vmem [shape: f32[2048,128], index: 3, kind: output, shape index: {0}]   ;;  %s7020_s4 = inlined_call_operand.vmem [shape: f32[4,2,128], index: 4, kind: output, shape index: {1}]  }
   0x1 LB: > { %s5839_s16 = sadd.s32 4294967295, %s5805_s15   ;;  %p4395_p0 = scmp.ge.s32.totalorder %s5805_s15, 1  ;;  %s5805_s15 = sphi %s5833_s15, %s15_s15  }
   0x2   : > { %p167_p1 = scmp.lt.s32.totalorder %s5805_s15, 5 }
   0x4   : > { %p168_p2 = pnand %p4395_p0, %p167_p1 }
   0x6   : > { %171 = sbr.rel (%p168_p2) target bundleno = 885 (0x375), region = 32 }
   0xd   : > { %v5310_v0 = vld [vmem:[%s7017_s1] sm:$0xff]   ;;  %v5807_v1 = vmov 0   ;;  %v5312_v3 = vld [vmem:[%s7017_s1 + $0x8] sm:$0xff]   ;;  %v5314_v5 = vld [vmem:[%s7017_s1 + $0x10] sm:$0xff]   ;;  %s4396_s11 = sshll.u32 %s5839_s16, 6  ;;  %p211_p4 = scmp.lt.s32.totalorder %s5839_s16, 3 }
   0xe   : > { %2591 = vmatprep.subr.bf16.mxu1 %v5807_v1  ;;  %2880 = vmatprep.subr.bf16.mxu0 %v5807_v1  ;;  %v5851_v2 = vld [vmem:[%s7017_s1 + $0x80] sm:$0xff]   ;;  %v5861_v4 = vld [vmem:[%s7017_s1 + $0x88] sm:$0xff]   ;;  %v5872_v6 = vld [vmem:[%s7017_s1 + $0x90] sm:$0xff]   ;;  %p199_p3 = scmp.lt.s32.totalorder %s4396_s11, 255 }
   0xf   : > { %2592 = vmatpush1.bf16.msra.mxu1 %v5310_v0  ;;  %2881 = vmatpush1.bf16.msra.mxu0 %v5851_v2  ;;  %v5316_v7 = vld [vmem:[%s7017_s1 + $0x18] sm:$0xff]   ;;  %v5318_v9 = vld [vmem:[%s7017_s1 + $0x20] sm:$0xff]   ;;  %v5320_v11 = vld [vmem:[%s7017_s1 + $0x28] sm:$0xff]   ;;  %s7058_s16 = smov (!%p211_p4, %s5839_s16), 3 }
  0x10   : > { %2593 = vmatprep.subr.bf16.mxu1 %v5807_v1  ;;  %2882 = vmatprep.subr.bf16.mxu0 %v5807_v1  ;;  %v5883_v8 = vld [vmem:[%s7017_s1 + $0x98] sm:$0xff]   ;;  %v5894_v10 = vld [vmem:[%s7017_s1 + $0xa0] sm:$0xff]   ;;  %v5906_v12 = vld [vmem:[%s7017_s1 + $0xa8] sm:$0xff]   ;;  %s7056_s11 = smov (!%p199_p3, %s4396_s11), 255  ;;  %s4400_s13 = sshll.u32 %s7058_s16, 1 }
  0x11   : > { %v5322_v13 = vld [vmem:[%s7017_s1 + $0x30] sm:$0xff]   ;;  %v5324_v15 = vld [vmem:[%s7017_s1 + $0x38] sm:$0xff]   ;;  %s5300_s24 = smul.u32 36, %s7056_s11  ;;  %v5326_v17 = vld [vmem:[%s7017_s1 + $0x40] sm:$0xff]   ;;  %s214_s18 = scalar_lea.vmem %s7020_s4, %s4400_s13 }
  0x12   : > { %v5919_v14 = vld [vmem:[%s7017_s1 + $0xb0] sm:$0xff]   ;;  %v5931_v16 = vld [vmem:[%s7017_s1 + $0xb8] sm:$0xff]   ;;  %v5947_v18 = vld [vmem:[%s7017_s1 + $0xc0] sm:$0xff]  }
  0x13   : > { %2594 = vmatpush1.bf16.msra.mxu1 %v5312_v3  ;;  %2883 = vmatpush1.bf16.msra.mxu0 %v5861_v4  ;;  %s5940_s5 = scalar_lea.vmem %s7016_s0, %s5300_s24  ;;  %v5328_v20 = vld [vmem:[%s7017_s1 + $0x48] sm:$0xff]   ;;  %v5330_v23 = vld [vmem:[%s7017_s1 + $0x50] sm:$0xff]   ;;  %v5332_v25 = vld [vmem:[%s7017_s1 + $0x58] sm:$0xff]  }
  0x14   : > { %2595 = vmatprep.subr.bf16.mxu1 %v5807_v1  ;;  %2884 = vmatprep.subr.bf16.mxu0 %v5807_v1  ;;  %v5344_v19 = vld [vmem:[%s5940_s5 + $0x4] ss:$36 sps:$4 sm:$0xff]   ;;  %v5347_v21 = vld [vmem:[%s5940_s5 + $0xc] ss:$36 sps:$4 sm:$0xff]   ;;  %v5982_v26 = vld [vmem:[%s7017_s1 + $0xd8] sm:$0xff]  }
  0x15   : > { %v5960_v22 = vld [vmem:[%s7017_s1 + $0xc8] sm:$0xff]   ;;  %2623 = vmatprep.mubr.bf16.mxu1 %v5344_v19  ;;  %2912 = vmatprep.mubr.bf16.mxu0 %v5347_v21  ;;  %v5971_v24 = vld [vmem:[%s7017_s1 + $0xd0] sm:$0xff]   ;;  %v5334_v27 = vld [vmem:[%s7017_s1 + $0x60] sm:$0xff]  }
  0x16   : > { %v5993_v28 = vld [vmem:[%s7017_s1 + $0xe0] sm:$0xff]   ;;  %v5336_v29 = vld [vmem:[%s7017_s1 + $0x68] sm:$0xff]   ;;  %v5338_v31 = vld [vmem:[%s7017_s1 + $0x70] sm:$0xff]  }
  0x17   : > { %2596 = vmatpush1.bf16.msra.mxu1 %v5314_v5  ;;  %2885 = vmatpush1.bf16.msra.mxu0 %v5872_v6  ;;  %v6004_v30 = vld [vmem:[%s7017_s1 + $0xe8] sm:$0xff]   ;;  %v6015_v32 = vld [vmem:[%s7017_s1 + $0xf0] sm:$0xff]   ;;  %v5340_v33 = vld [vmem:[%s7017_s1 + $0x78] sm:$0xff]  }
  0x18   : > { %2597 = vmatprep.subr.bf16.mxu1 %v5807_v1  ;;  %2886 = vmatprep.subr.bf16.mxu0 %v5807_v1  ;;  %v6026_v34 = vld [vmem:[%s7017_s1 + $0xf8] sm:$0xff]   ;;  %v5342_v35 = vld [vmem:[%s5940_s5] ss:$36 sps:$4 sm:$0xff]   ;;  %v5345_v36 = vld [vmem:[%s5940_s5 + $0x8] ss:$36 sps:$4 sm:$0xff]  }
  0x19   : > { %v5348_v37 = vld [vmem:[%s7017_s1 + $0x100] sm:$0xff]   ;;  %v5350_v38 = vld [vmem:[%s5940_s5 + $0x4c] ss:$36 sps:$4 sm:$0xff]   ;;  %v5352_v39 = vld [vmem:[%s5940_s5 + $0x54] ss:$36 sps:$4 sm:$0xff]  }
  0x1a   : > { %v5349_v40 = vld [vmem:[%s7017_s1 + $0x108] sm:$0xff]   ;;  %v5355_v42 = vld [vmem:[%s5940_s5 + $0x50] ss:$36 sps:$4 sm:$0xff]   ;;  %v5360_v45 = vld [vmem:[%s5940_s5 + $0x9c] ss:$36 sps:$4 sm:$0xff]  }
  0x1b   : > { %2598 = vmatpush1.bf16.msra.mxu1 %v5316_v7  ;;  %2887 = vmatpush1.bf16.msra.mxu0 %v5883_v8  ;;  %v5354_v41 = vld [vmem:[%s5940_s5 + $0x48] ss:$36 sps:$4 sm:$0xff]   ;;  %v5358_v43 = vld [vmem:[%s5940_s5 + $0x94] ss:$36 sps:$4 sm:$0xff]   ;;  %v5364_v49 = vld [vmem:[%s7017_s1 + $0x120] sm:$0xff]  }
  0x1c   : > { %2599 = vmatprep.subr.bf16.mxu1 %v5807_v1  ;;  %2888 = vmatprep.subr.bf16.mxu0 %v5807_v1  ;;  %v5356_v44 = vld [vmem:[%s7017_s1 + $0x110] sm:$0xff]   ;;  %v5357_v46 = vld [vmem:[%s7017_s1 + $0x118] sm:$0xff]   ;;  %v5368_v51 = vld [vmem:[%s5940_s5 + $0xe4] ss:$36 sps:$4 sm:$0xff]  }
  0x1d   : > { %v5362_v47 = vld [vmem:[%s5940_s5 + $0x90] ss:$36 sps:$4 sm:$0xff]   ;;  %v5363_v48 = vld [vmem:[%s5940_s5 + $0x98] ss:$36 sps:$4 sm:$0xff]   ;;  %v5365_v52 = vld [vmem:[%s7017_s1 + $0x128] sm:$0xff]  }
  0x1e   : > { %v5366_v50 = vld [vmem:[%s5940_s5 + $0xdc] ss:$36 sps:$4 sm:$0xff]   ;;  %v5374_v55 = vld [vmem:[%s5940_s5 + $0x124] ss:$36 sps:$4 sm:$0xff]   ;;  %v5372_v56 = vld [vmem:[%s7017_s1 + $0x130] sm:$0xff]  }
  0x1f   : > { %2600 = vmatpush1.bf16.msra.mxu1 %v5318_v9  ;;  %2889 = vmatpush1.bf16.msra.mxu0 %v5894_v10  ;;  %v5370_v53 = vld [vmem:[%s5940_s5 + $0xd8] ss:$36 sps:$4 sm:$0xff]   ;;  %v5371_v54 = vld [vmem:[%s5940_s5 + $0xe0] ss:$36 sps:$4 sm:$0xff]   ;;  %v5376_v57 = vld [vmem:[%s5940_s5 + $0x12c] ss:$36 sps:$4 sm:$0xff]  }
  0x20   : > { %2601 = vmatprep.subr.bf16.mxu1 %v5807_v1  ;;  %2890 = vmatprep.subr.bf16.mxu0 %v5807_v1  ;;  %v5373_v58 = vld [vmem:[%s7017_s1 + $0x138] sm:$0xff]   ;;  %v5378_v59 = vld [vmem:[%s5940_s5 + $0x120] ss:$36 sps:$4 sm:$0xff]   ;;  %v5379_v60 = vld [vmem:[%s5940_s5 + $0x128] ss:$36 sps:$4 sm:$0xff]  }
  0x21   : > { %v5380_v61 = vld [vmem:[%s7017_s1 + $0x140] sm:$0xff]   ;;  %v5382_v62 = vld [vmem:[%s5940_s5 + $0x16c] ss:$36 sps:$4 sm:$0xff]   ;;  %v5384_v63 = vld [vmem:[%s5940_s5 + $0x174] ss:$36 sps:$4 sm:$0xff]  }
  0x22   : > { %v5381_v0 = vld [vmem:[%s7017_s1 + $0x148] sm:$0xff]   ;;  %v5387_v3 = vld [vmem:[%s5940_s5 + $0x170] ss:$36 sps:$4 sm:$0xff]   ;;  %v5389_v7 = vld [vmem:[%s7017_s1 + $0x158] sm:$0xff]  }
  0x23   : > { %2602 = vmatpush1.bf16.msra.mxu1 %v5320_v11  ;;  %2891 = vmatpush1.bf16.msra.mxu0 %v5906_v12  ;;  %v5388_v5 = vld [vmem:[%s7017_s1 + $0x150] sm:$0xff]   ;;  %v5395_v9 = vld [vmem:[%s5940_s5 + $0x1b8] ss:$36 sps:$4 sm:$0xff]  }
  0x24   : > { %2603 = vmatprep.subr.bf16.mxu1 %v5807_v1  ;;  %2892 = vmatprep.subr.bf16.mxu0 %v5807_v1  ;;  %v5398_v11 = vld [vmem:[%s5940_s5 + $0x1fc] ss:$36 sps:$4 sm:$0xff]   ;;  %v5408_v21 = vld [vmem:[%s5940_s5 + $0x10] ss:$36 sps:$4 sm:$0xff]  }
  0x25   : > { %v5405_v19 = vld [vmem:[%s7017_s1 + $0x178] sm:$0xff]  }
  0x27   : > { %2604 = vmatpush1.bf16.msra.mxu1 %v5322_v13  ;;  %2893 = vmatpush1.bf16.msra.mxu0 %v5919_v14  ;;  %v5397_v13 = vld [vmem:[%s7017_s1 + $0x168] sm:$0xff]  }
  0x28   : > { %2605 = vmatprep.subr.bf16.mxu1 %v5807_v1  ;;  %2894 = vmatprep.subr.bf16.mxu0 %v5807_v1 }
  0x2b   : > { %2606 = vmatpush1.bf16.msra.mxu1 %v5324_v15  ;;  %2895 = vmatpush1.bf16.msra.mxu0 %v5931_v16  ;;  %v5403_v15 = vld [vmem:[%s5940_s5 + $0x200] ss:$36 sps:$4 sm:$0xff]  }
  0x2c   : > { %2607 = vmatprep.subr.bf16.mxu1 %v5807_v1  ;;  %2896 = vmatprep.subr.bf16.mxu0 %v5807_v1 }
  0x2f   : > { %2608 = vmatpush1.bf16.msra.mxu1 %v5326_v17  ;;  %2897 = vmatpush1.bf16.msra.mxu0 %v5947_v18  ;;  %v5404_v17 = vld [vmem:[%s7017_s1 + $0x170] sm:$0xff]  }
  0x30   : > { %2609 = vmatprep.subr.bf16.mxu1 %v5807_v1  ;;  %2898 = vmatprep.subr.bf16.mxu0 %v5807_v1 }
  0x33   : > { %2610 = vmatpush1.bf16.msra.mxu1 %v5328_v20  ;;  %2899 = vmatpush1.bf16.msra.mxu0 %v5960_v22  ;;  %v5411_v20 = vld [vmem:[%s5940_s5 + $0x240] ss:$36 sps:$4 sm:$0xff]  }
  0x34   : > { %2611 = vmatprep.subr.bf16.mxu1 %v5807_v1  ;;  %2900 = vmatprep.subr.bf16.mxu0 %v5807_v1 }
  0x37   : > { %2612 = vmatpush1.bf16.msra.mxu1 %v5330_v23  ;;  %2901 = vmatpush1.bf16.msra.mxu0 %v5971_v24  ;;  %v5412_v23 = vld [vmem:[%s7017_s1 + $0x180] sm:$0xff]  }
  0x38   : > { %2613 = vmatprep.subr.bf16.mxu1 %v5807_v1  ;;  %2902 = vmatprep.subr.bf16.mxu0 %v5807_v1 }
  0x3b   : > { %2614 = vmatpush1.bf16.msra.mxu1 %v5332_v25  ;;  %2903 = vmatpush1.bf16.msra.mxu0 %v5982_v26  ;;  %v5417_v25 = vld [vmem:[%s5940_s5 + $0x288] ss:$36 sps:$4 sm:$0xff]  }
  0x3c   : > { %2615 = vmatprep.subr.bf16.mxu1 %v5807_v1  ;;  %2904 = vmatprep.subr.bf16.mxu0 %v5807_v1 }
  0x3f   : > { %2616 = vmatpush1.bf16.msra.mxu1 %v5334_v27  ;;  %2905 = vmatpush1.bf16.msra.mxu0 %v5993_v28  ;;  %v5418_v27 = vld [vmem:[%s5940_s5 + $0x58] ss:$36 sps:$4 sm:$0xff]  }
  0x40   : > { %2617 = vmatprep.subr.bf16.mxu1 %v5807_v1  ;;  %2906 = vmatprep.subr.bf16.mxu0 %v5807_v1 }
  0x43   : > { %2618 = vmatpush1.bf16.msra.mxu1 %v5336_v29  ;;  %2907 = vmatpush1.bf16.msra.mxu0 %v6004_v30  ;;  %v5421_v29 = vld [vmem:[%s5940_s5 + $0xa4] ss:$36 sps:$4 sm:$0xff]  }
  0x44   : > { %2619 = vmatprep.subr.bf16.mxu1 %v5807_v1  ;;  %2908 = vmatprep.subr.bf16.mxu0 %v5807_v1 }
  0x47   : > { %2620 = vmatpush1.bf16.msra.mxu1 %v5338_v31  ;;  %2909 = vmatpush1.bf16.msra.mxu0 %v6015_v32  ;;  %v5423_v31 = vld [vmem:[%s5940_s5 + $0x2d0] ss:$36 sps:$4 sm:$0xff]  }
  0x48   : > { %2621 = vmatprep.subr.bf16.mxu1 %v5807_v1  ;;  %2910 = vmatprep.subr.bf16.mxu0 %v5807_v1 }
  0x4b   : > { %2622 = vmatpush1.bf16.msra.mxu1 %v5340_v33  ;;  %2911 = vmatpush1.bf16.msra.mxu0 %v6026_v34  ;;  %v5424_v33 = vld [vmem:[%s5940_s5 + $0xa0] ss:$36 sps:$4 sm:$0xff]  }
  0x4c   : > { %4884 = vmatprep.subr.bf16.mxu1 %v5807_v1  ;;  %3169 = vmatprep.subr.bf16.mxu0 %v5807_v1 }
  0x4e   : > { %2624 = vmatmul.mubr.bf16.vlgmr.msra.gmra.mrb[0].mxu1 %v5342_v35  ;;  %2913 = vmatmul.mubr.bf16.vlgmr.msra.gmra.mrb[0].mxu0 %v5345_v36  ;;  %v5428_v35 = vld [vmem:[%s5940_s5 + $0xec] ss:$36 sps:$4 sm:$0xff]   ;;  %v5464_v36 = vld [vmem:[%s7017_s1 + $0x1a0] sm:$0xff]  }
  0x4f   : > { %4900 = vmatpush1.bf16.msra.mxu1 %v5851_v2  ;;  %3170 = vmatpush1.bf16.msra.mxu0 %v5348_v37  ;;  %v5386_v2 = vld [vmem:[%s5940_s5 + $0x168] ss:$36 sps:$4 sm:$0xff]  }
  0x50   : > { %2631 = vmatprep.mubr.bf16.mxu1 %v5350_v38  ;;  %3171 = vmatprep.subr.bf16.mxu0 %v5807_v1  ;;  %v5477_v37 = vld [vmem:[%s7017_s1 + $0x1a8] sm:$0xff]   ;;  %v5430_v38 = vld [vmem:[%s5940_s5 + $0x318] ss:$36 sps:$4 sm:$0xff]  }
  0x51   : > { %2920 = vmatprep.mubr.bf16.mxu0 %v5352_v39  ;;  %4885 = vmatprep.subr.bf16.mxu1 %v5807_v1  ;;  %v5431_v39 = vld [vmem:[%s5940_s5 + $0xe8] ss:$36 sps:$4 sm:$0xff]  }
  0x53   : > { %4901 = vmatpush1.bf16.msra.mxu1 %v5861_v4  ;;  %3172 = vmatpush1.bf16.msra.mxu0 %v5349_v40  ;;  %v5390_v4 = vld [vmem:[%s5940_s5 + $0x1b4] ss:$36 sps:$4 sm:$0xff]   ;;  %v5432_v40 = vld [vmem:[%s5940_s5 + $0x364] ss:$36 sps:$4 sm:$0xff]  }
  0x54   : > { %4886 = vmatprep.subr.bf16.mxu1 %v5807_v1  ;;  %3173 = vmatprep.subr.bf16.mxu0 %v5807_v1 }
  0x56   : > { %2632 = vmatmul.mubr.bf16.gmra.mrb[4].mxu1 %v5354_v41  ;;  %2921 = vmatmul.mubr.bf16.gmra.mrb[4].mxu0 %v5355_v42  ;;  %v5434_v41 = vld [vmem:[%s5940_s5 + $0x134] ss:$36 sps:$4 sm:$0xff]  }
  0x57   : > { %2639 = vmatprep.mubr.bf16.mxu1 %v5358_v43  ;;  %3174 = vmatpush1.bf16.msra.mxu0 %v5356_v44  ;;  %v5490_v42 = vld [vmem:[%s7017_s1 + $0x1b0] sm:$0xff]   ;;  %v5503_v43 = vld [vmem:[%s7017_s1 + $0x1b8] sm:$0xff]   ;;  %v5436_v44 = vld [vmem:[%s5940_s5 + $0x360] ss:$36 sps:$4 sm:$0xff]  }
  0x58   : > { %2928 = vmatprep.mubr.bf16.mxu0 %v5360_v45  ;;  %3175 = vmatprep.subr.bf16.mxu0 %v5807_v1  ;;  %v5437_v45 = vld [vmem:[%s5940_s5 + $0x130] ss:$36 sps:$4 sm:$0xff]  }
  0x59   : > { %4902 = vmatpush1.bf16.msra.mxu1 %v5872_v6  ;;  %v5392_v6 = vld [vmem:[%s5940_s5 + $0x1bc] ss:$36 sps:$4 sm:$0xff]  }
  0x5a   : > { %4887 = vmatprep.subr.bf16.mxu1 %v5807_v1 }
  0x5b   : > { %3176 = vmatpush1.bf16.msra.mxu0 %v5357_v46  ;;  %v5439_v46 = vld [vmem:[%s5940_s5 + $0x3ac] ss:$36 sps:$4 sm:$0xff]  }
  0x5c   : > { %3177 = vmatprep.subr.bf16.mxu0 %v5807_v1 }
  0x5d   : > { %4903 = vmatpush1.bf16.msra.mxu1 %v5883_v8  ;;  %v5394_v8 = vld [vmem:[%s5940_s5 + $0x1b0] ss:$36 sps:$4 sm:$0xff]  }
  0x5e   : > { %2640 = vmatmul.mubr.bf16.gmra.mrb[8].mxu1 %v5362_v47  ;;  %4888 = vmatprep.subr.bf16.mxu1 %v5807_v1  ;;  %v5441_v47 = vld [vmem:[%s5940_s5 + $0x17c] ss:$36 sps:$4 sm:$0xff]  }
  0x5f   : > { %2929 = vmatmul.mubr.bf16.gmra.mrb[8].mxu0 %v5363_v48  ;;  %2647 = vmatprep.mubr.bf16.mxu1 %v5366_v50  ;;  %v5516_v48 = vld [vmem:[%s7017_s1 + $0x1c0] sm:$0xff]   ;;  %v5443_v50 = vld [vmem:[%s5940_s5 + $0x3a8] ss:$36 sps:$4 sm:$0xff]  }
  0x60   : > { %3178 = vmatpush1.bf16.msra.mxu0 %v5364_v49  ;;  %2936 = vmatprep.mubr.bf16.mxu0 %v5368_v51  ;;  %v5529_v49 = vld [vmem:[%s7017_s1 + $0x1c8] sm:$0xff]   ;;  %v5444_v51 = vld [vmem:[%s5940_s5 + $0x178] ss:$36 sps:$4 sm:$0xff]  }
  0x61   : > { %3179 = vmatprep.subr.bf16.mxu0 %v5807_v1  ;;  %4904 = vmatpush1.bf16.msra.mxu1 %v5894_v10  ;;  %v5396_v10 = vld [vmem:[%s7017_s1 + $0x160] sm:$0xff]  }
  0x62   : > { %4889 = vmatprep.subr.bf16.mxu1 %v5807_v1 }
  0x64   : > { %3180 = vmatpush1.bf16.msra.mxu0 %v5365_v52  ;;  %v5445_v52 = vld [vmem:[%s5940_s5 + $0x3f4] ss:$36 sps:$4 sm:$0xff]  }
  0x65   : > { %3181 = vmatprep.subr.bf16.mxu0 %v5807_v1  ;;  %4905 = vmatpush1.bf16.msra.mxu1 %v5906_v12  ;;  %v5400_v12 = vld [vmem:[%s5940_s5 + $0x204] ss:$36 sps:$4 sm:$0xff]  }
  0x66   : > { %2648 = vmatmul.mubr.bf16.gmra.mrb[12].mxu1 %v5370_v53  ;;  %4890 = vmatprep.subr.bf16.mxu1 %v5807_v1  ;;  %v5447_v53 = vld [vmem:[%s5940_s5 + $0x1c4] ss:$36 sps:$4 sm:$0xff]  }
  0x67   : > { %2937 = vmatmul.mubr.bf16.gmra.mrb[12].mxu0 %v5371_v54  ;;  %2655 = vmatprep.mubr.bf16.mxu1 %v5374_v55  ;;  %v5542_v54 = vld [vmem:[%s7017_s1 + $0x1d0] sm:$0xff]  }
  0x68   : > { %3182 = vmatpush1.bf16.msra.mxu0 %v5372_v56  ;;  %2944 = vmatprep.mubr.bf16.mxu0 %v5376_v57  ;;  %v5449_v55 = vld [vmem:[%s5940_s5 + $0x3f0] ss:$36 sps:$4 sm:$0xff]   ;;  %v5450_v56 = vld [vmem:[%s5940_s5 + $0x1c0] ss:$36 sps:$4 sm:$0xff]  }
  0x69   : > { %3183 = vmatprep.subr.bf16.mxu0 %v5807_v1  ;;  %4906 = vmatpush1.bf16.msra.mxu1 %v5919_v14  ;;  %v5402_v14 = vld [vmem:[%s5940_s5 + $0x1f8] ss:$36 sps:$4 sm:$0xff]  }
  0x6a   : > { %4891 = vmatprep.subr.bf16.mxu1 %v5807_v1  ;;  %v5452_v57 = vld [vmem:[%s5940_s5 + $0x43c] ss:$36 sps:$4 sm:$0xff]  }
  0x6c   : > { %3184 = vmatpush1.bf16.msra.mxu0 %v5373_v58  ;;  %v5454_v58 = vld [vmem:[%s5940_s5 + $0x20c] ss:$36 sps:$4 sm:$0xff]  }
  0x6d   : > { %3185 = vmatprep.subr.bf16.mxu0 %v5807_v1  ;;  %4907 = vmatpush1.bf16.msra.mxu1 %v5931_v16  ;;  %v5406_v16 = vld [vmem:[%s5940_s5 + $0x244] ss:$36 sps:$4 sm:$0xff]  }
  0x6e   : > { %2656 = vmatmul.mubr.bf16.gmra.mrb[16].mxu1 %v5378_v59  ;;  %4892 = vmatprep.subr.bf16.mxu1 %v5807_v1  ;;  %v5456_v59 = vld [vmem:[%s5940_s5 + $0x438] ss:$36 sps:$4 sm:$0xff]  }
  0x6f   : > { %2945 = vmatmul.mubr.bf16.gmra.mrb[16].mxu0 %v5379_v60  ;;  %2663 = vmatprep.mubr.bf16.mxu1 %v5382_v62  ;;  %v5457_v60 = vld [vmem:[%s5940_s5 + $0x208] ss:$36 sps:$4 sm:$0xff]   ;;  %v5555_v62 = vld [vmem:[%s7017_s1 + $0x1d8] sm:$0xff]  }
  0x70   : > { %3186 = vmatpush1.bf16.msra.mxu0 %v5380_v61  ;;  %2952 = vmatprep.mubr.bf16.mxu0 %v5384_v63  ;;  %v5458_v61 = vld [vmem:[%s5940_s5 + $0x484] ss:$36 sps:$4 sm:$0xff]   ;;  %v5460_v63 = vld [vmem:[%s5940_s5 + $0x254] ss:$36 sps:$4 sm:$0xff]  }
  0x71   : > { %3187 = vmatprep.subr.bf16.mxu0 %v5807_v1  ;;  %4908 = vmatpush1.bf16.msra.mxu1 %v5947_v18  ;;  %v5410_v18 = vld [vmem:[%s5940_s5 + $0x14] ss:$36 sps:$4 sm:$0xff]  }
  0x72   : > { %4893 = vmatprep.subr.bf16.mxu1 %v5807_v1 }
  0x74   : > { %3188 = vmatpush1.bf16.msra.mxu0 %v5381_v0  ;;  %v5462_v0 = vld [vmem:[%s5940_s5 + $0x480] ss:$36 sps:$4 sm:$0xff]  }
  0x75   : > { %3189 = vmatprep.subr.bf16.mxu0 %v5807_v1  ;;  %4909 = vmatpush1.bf16.msra.mxu1 %v5960_v22  ;;  %v5413_v22 = vld [vmem:[%s5940_s5 + $0x28c] ss:$36 sps:$4 sm:$0xff]  }
  0x76   : > { %2664 = vmatmul.mubr.bf16.gmra.mrb[20].mxu1 %v5386_v2  ;;  %4894 = vmatprep.subr.bf16.mxu1 %v5807_v1  ;;  %v5463_v2 = vld [vmem:[%s5940_s5 + $0x250] ss:$36 sps:$4 sm:$0xff]  }
  0x77   : > { %2953 = vmatmul.mubr.bf16.gmra.mrb[20].mxu0 %v5387_v3  ;;  %2671 = vmatprep.mubr.bf16.mxu1 %v5390_v4  ;;  %v5465_v3 = vld [vmem:[%s5940_s5 + $0x4cc] ss:$36 sps:$4 sm:$0xff]   ;;  %v5467_v4 = vld [vmem:[%s5940_s5 + $0x29c] ss:$36 sps:$4 sm:$0xff]  }
  0x78   : > { %3190 = vmatpush1.bf16.msra.mxu0 %v5388_v5  ;;  %2960 = vmatprep.mubr.bf16.mxu0 %v5392_v6  ;;  %v6246_v5 = vld [vmem:[%s7017_s1 + $0x200] sm:$0xff]   ;;  %v5469_v6 = vld [vmem:[%s5940_s5 + $0x4c8] ss:$36 sps:$4 sm:$0xff]  }
  0x79   : > { %3191 = vmatprep.subr.bf16.mxu0 %v5807_v1  ;;  %4910 = vmatpush1.bf16.msra.mxu1 %v5971_v24  ;;  %v5415_v24 = vld [vmem:[%s5940_s5 + $0x5c] ss:$36 sps:$4 sm:$0xff]  }
  0x7a   : > { %4895 = vmatprep.subr.bf16.mxu1 %v5807_v1 }
  0x7c   : > { %3192 = vmatpush1.bf16.msra.mxu0 %v5389_v7  ;;  %v5470_v7 = vld [vmem:[%s5940_s5 + $0x298] ss:$36 sps:$4 sm:$0xff]  }
  0x7d   : > { %3193 = vmatprep.subr.bf16.mxu0 %v5807_v1  ;;  %4911 = vmatpush1.bf16.msra.mxu1 %v5982_v26  ;;  %v5425_v26 = vld [vmem:[%s7017_s1 + $0x188] sm:$0xff]  }
  0x7e   : > { %2672 = vmatmul.mubr.bf16.gmra.mrb[24].mxu1 %v5394_v8  ;;  %4896 = vmatprep.subr.bf16.mxu1 %v5807_v1  ;;  %v5471_v8 = vld [vmem:[%s5940_s5 + $0x514] ss:$36 sps:$4 sm:$0xff]  }
  0x7f   : > { %2961 = vmatmul.mubr.bf16.gmra.mrb[24].mxu0 %v5395_v9  ;;  %2679 = vmatprep.mubr.bf16.mxu1 %v5398_v11  ;;  %v5569_v9 = vld [vmem:[%s7017_s1 + $0x1e0] sm:$0xff]   ;;  %v5475_v11 = vld [vmem:[%s5940_s5 + $0x510] ss:$36 sps:$4 sm:$0xff]  }
  0x80   : > { %3194 = vmatpush1.bf16.msra.mxu0 %v5396_v10  ;;  %2968 = vmatprep.mubr.bf16.mxu0 %v5400_v12  ;;  %v5473_v10 = vld [vmem:[%s5940_s5 + $0x2e4] ss:$36 sps:$4 sm:$0xff]  }
  0x81   : > { %3195 = vmatprep.subr.bf16.mxu0 %v5807_v1  ;;  %4912 = vmatpush1.bf16.msra.mxu1 %v5993_v28  ;;  %v5419_v28 = vld [vmem:[%s5940_s5 + $0x2d4] ss:$36 sps:$4 sm:$0xff]   ;;  %v5476_v12 = vld [vmem:[%s5940_s5 + $0x2e0] ss:$36 sps:$4 sm:$0xff]  }
  0x82   : > { %4897 = vmatprep.subr.bf16.mxu1 %v5807_v1 }
  0x84   : > { %3196 = vmatpush1.bf16.msra.mxu0 %v5397_v13  ;;  %v5478_v13 = vld [vmem:[%s5940_s5 + $0x55c] ss:$36 sps:$4 sm:$0xff]  }
  0x85   : > { %3197 = vmatprep.subr.bf16.mxu0 %v5807_v1  ;;  %4913 = vmatpush1.bf16.msra.mxu1 %v6004_v30  ;;  %v5438_v30 = vld [vmem:[%s7017_s1 + $0x190] sm:$0xff]  }
  0x86   : > { %2680 = vmatmul.mubr.bf16.gmra.mrb[28].mxu1 %v5402_v14  ;;  %4898 = vmatprep.subr.bf16.mxu1 %v5807_v1  ;;  %v5480_v14 = vld [vmem:[%s5940_s5 + $0x32c] ss:$36 sps:$4 sm:$0xff]  }
  0x87   : > { %2969 = vmatmul.mubr.bf16.gmra.mrb[28].mxu0 %v5403_v15  ;;  %2687 = vmatprep.mubr.bf16.mxu1 %v5406_v16  ;;  %v5582_v15 = vld [vmem:[%s7017_s1 + $0x1e8] sm:$0xff]   ;;  %v5482_v16 = vld [vmem:[%s5940_s5 + $0x558] ss:$36 sps:$4 sm:$0xff]  }
  0x88   : > { %3198 = vmatpush1.bf16.msra.mxu0 %v5404_v17  ;;  %3201 = vmatprep.mubr.bf16.mxu0 %v5410_v18  ;;  %v5483_v17 = vld [vmem:[%s5940_s5 + $0x328] ss:$36 sps:$4 sm:$0xff]  }
  0x89   : > { %3199 = vmatprep.subr.bf16.mxu0 %v5807_v1  ;;  %4914 = vmatpush1.bf16.msra.mxu1 %v6015_v32  ;;  %v5451_v32 = vld [vmem:[%s7017_s1 + $0x198] sm:$0xff]   ;;  %v5484_v18 = vld [vmem:[%s5940_s5 + $0x5a4] ss:$36 sps:$4 sm:$0xff]  }
  0x8a   : > { %4899 = vmatprep.subr.bf16.mxu1 %v5807_v1 }
  0x8c   : > { %3200 = vmatpush1.bf16.msra.mxu0 %v5405_v19  ;;  %v5486_v19 = vld [vmem:[%s5940_s5 + $0x374] ss:$36 sps:$4 sm:$0xff]  }
  0x8d   : > { %3458 = vmatprep.subr.bf16.mxu0 %v5807_v1  ;;  %4915 = vmatpush1.bf16.msra.mxu1 %v6026_v34  ;;  %v5426_v34 = vld [vmem:[%s5940_s5 + $0x31c] ss:$36 sps:$4 sm:$0xff]  }
  0x8e   : > { %2688 = vmatmul.mubr.bf16.gmra.mrb[32].mxu1 %v5411_v20  ;;  %4804 = vmatprep.subr.bf16.mxu1 %v6246_v5  ;;  %v5488_v20 = vld [vmem:[%s5940_s5 + $0x5a0] ss:$36 sps:$4 sm:$0xff]  }
  0x8f   : > { %3202 = vmatmul.mubr.bf16.vlgmr.msra.gmra.mrb[0].mxu0 %v5408_v21  ;;  %2695 = vmatprep.mubr.bf16.mxu1 %v5413_v22  ;;  %v5489_v21 = vld [vmem:[%s5940_s5 + $0x370] ss:$36 sps:$4 sm:$0xff]  }
  0x90   : > { %3459 = vmatpush1.bf16.msra.mxu0 %v5412_v23  ;;  %3209 = vmatprep.mubr.bf16.mxu0 %v5415_v24  ;;  %v5491_v22 = vld [vmem:[%s5940_s5 + $0x5ec] ss:$36 sps:$4 sm:$0xff]   ;;  %v5493_v23 = vld [vmem:[%s5940_s5 + $0x3bc] ss:$36 sps:$4 sm:$0xff]  }
  0x91   : > { %3460 = vmatprep.subr.bf16.mxu0 %v5807_v1  ;;  %v5596_v24 = vld [vmem:[%s7017_s1 + $0x1f0] sm:$0xff]  }
  0x94   : > { %3461 = vmatpush1.bf16.msra.mxu0 %v5425_v26  ;;  %v5496_v26 = vld [vmem:[%s5940_s5 + $0x3b8] ss:$36 sps:$4 sm:$0xff]  }
  0x95   : > { %3462 = vmatprep.subr.bf16.mxu0 %v5807_v1 }
  0x96   : > { %2696 = vmatmul.mubr.bf16.gmra.mrb[36].mxu1 %v5417_v25  ;;  %v5495_v25 = vld [vmem:[%s5940_s5 + $0x5e8] ss:$36 sps:$4 sm:$0xff]  }
  0x97   : > { %3210 = vmatmul.mubr.bf16.gmra.mrb[4].mxu0 %v5418_v27  ;;  %2703 = vmatprep.mubr.bf16.mxu1 %v5419_v28  ;;  %v5497_v27 = vld [vmem:[%s5940_s5 + $0x634] ss:$36 sps:$4 sm:$0xff]   ;;  %v5499_v28 = vld [vmem:[%s5940_s5 + $0x404] ss:$36 sps:$4 sm:$0xff]  }
  0x98   : > { %3217 = vmatprep.mubr.bf16.mxu0 %v5421_v29  ;;  %3463 = vmatpush1.bf16.msra.mxu0 %v5438_v30  ;;  %v5501_v29 = vld [vmem:[%s5940_s5 + $0x630] ss:$36 sps:$4 sm:$0xff]   ;;  %v5502_v30 = vld [vmem:[%s5940_s5 + $0x400] ss:$36 sps:$4 sm:$0xff]  }
  0x99   : > { %3464 = vmatprep.subr.bf16.mxu0 %v5807_v1 }
  0x9c   : > { %3465 = vmatpush1.bf16.msra.mxu0 %v5451_v32  ;;  %v5506_v32 = vld [vmem:[%s5940_s5 + $0x44c] ss:$36 sps:$4 sm:$0xff]  }
  0x9d   : > { %3466 = vmatprep.subr.bf16.mxu0 %v5807_v1 }
  0x9e   : > { %2704 = vmatmul.mubr.bf16.gmra.mrb[40].mxu1 %v5423_v31  ;;  %v5504_v31 = vld [vmem:[%s5940_s5 + $0x67c] ss:$36 sps:$4 sm:$0xff]  }
  0x9f   : > { %3218 = vmatmul.mubr.bf16.gmra.mrb[8].mxu0 %v5424_v33  ;;  %2711 = vmatprep.mubr.bf16.mxu1 %v5426_v34  ;;  %v5508_v33 = vld [vmem:[%s5940_s5 + $0x678] ss:$36 sps:$4 sm:$0xff]   ;;  %v5509_v34 = vld [vmem:[%s5940_s5 + $0x448] ss:$36 sps:$4 sm:$0xff]  }
  0xa0   : > { %3225 = vmatprep.mubr.bf16.mxu0 %v5428_v35  ;;  %3467 = vmatpush1.bf16.msra.mxu0 %v5464_v36  ;;  %v5510_v35 = vld [vmem:[%s5940_s5 + $0x6c4] ss:$36 sps:$4 sm:$0xff]   ;;  %v5512_v36 = vld [vmem:[%s5940_s5 + $0x494] ss:$36 sps:$4 sm:$0xff]  }
  0xa1   : > { %3468 = vmatprep.subr.bf16.mxu0 %v5807_v1 }
  0xa4   : > { %3469 = vmatpush1.bf16.msra.mxu0 %v5477_v37  ;;  %v5514_v37 = vld [vmem:[%s5940_s5 + $0x6c0] ss:$36 sps:$4 sm:$0xff]  }
  0xa5   : > { %3470 = vmatprep.subr.bf16.mxu0 %v5807_v1 }
  0xa6   : > { %2712 = vmatmul.mubr.bf16.gmra.mrb[44].mxu1 %v5430_v38  ;;  %v5515_v38 = vld [vmem:[%s5940_s5 + $0x490] ss:$36 sps:$4 sm:$0xff]  }
  0xa7   : > { %3226 = vmatmul.mubr.bf16.gmra.mrb[12].mxu0 %v5431_v39  ;;  %2719 = vmatprep.mubr.bf16.mxu1 %v5432_v40  ;;  %v5517_v39 = vld [vmem:[%s5940_s5 + $0x70c] ss:$36 sps:$4 sm:$0xff]   ;;  %v5519_v40 = vld [vmem:[%s5940_s5 + $0x4dc] ss:$36 sps:$4 sm:$0xff]  }
  0xa8   : > { %3233 = vmatprep.mubr.bf16.mxu0 %v5434_v41  ;;  %3471 = vmatpush1.bf16.msra.mxu0 %v5490_v42  ;;  %v5521_v41 = vld [vmem:[%s5940_s5 + $0x708] ss:$36 sps:$4 sm:$0xff]   ;;  %v5522_v42 = vld [vmem:[%s5940_s5 + $0x4d8] ss:$36 sps:$4 sm:$0xff]  }
  0xa9   : > { %3472 = vmatprep.subr.bf16.mxu0 %v5807_v1 }
  0xac   : > { %3473 = vmatpush1.bf16.msra.mxu0 %v5503_v43  ;;  %v5523_v43 = vld [vmem:[%s5940_s5 + $0x754] ss:$36 sps:$4 sm:$0xff]  }
  0xad   : > { %3474 = vmatprep.subr.bf16.mxu0 %v5807_v1 }
  0xae   : > { %2720 = vmatmul.mubr.bf16.gmra.mrb[48].mxu1 %v5436_v44  ;;  %v5525_v44 = vld [vmem:[%s5940_s5 + $0x524] ss:$36 sps:$4 sm:$0xff]  }
  0xaf   : > { %3234 = vmatmul.mubr.bf16.gmra.mrb[16].mxu0 %v5437_v45  ;;  %2727 = vmatprep.mubr.bf16.mxu1 %v5439_v46  ;;  %v5527_v45 = vld [vmem:[%s5940_s5 + $0x750] ss:$36 sps:$4 sm:$0xff]   ;;  %v5528_v46 = vld [vmem:[%s5940_s5 + $0x520] ss:$36 sps:$4 sm:$0xff]  }
  0xb0   : > { %3241 = vmatprep.mubr.bf16.mxu0 %v5441_v47  ;;  %3475 = vmatpush1.bf16.msra.mxu0 %v5516_v48  ;;  %v5530_v47 = vld [vmem:[%s5940_s5 + $0x79c] ss:$36 sps:$4 sm:$0xff]   ;;  %v5532_v48 = vld [vmem:[%s5940_s5 + $0x56c] ss:$36 sps:$4 sm:$0xff]  }
  0xb1   : > { %3476 = vmatprep.subr.bf16.mxu0 %v5807_v1 }
  0xb4   : > { %3477 = vmatpush1.bf16.msra.mxu0 %v5529_v49 }
  0xb5   : > { %3478 = vmatprep.subr.bf16.mxu0 %v5807_v1 }
  0xb6   : > { %2728 = vmatmul.mubr.bf16.gmra.mrb[52].mxu1 %v5443_v50 }
  0xb7   : > { %3242 = vmatmul.mubr.bf16.gmra.mrb[20].mxu0 %v5444_v51  ;;  %2735 = vmatprep.mubr.bf16.mxu1 %v5445_v52  ;;  %v5534_v51 = vld [vmem:[%s5940_s5 + $0x798] ss:$36 sps:$4 sm:$0xff]  }
  0xb8   : > { %3249 = vmatprep.mubr.bf16.mxu0 %v5447_v53  ;;  %3479 = vmatpush1.bf16.msra.mxu0 %v5542_v54  ;;  %v5535_v53 = vld [vmem:[%s5940_s5 + $0x568] ss:$36 sps:$4 sm:$0xff]  }
  0xb9   : > { %3480 = vmatprep.subr.bf16.mxu0 %v5807_v1  ;;  %v5536_v54 = vld [vmem:[%s5940_s5 + $0x7e4] ss:$36 sps:$4 sm:$0xff]  }
  0xbc   : > { %3481 = vmatpush1.bf16.msra.mxu0 %v5555_v62  ;;  %v5543_v62 = vld [vmem:[%s5940_s5 + $0x82c] ss:$36 sps:$4 sm:$0xff]  }
  0xbd   : > { %3482 = vmatprep.subr.bf16.mxu0 %v5807_v1 }
  0xbe   : > { %2736 = vmatmul.mubr.bf16.gmra.mrb[56].mxu1 %v5449_v55 }
  0xbf   : > { %3250 = vmatmul.mubr.bf16.gmra.mrb[24].mxu0 %v5450_v56  ;;  %2743 = vmatprep.mubr.bf16.mxu1 %v5452_v57  ;;  %v5538_v56 = vld [vmem:[%s5940_s5 + $0x5b4] ss:$36 sps:$4 sm:$0xff]  }
  0xc0   : > { %3257 = vmatprep.mubr.bf16.mxu0 %v5454_v58  ;;  %3483 = vmatpush1.bf16.msra.mxu0 %v5569_v9 }
  0xc1   : > { %3484 = vmatprep.subr.bf16.mxu0 %v5807_v1 }
  0xc4   : > { %3485 = vmatpush1.bf16.msra.mxu0 %v5582_v15  ;;  %v5554_v15 = vld [vmem:[%s5940_s5 + $0x640] ss:$36 sps:$4 sm:$0xff]  }
  0xc5   : > { %3486 = vmatprep.subr.bf16.mxu0 %v5807_v1 }
  0xc6   : > { %2744 = vmatmul.mubr.bf16.gmra.mrb[60].mxu1 %v5456_v59  ;;  %v5540_v59 = vld [vmem:[%s5940_s5 + $0x7e0] ss:$36 sps:$4 sm:$0xff]  }
  0xc7   : > { %3258 = vmatmul.mubr.bf16.gmra.mrb[28].mxu0 %v5457_v60  ;;  %2751 = vmatprep.mubr.bf16.mxu1 %v5458_v61  ;;  %v5541_v61 = vld [vmem:[%s5940_s5 + $0x5b0] ss:$36 sps:$4 sm:$0xff]  }
  0xc8   : > { %3265 = vmatprep.mubr.bf16.mxu0 %v5460_v63  ;;  %3487 = vmatpush1.bf16.msra.mxu0 %v5596_v24  ;;  %v5564_v24 = vld [vmem:[%s5940_s5 + $0x24c] ss:$36 sps:$4 sm:$0xff]  }
  0xc9   : > { %3488 = vmatprep.subr.bf16.mxu0 %v5807_v1  ;;  %v5610_v1 = vld [vmem:[%s7017_s1 + $0x1f8] sm:$0xff]  }
  0xcc   : > { %3489 = vmatpush1.bf16.msra.mxu0 %v5610_v1  ;;  %v5570_v1 = vld [vmem:[%s5940_s5 + $0x294] ss:$36 sps:$4 sm:$0xff]  }
  0xce   : > { %2752 = vmatmul.mubr.bf16.gmra.mrb[64].mxu1 %v5462_v0  ;;  %v5545_v0 = vld [vmem:[%s5940_s5 + $0x5fc] ss:$36 sps:$4 sm:$0xff]  }
  0xcf   : > { %3266 = vmatmul.mubr.bf16.gmra.mrb[32].mxu0 %v5463_v2  ;;  %2759 = vmatprep.mubr.bf16.mxu1 %v5465_v3 }
  0xd0   : > { %3273 = vmatprep.mubr.bf16.mxu0 %v5467_v4  ;;  %v5547_v4 = vld [vmem:[%s5940_s5 + $0x828] ss:$36 sps:$4 sm:$0xff]  }
  0xd6   : > { %2760 = vmatmul.mubr.bf16.gmra.mrb[68].mxu1 %v5469_v6 }
  0xd7   : > { %3274 = vmatmul.mubr.bf16.gmra.mrb[36].mxu0 %v5470_v7  ;;  %2767 = vmatprep.mubr.bf16.mxu1 %v5471_v8  ;;  %v5548_v7 = vld [vmem:[%s5940_s5 + $0x5f8] ss:$36 sps:$4 sm:$0xff]  }
  0xd8   : > { %3281 = vmatprep.mubr.bf16.mxu0 %v5473_v10  ;;  %v5549_v8 = vld [vmem:[%s5940_s5 + $0x874] ss:$36 sps:$4 sm:$0xff]   ;;  %v5551_v10 = vld [vmem:[%s5940_s5 + $0x644] ss:$36 sps:$4 sm:$0xff]  }
  0xde   : > { %2768 = vmatmul.mubr.bf16.gmra.mrb[72].mxu1 %v5475_v11 }
  0xdf   : > { %3282 = vmatmul.mubr.bf16.gmra.mrb[40].mxu0 %v5476_v12  ;;  %2775 = vmatprep.mubr.bf16.mxu1 %v5478_v13  ;;  %v5553_v13 = vld [vmem:[%s5940_s5 + $0x870] ss:$36 sps:$4 sm:$0xff]  }
  0xe0   : > { %3289 = vmatprep.mubr.bf16.mxu0 %v5480_v14 }
  0xe6   : > { %2776 = vmatmul.mubr.bf16.gmra.mrb[76].mxu1 %v5482_v16  ;;  %v5556_v16 = vld [vmem:[%s5940_s5 + $0x8bc] ss:$36 sps:$4 sm:$0xff]  }
  0xe7   : > { %3290 = vmatmul.mubr.bf16.gmra.mrb[44].mxu0 %v5483_v17  ;;  %2783 = vmatprep.mubr.bf16.mxu1 %v5484_v18  ;;  %v5558_v18 = vld [vmem:[%s5940_s5 + $0x68c] ss:$36 sps:$4 sm:$0xff]  }
  0xe8   : > { %3297 = vmatprep.mubr.bf16.mxu0 %v5486_v19 }
  0xee   : > { %2784 = vmatmul.mubr.bf16.gmra.mrb[80].mxu1 %v5488_v20 }
  0xef   : > { %3298 = vmatmul.mubr.bf16.gmra.mrb[48].mxu0 %v5489_v21  ;;  %2791 = vmatprep.mubr.bf16.mxu1 %v5491_v22  ;;  %v5560_v21 = vld [vmem:[%s5940_s5 + $0x8b8] ss:$36 sps:$4 sm:$0xff]  }
  0xf0   : > { %3305 = vmatprep.mubr.bf16.mxu0 %v5493_v23  ;;  %v5561_v23 = vld [vmem:[%s5940_s5 + $0x688] ss:$36 sps:$4 sm:$0xff]  }
  0xf6   : > { %2792 = vmatmul.mubr.bf16.gmra.mrb[84].mxu1 %v5495_v25 }
  0xf7   : > { %3306 = vmatmul.mubr.bf16.gmra.mrb[52].mxu0 %v5496_v26  ;;  %2799 = vmatprep.mubr.bf16.mxu1 %v5497_v27  ;;  %v5565_v26 = vld [vmem:[%s5940_s5 + $0x6d4] ss:$36 sps:$4 sm:$0xff]  }
  0xf8   : > { %3313 = vmatprep.mubr.bf16.mxu0 %v5499_v28 }
  0xfe   : > { %2800 = vmatmul.mubr.bf16.gmra.mrb[88].mxu1 %v5501_v29  ;;  %v5562_v29 = vld [vmem:[%s5940_s5 + $0x248] ss:$36 sps:$4 sm:$0xff]  }
  0xff   : > { %3314 = vmatmul.mubr.bf16.gmra.mrb[56].mxu0 %v5502_v30  ;;  %2807 = vmatprep.mubr.bf16.mxu1 %v5504_v31  ;;  %v5567_v31 = vld [vmem:[%s5940_s5 + $0x6d0] ss:$36 sps:$4 sm:$0xff]  }
 0x100   : > { %3321 = vmatprep.mubr.bf16.mxu0 %v5506_v32 }
 0x106   : > { %2808 = vmatmul.mubr.bf16.gmra.mrb[92].mxu1 %v5508_v33  ;;  %v5572_v33 = vld [vmem:[%s5940_s5 + $0x71c] ss:$36 sps:$4 sm:$0xff]  }
 0x107   : > { %3322 = vmatmul.mubr.bf16.gmra.mrb[60].mxu0 %v5509_v34  ;;  %2815 = vmatprep.mubr.bf16.mxu1 %v5510_v35  ;;  %v5589_v34 = vld [vmem:[%s7017_s1 + $0x208] sm:$0xff]   ;;  %v5609_v35 = vld [vmem:[%s7017_s1 + $0x210] sm:$0xff]  }
 0x108   : > { %3329 = vmatprep.mubr.bf16.mxu0 %v5512_v36 }
 0x10e   : > { %2816 = vmatmul.mubr.bf16.gmra.mrb[96].mxu1 %v5514_v37 }
 0x10f   : > { %3330 = vmatmul.mubr.bf16.gmra.mrb[64].mxu0 %v5515_v38  ;;  %2823 = vmatprep.mubr.bf16.mxu1 %v5517_v39  ;;  %v5574_v38 = vld [vmem:[%s5940_s5 + $0x290] ss:$36 sps:$4 sm:$0xff]  }
 0x110   : > { %3337 = vmatprep.mubr.bf16.mxu0 %v5519_v40  ;;  %v5575_v40 = vld [vmem:[%s5940_s5 + $0x718] ss:$36 sps:$4 sm:$0xff]  }
 0x116   : > { %2824 = vmatmul.mubr.bf16.gmra.mrb[100].mxu1 %v5521_v41  ;;  %v5576_v41 = vld [vmem:[%s5940_s5 + $0x2dc] ss:$36 sps:$4 sm:$0xff]  }
 0x117   : > { %3338 = vmatmul.mubr.bf16.gmra.mrb[68].mxu0 %v5522_v42  ;;  %2831 = vmatprep.mubr.bf16.mxu1 %v5523_v43  ;;  %v5629_v43 = vld [vmem:[%s7017_s1 + $0x218] sm:$0xff]  }
 0x118   : > { %3345 = vmatprep.mubr.bf16.mxu0 %v5525_v44 }
 0x11e   : > { %2832 = vmatmul.mubr.bf16.gmra.mrb[104].mxu1 %v5527_v45  ;;  %v5648_v45 = vld [vmem:[%s7017_s1 + $0x220] sm:$0xff]  }
 0x11f   : > { %3346 = vmatmul.mubr.bf16.gmra.mrb[72].mxu0 %v5528_v46  ;;  %2839 = vmatprep.mubr.bf16.mxu1 %v5530_v47  ;;  %v5580_v47 = vld [vmem:[%s5940_s5 + $0x2d8] ss:$36 sps:$4 sm:$0xff]  }
 0x120   : > { %3353 = vmatprep.mubr.bf16.mxu0 %v5532_v48 }
 0x121   : > { %v6304_v49 = vpop.f32.mrb[0].mxu1 }
 0x122   : > { %v2627_v50 = vpop.f32.mrb[1].mxu1 }
 0x123   : > { %v6307_v52 = vpop.f32.mrb[2].mxu1  ;;  %v5581_v50 = vld [vmem:[%s5940_s5 + $0x760] ss:$36 sps:$4 sm:$0xff]  }
 0x124   : > { %v2630_v55 = vpop.f32.mrb[3].mxu1 }
 0x125   : > { %v5667_v55 = vld [vmem:[%s7017_s1 + $0x228] sm:$0xff]  }
 0x126   : > { %2840 = vmatmul.mubr.bf16.gmra.mrb[108].mxu1 %v5534_v51  ;;  %v5583_v51 = vld [vmem:[%s5940_s5 + $0x324] ss:$36 sps:$4 sm:$0xff]  }
 0x127   : > { %3354 = vmatmul.mubr.bf16.gmra.mrb[76].mxu0 %v5535_v53  ;;  %2847 = vmatprep.mubr.bf16.mxu1 %v5536_v54  ;;  %v5585_v54 = vld [vmem:[%s5940_s5 + $0x7ac] ss:$36 sps:$4 sm:$0xff]  }
 0x128   : > { %3361 = vmatprep.mubr.bf16.mxu0 %v5538_v56  ;;  %v5686_v56 = vld [vmem:[%s7017_s1 + $0x230] sm:$0xff]  }
 0x129   : > { %v6312_v57 = vpop.f32.mrb[4].mxu1 }
 0x12a   : > { %v2635_v58 = vpop.f32.mrb[5].mxu1 }
 0x12b   : > { %v6315_v60 = vpop.f32.mrb[6].mxu1  ;;  %v5587_v58 = vld [vmem:[%s5940_s5 + $0x320] ss:$36 sps:$4 sm:$0xff]  }
 0x12c   : > { %v2638_v63 = vpop.f32.mrb[7].mxu1 }
 0x12d   : > { %v5594_v63 = vld [vmem:[%s5940_s5 + $0x368] ss:$36 sps:$4 sm:$0xff]  }
 0x12e   : > { %2848 = vmatmul.mubr.bf16.gmra.mrb[112].mxu1 %v5540_v59  ;;  %v5588_v59 = vld [vmem:[%s5940_s5 + $0x7a8] ss:$36 sps:$4 sm:$0xff]  }
 0x12f   : > { %3362 = vmatmul.mubr.bf16.gmra.mrb[80].mxu0 %v5541_v61  ;;  %2855 = vmatprep.mubr.bf16.mxu1 %v5543_v62  ;;  %v5590_v61 = vld [vmem:[%s5940_s5 + $0x36c] ss:$36 sps:$4 sm:$0xff]   ;;  %v5592_v62 = vld [vmem:[%s5940_s5 + $0x7f4] ss:$36 sps:$4 sm:$0xff]  }
 0x130   : > { %3369 = vmatprep.mubr.bf16.mxu0 %v5545_v0  ;;  %v5595_v0 = vld [vmem:[%s5940_s5 + $0x7f0] ss:$36 sps:$4 sm:$0xff]  }
 0x131   : > { %v6320_v2 = vpop.f32.mrb[8].mxu1 }
 0x132   : > { %v2643_v3 = vpop.f32.mrb[9].mxu1 }
 0x133   : > { %v6323_v6 = vpop.f32.mrb[10].mxu1  ;;  %v5597_v3 = vld [vmem:[%s5940_s5 + $0x3b4] ss:$36 sps:$4 sm:$0xff]  }
 0x134   : > { %v2646_v9 = vpop.f32.mrb[11].mxu1 }
 0x135   : > { %v5603_v9 = vld [vmem:[%s5940_s5 + $0x3fc] ss:$36 sps:$4 sm:$0xff]  }
 0x136   : > { %2856 = vmatmul.mubr.bf16.gmra.mrb[116].mxu1 %v5547_v4  ;;  %v5599_v4 = vld [vmem:[%s5940_s5 + $0x83c] ss:$36 sps:$4 sm:$0xff]  }
 0x137   : > { %3370 = vmatmul.mubr.bf16.gmra.mrb[84].mxu0 %v5548_v7  ;;  %2863 = vmatprep.mubr.bf16.mxu1 %v5549_v8  ;;  %v5601_v7 = vld [vmem:[%s5940_s5 + $0x3b0] ss:$36 sps:$4 sm:$0xff]   ;;  %v5602_v8 = vld [vmem:[%s5940_s5 + $0x838] ss:$36 sps:$4 sm:$0xff]  }
 0x138   : > { %3377 = vmatprep.mubr.bf16.mxu0 %v5551_v10  ;;  %v5605_v10 = vld [vmem:[%s5940_s5 + $0x884] ss:$36 sps:$4 sm:$0xff]  }
 0x139   : > { %v6328_v11 = vpop.f32.mrb[12].mxu1 }
 0x13a   : > { %v2651_v12 = vpop.f32.mrb[13].mxu1 }
 0x13b   : > { %v6331_v14 = vpop.f32.mrb[14].mxu1  ;;  %v5705_v12 = vld [vmem:[%s7017_s1 + $0x238] sm:$0xff]  }
 0x13c   : > { %v2654_v17 = vpop.f32.mrb[15].mxu1 }
 0x13d   : > { %v5613_v17 = vld [vmem:[%s5940_s5 + $0x8cc] ss:$36 sps:$4 sm:$0xff]  }
 0x13e   : > { %2864 = vmatmul.mubr.bf16.gmra.mrb[120].mxu1 %v5553_v13  ;;  %v5607_v13 = vld [vmem:[%s5940_s5 + $0x3f8] ss:$36 sps:$4 sm:$0xff]  }
 0x13f   : > { %3378 = vmatmul.mubr.bf16.gmra.mrb[88].mxu0 %v5554_v15  ;;  %2871 = vmatprep.mubr.bf16.mxu1 %v5556_v16  ;;  %v5608_v15 = vld [vmem:[%s5940_s5 + $0x880] ss:$36 sps:$4 sm:$0xff]  }
 0x140   : > { %3385 = vmatprep.mubr.bf16.mxu0 %v5558_v18  ;;  %v5611_v16 = vld [vmem:[%s5940_s5 + $0x444] ss:$36 sps:$4 sm:$0xff]  }
 0x141   : > { %v6336_v19 = vpop.f32.mrb[16].mxu1  ;;  %v5615_v18 = vld [vmem:[%s5940_s5 + $0x440] ss:$36 sps:$4 sm:$0xff]  }
 0x142   : > { %v2659_v20 = vpop.f32.mrb[17].mxu1 }
 0x143   : > { %v6339_v22 = vpop.f32.mrb[18].mxu1  ;;  %v5616_v20 = vld [vmem:[%s5940_s5 + $0x8c8] ss:$36 sps:$4 sm:$0xff]  }
 0x144   : > { %v2662_v25 = vpop.f32.mrb[19].mxu1 }
 0x145   : > { %v5619_v25 = vld [vmem:[%s5940_s5 + $0x18] ss:$36 sps:$4 sm:$0xff]  }
 0x146   : > { %2872 = vmatmul.mubr.bf16.gmra.mrb[124].mxu1 %v5560_v21  ;;  %v5617_v21 = vld [vmem:[%s5940_s5 + $0x48c] ss:$36 sps:$4 sm:$0xff]  }
 0x147   : > { %3386 = vmatmul.mubr.bf16.gmra.mrb[92].mxu0 %v5561_v23  ;;  %2976 = vmatprep.mubr.bf16.mxu1 %v5564_v24  ;;  %v5621_v23 = vld [vmem:[%s5940_s5 + $0x1c] ss:$36 sps:$4 sm:$0xff]   ;;  %v5622_v24 = vld [vmem:[%s5940_s5 + $0x488] ss:$36 sps:$4 sm:$0xff]  }
 0x148   : > { %3393 = vmatprep.mubr.bf16.mxu0 %v5565_v26  ;;  %v5623_v26 = vld [vmem:[%s5940_s5 + $0x4d4] ss:$36 sps:$4 sm:$0xff]  }
 0x149   : > { %v6344_v27 = vpop.f32.mrb[20].mxu1 }
 0x14a   : > { %v2667_v28 = vpop.f32.mrb[21].mxu1 }
 0x14b   : > { %v6347_v30 = vpop.f32.mrb[22].mxu1  ;;  %v5625_v28 = vld [vmem:[%s5940_s5 + $0x64] ss:$36 sps:$4 sm:$0xff]  }
 0x14c   : > { %v2670_v32 = vpop.f32.mrb[23].mxu1 }
 0x14d   : > { %v5630_v32 = vld [vmem:[%s5940_s5 + $0x51c] ss:$36 sps:$4 sm:$0xff]  }
 0x14e   : > { %2977 = vmatmul.mubr.bf16.vlgmr.msra.gmra.mrb[32].mxu1 %v5562_v29  ;;  %v5627_v29 = vld [vmem:[%s5940_s5 + $0x4d0] ss:$36 sps:$4 sm:$0xff]  }
 0x14f   : > { %3394 = vmatmul.mubr.bf16.gmra.mrb[96].mxu0 %v5567_v31  ;;  %4805 = vmatpush3.bf16.msra.mxu1 %v6246_v5  ;;  %v5578_v5 = vld [vmem:[%s5940_s5 + $0x764] ss:$36 sps:$4 sm:$0xff]  }
 0x150   : > { %2984 = vmatprep.mubr.bf16.mxu1 %v5570_v1  ;;  %3401 = vmatprep.mubr.bf16.mxu0 %v5572_v33  ;;  %v5628_v31 = vld [vmem:[%s5940_s5 + $0x60] ss:$36 sps:$4 sm:$0xff]   ;;  %v5632_v1 = vld [vmem:[%s5940_s5 + $0xac] ss:$36 sps:$4 sm:$0xff]   ;;  %v5634_v33 = vld [vmem:[%s5940_s5 + $0x518] ss:$36 sps:$4 sm:$0xff]  }
 0x151   : > { %v6359_v36 = vpop.f32.mrb[24].mxu1  ;;  %4806 = vmatprep.subr.bf16.mxu1 %v5589_v34 }
 0x152   : > { %v2675_v37 = vpop.f32.mrb[25].mxu1 }
 0x153   : > { %v6362_v39 = vpop.f32.mrb[26].mxu1  ;;  %4807 = vmatpush3.bf16.msra.mxu1 %v5589_v34  ;;  %v5635_v34 = vld [vmem:[%s5940_s5 + $0xa8] ss:$36 sps:$4 sm:$0xff]   ;;  %v5638_v37 = vld [vmem:[%s5940_s5 + $0xf4] ss:$36 sps:$4 sm:$0xff]  }
 0x154   : > { %v2678_v42 = vpop.f32.mrb[27].mxu1  ;;  %4808 = vmatprep.subr.bf16.mxu1 %v5609_v35 }
 0x155   : > { %v5644_v42 = vld [vmem:[%s5940_s5 + $0x13c] ss:$36 sps:$4 sm:$0xff]  }
 0x156   : > { %2985 = vmatmul.mubr.bf16.gmra.mrb[36].mxu1 %v5574_v38  ;;  %v5640_v38 = vld [vmem:[%s5940_s5 + $0x560] ss:$36 sps:$4 sm:$0xff]  }
 0x157   : > { %3402 = vmatmul.mubr.bf16.gmra.mrb[100].mxu0 %v5575_v40  ;;  %2992 = vmatprep.mubr.bf16.mxu1 %v5576_v41  ;;  %v5641_v40 = vld [vmem:[%s5940_s5 + $0xf0] ss:$36 sps:$4 sm:$0xff]  }
 0x158   : > { %3409 = vmatprep.mubr.bf16.mxu0 %v5578_v5  ;;  %4809 = vmatpush3.bf16.msra.mxu1 %v5609_v35  ;;  %v5636_v35 = vld [vmem:[%s5940_s5 + $0x564] ss:$36 sps:$4 sm:$0xff]   ;;  %v5642_v41 = vld [vmem:[%s5940_s5 + $0x5ac] ss:$36 sps:$4 sm:$0xff]  }
 0x159   : > { %v6370_v44 = vpop.f32.mrb[28].mxu1  ;;  %4810 = vmatprep.subr.bf16.mxu1 %v5629_v43  ;;  %v5646_v5 = vld [vmem:[%s5940_s5 + $0x5a8] ss:$36 sps:$4 sm:$0xff]  }
 0x15a   : > { %v2683_v46 = vpop.f32.mrb[29].mxu1 }
 0x15b   : > { %v6376_v48 = vpop.f32.mrb[30].mxu1  ;;  %v5651_v46 = vld [vmem:[%s5940_s5 + $0x184] ss:$36 sps:$4 sm:$0xff]  }
 0x15c   : > { %v2686_v53 = vpop.f32.mrb[31].mxu1  ;;  %4811 = vmatpush3.bf16.msra.mxu1 %v5629_v43  ;;  %v5647_v43 = vld [vmem:[%s5940_s5 + $0x138] ss:$36 sps:$4 sm:$0xff]  }
 0x15d   : > { %4812 = vmatprep.subr.bf16.mxu1 %v5648_v45  ;;  %v5657_v53 = vld [vmem:[%s5940_s5 + $0x1cc] ss:$36 sps:$4 sm:$0xff]  }
 0x15e   : > { %2993 = vmatmul.mubr.bf16.gmra.mrb[40].mxu1 %v5580_v47  ;;  %v5653_v47 = vld [vmem:[%s5940_s5 + $0x5f0] ss:$36 sps:$4 sm:$0xff]  }
 0x15f   : > { %3410 = vmatmul.mubr.bf16.gmra.mrb[104].mxu0 %v5581_v50  ;;  %3000 = vmatprep.mubr.bf16.mxu1 %v5583_v51  ;;  %v5654_v50 = vld [vmem:[%s5940_s5 + $0x180] ss:$36 sps:$4 sm:$0xff]  }
 0x160   : > { %3417 = vmatprep.mubr.bf16.mxu0 %v5585_v54  ;;  %4813 = vmatpush3.bf16.msra.mxu1 %v5648_v45  ;;  %v5649_v45 = vld [vmem:[%s5940_s5 + $0x5f4] ss:$36 sps:$4 sm:$0xff]   ;;  %v5655_v51 = vld [vmem:[%s5940_s5 + $0x63c] ss:$36 sps:$4 sm:$0xff]  }
 0x161   : > { %4814 = vmatprep.subr.bf16.mxu1 %v5667_v55  ;;  %v5659_v54 = vld [vmem:[%s5940_s5 + $0x638] ss:$36 sps:$4 sm:$0xff]  }
 0x164   : > { %4815 = vmatpush3.bf16.msra.mxu1 %v5667_v55  ;;  %v5660_v55 = vld [vmem:[%s5940_s5 + $0x1c8] ss:$36 sps:$4 sm:$0xff]  }
 0x165   : > { %4816 = vmatprep.subr.bf16.mxu1 %v5686_v56 }
 0x166   : > { %3001 = vmatmul.mubr.bf16.gmra.mrb[44].mxu1 %v5587_v58  ;;  %v5663_v58 = vld [vmem:[%s5940_s5 + $0x214] ss:$36 sps:$4 sm:$0xff]  }
 0x167   : > { %3418 = vmatmul.mubr.bf16.gmra.mrb[108].mxu0 %v5588_v59  ;;  %3008 = vmatprep.mubr.bf16.mxu1 %v5590_v61  ;;  %v5665_v59 = vld [vmem:[%s5940_s5 + $0x680] ss:$36 sps:$4 sm:$0xff]   ;;  %v5666_v61 = vld [vmem:[%s5940_s5 + $0x210] ss:$36 sps:$4 sm:$0xff]  }
 0x168   : > { %3425 = vmatprep.mubr.bf16.mxu0 %v5592_v62  ;;  %4817 = vmatpush3.bf16.msra.mxu1 %v5686_v56  ;;  %v5661_v56 = vld [vmem:[%s5940_s5 + $0x684] ss:$36 sps:$4 sm:$0xff]   ;;  %v5668_v62 = vld [vmem:[%s5940_s5 + $0x6cc] ss:$36 sps:$4 sm:$0xff]  }
 0x169   : > { %4818 = vmatprep.subr.bf16.mxu1 %v5705_v12 }
 0x16c   : > { %4819 = vmatpush3.bf16.msra.mxu1 %v5705_v12  ;;  %v5682_v12 = vld [vmem:[%s5940_s5 + $0x2ec] ss:$36 sps:$4 sm:$0xff]  }
 0x16e   : > { %3009 = vmatmul.mubr.bf16.gmra.mrb[48].mxu1 %v5594_v63  ;;  %v5670_v63 = vld [vmem:[%s5940_s5 + $0x25c] ss:$36 sps:$4 sm:$0xff]  }
 0x16f   : > { %3426 = vmatmul.mubr.bf16.gmra.mrb[112].mxu0 %v5595_v0  ;;  %3016 = vmatprep.mubr.bf16.mxu1 %v5597_v3  ;;  %v5672_v0 = vld [vmem:[%s5940_s5 + $0x6c8] ss:$36 sps:$4 sm:$0xff]   ;;  %v5673_v3 = vld [vmem:[%s5940_s5 + $0x258] ss:$36 sps:$4 sm:$0xff]  }
 0x170   : > { %3433 = vmatprep.mubr.bf16.mxu0 %v5599_v4  ;;  %v5674_v4 = vld [vmem:[%s5940_s5 + $0x714] ss:$36 sps:$4 sm:$0xff]  }
 0x176   : > { %3017 = vmatmul.mubr.bf16.gmra.mrb[52].mxu1 %v5601_v7  ;;  %v5676_v7 = vld [vmem:[%s5940_s5 + $0x2a4] ss:$36 sps:$4 sm:$0xff]  }
 0x177   : > { %3434 = vmatmul.mubr.bf16.gmra.mrb[116].mxu0 %v5602_v8  ;;  %3024 = vmatprep.mubr.bf16.mxu1 %v5603_v9  ;;  %v5678_v8 = vld [vmem:[%s5940_s5 + $0x710] ss:$36 sps:$4 sm:$0xff]   ;;  %v5679_v9 = vld [vmem:[%s5940_s5 + $0x2a0] ss:$36 sps:$4 sm:$0xff]  }
 0x178   : > { %3441 = vmatprep.mubr.bf16.mxu0 %v5605_v10  ;;  %v5680_v10 = vld [vmem:[%s5940_s5 + $0x75c] ss:$36 sps:$4 sm:$0xff]  }
 0x17e   : > { %3025 = vmatmul.mubr.bf16.gmra.mrb[56].mxu1 %v5607_v13  ;;  %v5684_v13 = vld [vmem:[%s5940_s5 + $0x758] ss:$36 sps:$4 sm:$0xff]  }
 0x17f   : > { %3442 = vmatmul.mubr.bf16.gmra.mrb[120].mxu0 %v5608_v15  ;;  %3032 = vmatprep.mubr.bf16.mxu1 %v5611_v16  ;;  %v5685_v15 = vld [vmem:[%s5940_s5 + $0x2e8] ss:$36 sps:$4 sm:$0xff]  }
 0x180   : > { %3449 = vmatprep.mubr.bf16.mxu0 %v5613_v17  ;;  %v5687_v16 = vld [vmem:[%s5940_s5 + $0x7a4] ss:$36 sps:$4 sm:$0xff]   ;;  %v5689_v17 = vld [vmem:[%s5940_s5 + $0x334] ss:$36 sps:$4 sm:$0xff]  }
 0x186   : > { %3033 = vmatmul.mubr.bf16.gmra.mrb[60].mxu1 %v5615_v18  ;;  %v5691_v18 = vld [vmem:[%s5940_s5 + $0x7a0] ss:$36 sps:$4 sm:$0xff]  }
 0x187   : > { %3450 = vmatmul.mubr.bf16.gmra.mrb[124].mxu0 %v5616_v20  ;;  %3040 = vmatprep.mubr.bf16.mxu1 %v5617_v21  ;;  %v5692_v20 = vld [vmem:[%s5940_s5 + $0x330] ss:$36 sps:$4 sm:$0xff]  }
 0x188   : > { %3490 = vmatprep.mubr.bf16.mxu0 %v5621_v23  ;;  %v5693_v21 = vld [vmem:[%s5940_s5 + $0x7ec] ss:$36 sps:$4 sm:$0xff]   ;;  %v5695_v23 = vld [vmem:[%s5940_s5 + $0x37c] ss:$36 sps:$4 sm:$0xff]  }
 0x18e   : > { %3041 = vmatmul.mubr.bf16.gmra.mrb[64].mxu1 %v5622_v24  ;;  %v5697_v24 = vld [vmem:[%s5940_s5 + $0x7e8] ss:$36 sps:$4 sm:$0xff]  }
 0x18f   : > { %3491 = vmatmul.mubr.bf16.vlgmr.msra.gmra.mrb[0].mxu0 %v5619_v25  ;;  %3048 = vmatprep.mubr.bf16.mxu1 %v5623_v26  ;;  %v5698_v25 = vld [vmem:[%s5940_s5 + $0x378] ss:$36 sps:$4 sm:$0xff]  }
 0x190   : > { %3498 = vmatprep.mubr.bf16.mxu0 %v5625_v28  ;;  %v5699_v26 = vld [vmem:[%s5940_s5 + $0x834] ss:$36 sps:$4 sm:$0xff]   ;;  %v5701_v28 = vld [vmem:[%s5940_s5 + $0x3c4] ss:$36 sps:$4 sm:$0xff]  }
 0x196   : > { %3049 = vmatmul.mubr.bf16.gmra.mrb[68].mxu1 %v5627_v29  ;;  %v5703_v29 = vld [vmem:[%s5940_s5 + $0x830] ss:$36 sps:$4 sm:$0xff]  }
 0x197   : > { %3499 = vmatmul.mubr.bf16.gmra.mrb[4].mxu0 %v5628_v31  ;;  %3056 = vmatprep.mubr.bf16.mxu1 %v5630_v32  ;;  %v5704_v31 = vld [vmem:[%s5940_s5 + $0x3c0] ss:$36 sps:$4 sm:$0xff]  }
 0x198   : > { %3506 = vmatprep.mubr.bf16.mxu0 %v5632_v1  ;;  %v5706_v32 = vld [vmem:[%s5940_s5 + $0x87c] ss:$36 sps:$4 sm:$0xff]   ;;  %v5708_v1 = vld [vmem:[%s5940_s5 + $0x40c] ss:$36 sps:$4 sm:$0xff]  }
 0x19e   : > { %3057 = vmatmul.mubr.bf16.gmra.mrb[72].mxu1 %v5634_v33  ;;  %v5710_v33 = vld [vmem:[%s5940_s5 + $0x878] ss:$36 sps:$4 sm:$0xff]  }
 0x19f   : > { %3507 = vmatmul.mubr.bf16.gmra.mrb[8].mxu0 %v5635_v34  ;;  %3064 = vmatprep.mubr.bf16.mxu1 %v5636_v35  ;;  %v5711_v34 = vld [vmem:[%s5940_s5 + $0x408] ss:$36 sps:$4 sm:$0xff]  }
 0x1a0   : > { %3514 = vmatprep.mubr.bf16.mxu0 %v5638_v37  ;;  %v5712_v35 = vld [vmem:[%s5940_s5 + $0x8c4] ss:$36 sps:$4 sm:$0xff]   ;;  %v5714_v37 = vld [vmem:[%s5940_s5 + $0x454] ss:$36 sps:$4 sm:$0xff]  }
 0x1a6   : > { %3065 = vmatmul.mubr.bf16.gmra.mrb[76].mxu1 %v5640_v38  ;;  %v5716_v38 = vld [vmem:[%s5940_s5 + $0x8c0] ss:$36 sps:$4 sm:$0xff]  }
 0x1a7   : > { %3515 = vmatmul.mubr.bf16.gmra.mrb[12].mxu0 %v5641_v40  ;;  %3072 = vmatprep.mubr.bf16.mxu1 %v5642_v41  ;;  %v5717_v40 = vld [vmem:[%s5940_s5 + $0x450] ss:$36 sps:$4 sm:$0xff]   ;;  %v5720_v41 = vld [vmem:[%s5940_s5 + $0x20] ss:$36 sps:$4 sm:$0xff]  }
 0x1a8   : > { %3522 = vmatprep.mubr.bf16.mxu0 %v5644_v42  ;;  %v5718_v42 = vld [vmem:[%s5940_s5 + $0x49c] ss:$36 sps:$4 sm:$0xff]  }
 0x1ae   : > { %3073 = vmatmul.mubr.bf16.gmra.mrb[80].mxu1 %v5646_v5  ;;  %v5722_v5 = vld [vmem:[%s5940_s5 + $0x68] ss:$36 sps:$4 sm:$0xff]  }
 0x1af   : > { %3523 = vmatmul.mubr.bf16.gmra.mrb[16].mxu0 %v5647_v43  ;;  %3080 = vmatprep.mubr.bf16.mxu1 %v5649_v45  ;;  %v5721_v43 = vld [vmem:[%s5940_s5 + $0x498] ss:$36 sps:$4 sm:$0xff]   ;;  %v5725_v45 = vld [vmem:[%s5940_s5 + $0xb0] ss:$36 sps:$4 sm:$0xff]  }
 0x1b0   : > { %3530 = vmatprep.mubr.bf16.mxu0 %v5651_v46  ;;  %v5723_v46 = vld [vmem:[%s5940_s5 + $0x4e4] ss:$36 sps:$4 sm:$0xff]  }
 0x1b6   : > { %3081 = vmatmul.mubr.bf16.gmra.mrb[84].mxu1 %v5653_v47  ;;  %v5727_v47 = vld [vmem:[%s5940_s5 + $0xf8] ss:$36 sps:$4 sm:$0xff]  }
 0x1b7   : > { %3531 = vmatmul.mubr.bf16.gmra.mrb[20].mxu0 %v5654_v50  ;;  %3088 = vmatprep.mubr.bf16.mxu1 %v5655_v51  ;;  %v5726_v50 = vld [vmem:[%s5940_s5 + $0x4e0] ss:$36 sps:$4 sm:$0xff]  }
 0x1b8   : > { %3538 = vmatprep.mubr.bf16.mxu0 %v5657_v53  ;;  %v5730_v51 = vld [vmem:[%s5940_s5 + $0x140] ss:$36 sps:$4 sm:$0xff]   ;;  %v5728_v53 = vld [vmem:[%s5940_s5 + $0x52c] ss:$36 sps:$4 sm:$0xff]  }
 0x1be   : > { %3089 = vmatmul.mubr.bf16.gmra.mrb[88].mxu1 %v5659_v54  ;;  %v5732_v54 = vld [vmem:[%s5940_s5 + $0x188] ss:$36 sps:$4 sm:$0xff]  }
 0x1bf   : > { %3539 = vmatmul.mubr.bf16.gmra.mrb[24].mxu0 %v5660_v55  ;;  %3096 = vmatprep.mubr.bf16.mxu1 %v5661_v56  ;;  %v5731_v55 = vld [vmem:[%s5940_s5 + $0x528] ss:$36 sps:$4 sm:$0xff]   ;;  %v5735_v56 = vld [vmem:[%s5940_s5 + $0x1d0] ss:$36 sps:$4 sm:$0xff]  }
 0x1c0   : > { %3546 = vmatprep.mubr.bf16.mxu0 %v5663_v58  ;;  %v5733_v58 = vld [vmem:[%s5940_s5 + $0x574] ss:$36 sps:$4 sm:$0xff]  }
 0x1c6   : > { %3097 = vmatmul.mubr.bf16.gmra.mrb[92].mxu1 %v5665_v59 }
 0x1c7   : > { %3547 = vmatmul.mubr.bf16.gmra.mrb[28].mxu0 %v5666_v61  ;;  %3104 = vmatprep.mubr.bf16.mxu1 %v5668_v62  ;;  %v5737_v62 = vld [vmem:[%s5940_s5 + $0x218] ss:$36 sps:$4 sm:$0xff]  }
 0x1c8   : > { %3554 = vmatprep.mubr.bf16.mxu0 %v5670_v63 }
 0x1ce   : > { %3105 = vmatmul.mubr.bf16.gmra.mrb[96].mxu1 %v5672_v0  ;;  %v5736_v0 = vld [vmem:[%s5940_s5 + $0x570] ss:$36 sps:$4 sm:$0xff]  }
 0x1cf   : > { %3555 = vmatmul.mubr.bf16.gmra.mrb[32].mxu0 %v5673_v3  ;;  %3112 = vmatprep.mubr.bf16.mxu1 %v5674_v4  ;;  %v5740_v3 = vld [vmem:[%s5940_s5 + $0x260] ss:$36 sps:$4 sm:$0xff]  }
 0x1d0   : > { %3562 = vmatprep.mubr.bf16.mxu0 %v5676_v7  ;;  %v5738_v7 = vld [vmem:[%s5940_s5 + $0x5bc] ss:$36 sps:$4 sm:$0xff]  }
 0x1d6   : > { %3113 = vmatmul.mubr.bf16.gmra.mrb[100].mxu1 %v5678_v8 }
 0x1d7   : > { %3563 = vmatmul.mubr.bf16.gmra.mrb[36].mxu0 %v5679_v9  ;;  %3120 = vmatprep.mubr.bf16.mxu1 %v5680_v10  ;;  %v5742_v10 = vld [vmem:[%s5940_s5 + $0x2a8] ss:$36 sps:$4 sm:$0xff]  }
 0x1d8   : > { %3570 = vmatprep.mubr.bf16.mxu0 %v5682_v12 }
 0x1de   : > { %3121 = vmatmul.mubr.bf16.gmra.mrb[104].mxu1 %v5684_v13  ;;  %v5741_v13 = vld [vmem:[%s5940_s5 + $0x5b8] ss:$36 sps:$4 sm:$0xff]  }
 0x1df   : > { %3571 = vmatmul.mubr.bf16.gmra.mrb[40].mxu0 %v5685_v15  ;;  %3128 = vmatprep.mubr.bf16.mxu1 %v5687_v16  ;;  %v5745_v15 = vld [vmem:[%s5940_s5 + $0x2f0] ss:$36 sps:$4 sm:$0xff]  }
 0x1e0   : > { %3578 = vmatprep.mubr.bf16.mxu0 %v5689_v17  ;;  %v5743_v17 = vld [vmem:[%s5940_s5 + $0x604] ss:$36 sps:$4 sm:$0xff]  }
 0x1e6   : > { %3129 = vmatmul.mubr.bf16.gmra.mrb[108].mxu1 %v5691_v18 }
 0x1e7   : > { %3579 = vmatmul.mubr.bf16.gmra.mrb[44].mxu0 %v5692_v20  ;;  %3136 = vmatprep.mubr.bf16.mxu1 %v5693_v21  ;;  %v5747_v21 = vld [vmem:[%s5940_s5 + $0x338] ss:$36 sps:$4 sm:$0xff]  }
 0x1e8   : > { %3586 = vmatprep.mubr.bf16.mxu0 %v5695_v23 }
 0x1ee   : > { %3137 = vmatmul.mubr.bf16.gmra.mrb[112].mxu1 %v5697_v24  ;;  %v5746_v24 = vld [vmem:[%s5940_s5 + $0x600] ss:$36 sps:$4 sm:$0xff]  }
 0x1ef   : > { %3587 = vmatmul.mubr.bf16.gmra.mrb[48].mxu0 %v5698_v25  ;;  %3144 = vmatprep.mubr.bf16.mxu1 %v5699_v26  ;;  %v5750_v25 = vld [vmem:[%s5940_s5 + $0x380] ss:$36 sps:$4 sm:$0xff]  }
 0x1f0   : > { %3594 = vmatprep.mubr.bf16.mxu0 %v5701_v28  ;;  %v5748_v28 = vld [vmem:[%s5940_s5 + $0x64c] ss:$36 sps:$4 sm:$0xff]  }
 0x1f6   : > { %3145 = vmatmul.mubr.bf16.gmra.mrb[116].mxu1 %v5703_v29 }
 0x1f7   : > { %3595 = vmatmul.mubr.bf16.gmra.mrb[52].mxu0 %v5704_v31  ;;  %3152 = vmatprep.mubr.bf16.mxu1 %v5706_v32  ;;  %v5752_v32 = vld [vmem:[%s5940_s5 + $0x3c8] ss:$36 sps:$4 sm:$0xff]  }
 0x1f8   : > { %3602 = vmatprep.mubr.bf16.mxu0 %v5708_v1 }
 0x1fe   : > { %3153 = vmatmul.mubr.bf16.gmra.mrb[120].mxu1 %v5710_v33  ;;  %v5751_v33 = vld [vmem:[%s5940_s5 + $0x648] ss:$36 sps:$4 sm:$0xff]  }
 0x1ff   : > { %3603 = vmatmul.mubr.bf16.gmra.mrb[56].mxu0 %v5711_v34  ;;  %3160 = vmatprep.mubr.bf16.mxu1 %v5712_v35  ;;  %v5755_v34 = vld [vmem:[%s5940_s5 + $0x410] ss:$36 sps:$4 sm:$0xff]  }
 0x200   : > { %3610 = vmatprep.mubr.bf16.mxu0 %v5714_v37  ;;  %v5753_v37 = vld [vmem:[%s5940_s5 + $0x694] ss:$36 sps:$4 sm:$0xff]  }
 0x206   : > { %3161 = vmatmul.mubr.bf16.gmra.mrb[124].mxu1 %v5716_v38 }
 0x207   : > { %3611 = vmatmul.mubr.bf16.gmra.mrb[60].mxu0 %v5717_v40  ;;  %4820 = vmatprep.mubr.bf16.mxu1 %v5720_v41  ;;  %v5757_v41 = vld [vmem:[%s5940_s5 + $0x458] ss:$36 sps:$4 sm:$0xff]  }
 0x208   : > { %3618 = vmatprep.mubr.bf16.mxu0 %v5718_v42 }
 0x20e   : > { %4821 = vmatmul.mubr.bf16.vlgmr.msra.gmra.mrb[128].mxu1 %v5722_v5  ;;  %v5756_v5 = vld [vmem:[%s5940_s5 + $0x690] ss:$36 sps:$4 sm:$0xff]  }
 0x20f   : > { %3619 = vmatmul.mubr.bf16.gmra.mrb[64].mxu0 %v5721_v43  ;;  %4824 = vmatprep.mubr.bf16.mxu1 %v5725_v45  ;;  %v5760_v43 = vld [vmem:[%s5940_s5 + $0x4a0] ss:$36 sps:$4 sm:$0xff]  }
 0x210   : > { %3626 = vmatprep.mubr.bf16.mxu0 %v5723_v46  ;;  %v5758_v46 = vld [vmem:[%s5940_s5 + $0x6dc] ss:$36 sps:$4 sm:$0xff]  }
 0x216   : > { %4825 = vmatmul.mubr.bf16.gmra.mrb[132].mxu1 %v5727_v47 }
 0x217   : > { %3627 = vmatmul.mubr.bf16.gmra.mrb[68].mxu0 %v5726_v50  ;;  %4828 = vmatprep.mubr.bf16.mxu1 %v5730_v51  ;;  %v5762_v51 = vld [vmem:[%s5940_s5 + $0x4e8] ss:$36 sps:$4 sm:$0xff]  }
 0x218   : > { %3634 = vmatprep.mubr.bf16.mxu0 %v5728_v53 }
 0x21e   : > { %4829 = vmatmul.mubr.bf16.gmra.mrb[136].mxu1 %v5732_v54  ;;  %v5761_v54 = vld [vmem:[%s5940_s5 + $0x6d8] ss:$36 sps:$4 sm:$0xff]  }
 0x21f   : > { %3635 = vmatmul.mubr.bf16.gmra.mrb[72].mxu0 %v5731_v55  ;;  %4832 = vmatprep.mubr.bf16.mxu1 %v5735_v56  ;;  %v5765_v55 = vld [vmem:[%s5940_s5 + $0x530] ss:$36 sps:$4 sm:$0xff]  }
 0x220   : > { %3642 = vmatprep.mubr.bf16.mxu0 %v5733_v58  ;;  %v5763_v58 = vld [vmem:[%s5940_s5 + $0x724] ss:$36 sps:$4 sm:$0xff]  }
 0x221   : > { %v6486_v59 = vpop.f32.mrb[32].mxu1 }
 0x222   : > { %v2980_v61 = vpop.f32.mrb[33].mxu1 }
 0x223   : > { %v6489_v63 = vpop.f32.mrb[34].mxu1 }
 0x224   : > { %v2983_v4 = vpop.f32.mrb[35].mxu1 }
 0x225   : > { %v5766_v4 = vld [vmem:[%s5940_s5 + $0x720] ss:$36 sps:$4 sm:$0xff]  }
 0x226   : > { %4833 = vmatmul.mubr.bf16.gmra.mrb[140].mxu1 %v5737_v62 }
 0x227   : > { %3643 = vmatmul.mubr.bf16.gmra.mrb[76].mxu0 %v5736_v0  ;;  %4836 = vmatprep.mubr.bf16.mxu1 %v5740_v3  ;;  %v5767_v0 = vld [vmem:[%s5940_s5 + $0x578] ss:$36 sps:$4 sm:$0xff]  }
 0x228   : > { %3650 = vmatprep.mubr.bf16.mxu0 %v5738_v7  ;;  %v5770_v7 = vld [vmem:[%s5940_s5 + $0x5c0] ss:$36 sps:$4 sm:$0xff]  }
 0x229   : > { %v6494_v8 = vpop.f32.mrb[36].mxu1 }
 0x22a   : > { %v2988_v9 = vpop.f32.mrb[37].mxu1 }
 0x22b   : > { %v6497_v12 = vpop.f32.mrb[38].mxu1 }
 0x22c   : > { %v2991_v16 = vpop.f32.mrb[39].mxu1 }
 0x22d   : > { %v5772_v16 = vld [vmem:[%s5940_s5 + $0x608] ss:$36 sps:$4 sm:$0xff]  }
 0x22e   : > { %4837 = vmatmul.mubr.bf16.gmra.mrb[144].mxu1 %v5742_v10  ;;  %v5768_v10 = vld [vmem:[%s5940_s5 + $0x76c] ss:$36 sps:$4 sm:$0xff]  }
 0x22f   : > { %3651 = vmatmul.mubr.bf16.gmra.mrb[80].mxu0 %v5741_v13  ;;  %4840 = vmatprep.mubr.bf16.mxu1 %v5745_v15 }
 0x230   : > { %3658 = vmatprep.mubr.bf16.mxu0 %v5743_v17 }
 0x231   : > { %v6502_v18 = vpop.f32.mrb[40].mxu1 }
 0x232   : > { %v2996_v20 = vpop.f32.mrb[41].mxu1 }
 0x233   : > { %v6505_v23 = vpop.f32.mrb[42].mxu1  ;;  %v5771_v20 = vld [vmem:[%s5940_s5 + $0x768] ss:$36 sps:$4 sm:$0xff]  }
 0x234   : > { %v2999_v26 = vpop.f32.mrb[43].mxu1 }
 0x235   : > { %v6553_v26 = vld [vmem:[%s7018_s2] ss:$0 sm:$0xff] }
 0x236   : > { %4841 = vmatmul.mubr.bf16.gmra.mrb[148].mxu1 %v5747_v21  ;;  %v5775_v21 = vld [vmem:[%s5940_s5 + $0x650] ss:$36 sps:$4 sm:$0xff]  }
 0x237   : > { %3659 = vmatmul.mubr.bf16.gmra.mrb[84].mxu0 %v5746_v24  ;;  %4844 = vmatprep.mubr.bf16.mxu1 %v5750_v25  ;;  %v5773_v25 = vld [vmem:[%s5940_s5 + $0x7b4] ss:$36 sps:$4 sm:$0xff]  }
 0x238   : > { %3666 = vmatprep.mubr.bf16.mxu0 %v5748_v28  ;;  %v2626_v28 = vadd.f32 %v6553_v26, %v6304_v49 }
 0x239   : > { %v6510_v29 = vpop.f32.mrb[44].mxu1 }
 0x23a   : > { %v3004_v31 = vpop.f32.mrb[45].mxu1 }
 0x23b   : > { %v6513_v1 = vpop.f32.mrb[46].mxu1 }
 0x23c   : > { %v3007_v35 = vpop.f32.mrb[47].mxu1 }
 0x23d   : > { %v2629_v35 = vadd.f32 %v6553_v26, %v6307_v52  ;;  %v2634_v52 = vadd.f32 %v6553_v26, %v6312_v57 }
 0x23e   : > { %4845 = vmatmul.mubr.bf16.gmra.mrb[152].mxu1 %v5752_v32 }
 0x23f   : > { %3667 = vmatmul.mubr.bf16.gmra.mrb[88].mxu0 %v5751_v33  ;;  %4848 = vmatprep.mubr.bf16.mxu1 %v5755_v34  ;;  %v5777_v34 = vld [vmem:[%s5940_s5 + $0x698] ss:$36 sps:$4 sm:$0xff]  }
 0x240   : > { %3674 = vmatprep.mubr.bf16.mxu0 %v5753_v37 }
 0x241   : > { %v6518_v38 = vpop.f32.mrb[48].mxu1 }
 0x242   : > { %v3012_v40 = vpop.f32.mrb[49].mxu1 }
 0x243   : > { %v6521_v42 = vpop.f32.mrb[50].mxu1 }
 0x244   : > { %v3015_v45 = vpop.f32.mrb[51].mxu1 }
 0x246   : > { %4849 = vmatmul.mubr.bf16.gmra.mrb[156].mxu1 %v5757_v41 }
 0x247   : > { %3675 = vmatmul.mubr.bf16.gmra.mrb[92].mxu0 %v5756_v5  ;;  %4852 = vmatprep.mubr.bf16.mxu1 %v5760_v43  ;;  %v5776_v5 = vld [vmem:[%s5940_s5 + $0x7b0] ss:$36 sps:$4 sm:$0xff]   ;;  %v5780_v43 = vld [vmem:[%s5940_s5 + $0x6e0] ss:$36 sps:$4 sm:$0xff]  }
 0x248   : > { %3682 = vmatprep.mubr.bf16.mxu0 %v5758_v46 }
 0x249   : > { %v6526_v47 = vpop.f32.mrb[52].mxu1 }
 0x24a   : > { %v3020_v50 = vpop.f32.mrb[53].mxu1 }
 0x24b   : > { %v6529_v53 = vpop.f32.mrb[54].mxu1  ;;  %v5778_v50 = vld [vmem:[%s5940_s5 + $0x7fc] ss:$36 sps:$4 sm:$0xff]  }
 0x24c   : > { %v3023_v56 = vpop.f32.mrb[55].mxu1 }
 0x24e   : > { %4853 = vmatmul.mubr.bf16.gmra.mrb[160].mxu1 %v5762_v51 }
 0x24f   : > { %3683 = vmatmul.mubr.bf16.gmra.mrb[96].mxu0 %v5761_v54  ;;  %4856 = vmatprep.mubr.bf16.mxu1 %v5765_v55 }
 0x250   : > { %3690 = vmatprep.mubr.bf16.mxu0 %v5763_v58  ;;  %v5782_v58 = vld [vmem:[%s5940_s5 + $0x728] ss:$36 sps:$4 sm:$0xff]  }
 0x251   : > { %v6534_v61 = vpop.f32.mrb[56].mxu1 }
 0x252   : > { %v3028_v62 = vpop.f32.mrb[57].mxu1 }
 0x253   : > { %v6537_v3 = vpop.f32.mrb[58].mxu1  ;;  %v2637_v62 = vadd.f32 %v6553_v26, %v6315_v60  ;;  %v2642_v60 = vadd.f32 %v6553_v26, %v6320_v2 }
 0x254   : > { %v3031_v9 = vpop.f32.mrb[59].mxu1 }
 0x255   : > { %v5781_v9 = vld [vmem:[%s5940_s5 + $0x7f8] ss:$36 sps:$4 sm:$0xff]  }
 0x256   : > { %4857 = vmatmul.mubr.bf16.gmra.mrb[164].mxu1 %v5767_v0 }
 0x257   : > { %3691 = vmatmul.mubr.bf16.gmra.mrb[100].mxu0 %v5766_v4  ;;  %4860 = vmatprep.mubr.bf16.mxu1 %v5770_v7 }
 0x258   : > { %3698 = vmatprep.mubr.bf16.mxu0 %v5768_v10  ;;  %v5785_v10 = vld [vmem:[%s5940_s5 + $0x770] ss:$36 sps:$4 sm:$0xff]  }
 0x259   : > { %v6542_v13 = vpop.f32.mrb[60].mxu1 }
 0x25a   : > { %v3036_v15 = vpop.f32.mrb[61].mxu1 }
 0x25b   : > { %v6545_v17 = vpop.f32.mrb[62].mxu1 }
 0x25c   : > { %v3039_v24 = vpop.f32.mrb[63].mxu1 }
 0x25e   : > { %4861 = vmatmul.mubr.bf16.gmra.mrb[168].mxu1 %v5772_v16 }
 0x25f   : > { %3699 = vmatmul.mubr.bf16.gmra.mrb[104].mxu0 %v5771_v20  ;;  %4864 = vmatprep.mubr.bf16.mxu1 %v5775_v21  ;;  %v5783_v20 = vld [vmem:[%s5940_s5 + $0x844] ss:$36 sps:$4 sm:$0xff]  }
 0x260   : > { %3706 = vmatprep.mubr.bf16.mxu0 %v5773_v25 }
 0x261   : > { %v6557_v31 = vpop.f32.mrb[64].mxu1 }
 0x262   : > { %v3492_v32 = vpop.f32.mrb[0].mxu0  ;;  %v3044_v33 = vpop.f32.mrb[65].mxu1 }
 0x263   : > { %v6562_v37 = vadd.f32 %v3492_v32, %v2626_v28  ;;  %v3494_v40 = vpop.f32.mrb[1].mxu0  ;;  %v6564_v41 = vpop.f32.mrb[66].mxu1  ;;  %v5787_v32 = vld [vmem:[%s5940_s5 + $0x7b8] ss:$36 sps:$4 sm:$0xff]   ;;  %v2645_v33 = vadd.f32 %v6553_v26, %v6323_v6  ;;  %v2650_v6 = vadd.f32 %v6553_v26, %v6328_v11 }
 0x264   : > { %v3495_v45 = vpop.f32.mrb[2].mxu0  ;;  %v3047_v46 = vpop.f32.mrb[67].mxu1 }
 0x265   : > { %v6569_v49 = vadd.f32 %v3495_v45, %v2629_v35  ;;  %v3497_v51 = vpop.f32.mrb[3].mxu0 }
 0x266   : > { %4865 = vmatmul.mubr.bf16.gmra.mrb[172].mxu1 %v5777_v34 }
 0x267   : > { %3707 = vmatmul.mubr.bf16.gmra.mrb[108].mxu0 %v5776_v5  ;;  %4868 = vmatprep.mubr.bf16.mxu1 %v5780_v43  ;;  %v5786_v5 = vld [vmem:[%s5940_s5 + $0x840] ss:$36 sps:$4 sm:$0xff]  }
 0x268   : > { %3714 = vmatprep.mubr.bf16.mxu0 %v5778_v50  ;;  %v5790_v43 = vld [vmem:[%s5940_s5 + $0x800] ss:$36 sps:$4 sm:$0xff]   ;;  %v5788_v50 = vld [vmem:[%s5940_s5 + $0x88c] ss:$36 sps:$4 sm:$0xff]  }
 0x269   : > { %v6573_v54 = vpop.f32.mrb[68].mxu1 }
 0x26a   : > { %v3500_v55 = vpop.f32.mrb[4].mxu0  ;;  %v3052_v56 = vpop.f32.mrb[69].mxu1 }
 0x26b   : > { %v6578_v0 = vadd.f32 %v3500_v55, %v2634_v52  ;;  %v3502_v4 = vpop.f32.mrb[5].mxu0  ;;  %v6580_v7 = vpop.f32.mrb[70].mxu1 }
 0x26c   : > { %v3503_v15 = vpop.f32.mrb[6].mxu0  ;;  %v3055_v16 = vpop.f32.mrb[71].mxu1 }
 0x26d   : > { %v6585_v57 = vadd.f32 %v3503_v15, %v2637_v62  ;;  %v3505_v21 = vpop.f32.mrb[7].mxu0  ;;  %v2653_v62 = vadd.f32 %v6553_v26, %v6331_v14  ;;  %v5791_v15 = vld [vmem:[%s5940_s5 + $0x888] ss:$36 sps:$4 sm:$0xff]   ;;  %v5795_v16 = vld [vmem:[%s5940_s5 + $0x890] ss:$36 sps:$4 sm:$0xff]   ;;  %v2658_v14 = vadd.f32 %v6553_v26, %v6336_v19  ;;  %v2666_v19 = vadd.f32 %v6553_v26, %v6344_v27 }
 0x26e   : > { %4869 = vmatmul.mubr.bf16.gmra.mrb[176].mxu1 %v5782_v58  ;;  %v5792_v58 = vld [vmem:[%s5940_s5 + $0x848] ss:$36 sps:$4 sm:$0xff]   ;;  %v2674_v27 = vadd.f32 %v6553_v26, %v6359_v36  ;;  %v2682_v36 = vadd.f32 %v6553_v26, %v6370_v44  ;;  %v4948_v44 = vadd.f32 %v6553_v26, %v6486_v59  ;;  %v4952_v59 = vadd.f32 %v6553_v26, %v6494_v8 }
 0x26f   : > { %3715 = vmatmul.mubr.bf16.gmra.mrb[112].mxu0 %v5781_v9  ;;  %4872 = vmatprep.mubr.bf16.mxu1 %v5785_v10  ;;  %v4956_v8 = vadd.f32 %v6553_v26, %v6502_v18  ;;  %v4960_v18 = vadd.f32 %v6553_v26, %v6510_v29  ;;  %v4964_v29 = vadd.f32 %v6553_v26, %v6518_v38 }
 0x270   : > { %3722 = vmatprep.mubr.bf16.mxu0 %v5783_v20  ;;  %v4968_v38 = vadd.f32 %v6553_v26, %v6526_v47  ;;  %v4972_v47 = vadd.f32 %v6553_v26, %v6534_v61  ;;  %v4976_v61 = vadd.f32 %v6553_v26, %v6542_v13  ;;  %v4980_v13 = vadd.f32 %v6553_v26, %v6557_v31 }
 0x271   : > { %v6589_v24 = vpop.f32.mrb[72].mxu1 }
 0x272   : > { %v3508_v25 = vpop.f32.mrb[8].mxu0  ;;  %v3060_v28 = vpop.f32.mrb[73].mxu1 }
 0x273   : > { %v6594_v34 = vadd.f32 %v3508_v25, %v2642_v60  ;;  %v3510_v35 = vpop.f32.mrb[9].mxu0  ;;  %v6596_v40 = vpop.f32.mrb[74].mxu1  ;;  %v5793_v60 = vld [vmem:[%s5940_s5 + $0x8d4] ss:$36 sps:$4 sm:$0xff]  }
 0x274   : > { %v3511_v45 = vpop.f32.mrb[10].mxu0  ;;  %v3063_v46 = vpop.f32.mrb[75].mxu1  ;;  %v5797_v35 = vld [vmem:[%s5940_s5 + $0x8d8] ss:$36 sps:$4 sm:$0xff]  }
 0x275   : > { %v6601_v2 = vadd.f32 %v3511_v45, %v2645_v33  ;;  %v3513_v51 = vpop.f32.mrb[11].mxu0 }
 0x276   : > { %4873 = vmatmul.mubr.bf16.gmra.mrb[180].mxu1 %v5787_v32 }
 0x277   : > { %3723 = vmatmul.mubr.bf16.gmra.mrb[116].mxu0 %v5786_v5  ;;  %4876 = vmatprep.mubr.bf16.mxu1 %v5790_v43  ;;  %v2661_v5 = vadd.f32 %v6553_v26, %v6339_v22 }
 0x278   : > { %3730 = vmatprep.mubr.bf16.mxu0 %v5788_v50  ;;  %v5796_v50 = vld [vmem:[%s5940_s5 + $0x8d0] ss:$36 sps:$4 sm:$0xff]   ;;  %s4399_s5 = sshll.u32 %s7056_s11, 3 }
 0x279   : > { %v6605_v52 = vpop.f32.mrb[76].mxu1  ;;  %s6771_s10 = scalar_lea.vmem %s7019_s3, %s4399_s5 }
 0x27a   : > { %v3516_v55 = vpop.f32.mrb[12].mxu0  ;;  %v3068_v56 = vpop.f32.mrb[77].mxu1 }
 0x27b   : > { %v6610_v4 = vadd.f32 %v3516_v55, %v2650_v6  ;;  %v3518_v9 = vpop.f32.mrb[13].mxu0  ;;  %v6612_v10 = vpop.f32.mrb[78].mxu1 }
 0x27c   : > { %v3519_v20 = vpop.f32.mrb[14].mxu0  ;;  %v3071_v21 = vpop.f32.mrb[79].mxu1  ;;  %v2669_v9 = vadd.f32 %v6553_v26, %v6347_v30  ;;  %v2677_v30 = vadd.f32 %v6553_v26, %v6362_v39  ;;  %v2685_v39 = vadd.f32 %v6553_v26, %v6376_v48  ;;  %v4950_v48 = vadd.f32 %v6553_v26, %v6489_v63 }
 0x27d   : > { %v6617_v11 = vadd.f32 %v3519_v20, %v2653_v62  ;;  %v3521_v25 = vpop.f32.mrb[15].mxu0  ;;  %v4954_v63 = vadd.f32 %v6553_v26, %v6497_v12  ;;  %v4958_v12 = vadd.f32 %v6553_v26, %v6505_v23  ;;  %v4962_v23 = vadd.f32 %v6553_v26, %v6513_v1 }
 0x27e   : > { %4877 = vmatmul.mubr.bf16.gmra.mrb[184].mxu1 %v5792_v58  ;;  %v4966_v1 = vadd.f32 %v6553_v26, %v6521_v42  ;;  %v4970_v42 = vadd.f32 %v6553_v26, %v6529_v53  ;;  %v4974_v53 = vadd.f32 %v6553_v26, %v6537_v3  ;;  %v4978_v3 = vadd.f32 %v6553_v26, %v6545_v17 }
 0x27f   : > { %3731 = vmatmul.mubr.bf16.gmra.mrb[120].mxu0 %v5791_v15  ;;  %4880 = vmatprep.mubr.bf16.mxu1 %v5795_v16 }
 0x280   : > { %3738 = vmatprep.mubr.bf16.mxu0 %v5793_v60 }
 0x281   : > { %v6621_v28 = vpop.f32.mrb[80].mxu1 }
 0x282   : > { %v3524_v32 = vpop.f32.mrb[16].mxu0  ;;  %v3076_v33 = vpop.f32.mrb[81].mxu1 }
 0x283   : > { %v6626_v43 = vadd.f32 %v3524_v32, %v2658_v14  ;;  %v3526_v45 = vpop.f32.mrb[17].mxu0  ;;  %v6628_v46 = vpop.f32.mrb[82].mxu1 }
 0x284   : > { %v3527_v51 = vpop.f32.mrb[18].mxu0  ;;  %v3079_v6 = vpop.f32.mrb[83].mxu1 }
 0x285   : > { %v6631_v55 = vadd.f32 %v3527_v51, %v2661_v5  ;;  %v3529_v56 = vpop.f32.mrb[19].mxu0 }
 0x286   : > { %4881 = vmatmul.mubr.bf16.gmra.mrb[188].mxu1 %v5797_v35 }
 0x287   : > { %3739 = vmatmul.mubr.bf16.gmra.mrb[124].mxu0 %v5796_v50 }
 0x289   : > { %v6635_v58 = vpop.f32.mrb[84].mxu1 }
 0x28a   : > { %v3532_v62 = vpop.f32.mrb[20].mxu0  ;;  %v3084_v22 = vpop.f32.mrb[85].mxu1 }
 0x28b   : > { %v6639_v15 = vadd.f32 %v3532_v62, %v2666_v19  ;;  %v3534_v16 = vpop.f32.mrb[21].mxu0  ;;  %v6641_v20 = vpop.f32.mrb[86].mxu1 }
 0x28c   : > { %v3535_v21 = vpop.f32.mrb[22].mxu0  ;;  %v3087_v60 = vpop.f32.mrb[87].mxu1 }
 0x28d   : > { %v6643_v25 = vadd.f32 %v3535_v21, %v2669_v9  ;;  %v3537_v14 = vpop.f32.mrb[23].mxu0 }
 0x291   : > { %v6647_v32 = vpop.f32.mrb[88].mxu1 }
 0x292   : > { %v3540_v33 = vpop.f32.mrb[24].mxu0  ;;  %v3092_v35 = vpop.f32.mrb[89].mxu1 }
 0x293   : > { %v6651_v5 = vadd.f32 %v3540_v33, %v2674_v27  ;;  %v3542_v45 = vpop.f32.mrb[25].mxu0  ;;  %v6653_v50 = vpop.f32.mrb[90].mxu1 }
 0x294   : > { %v3543_v51 = vpop.f32.mrb[26].mxu0  ;;  %v3095_v6 = vpop.f32.mrb[91].mxu1 }
 0x295   : > { %v6655_v56 = vadd.f32 %v3543_v51, %v2677_v30  ;;  %v3545_v19 = vpop.f32.mrb[27].mxu0 }
 0x299   : > { %v6659_v62 = vpop.f32.mrb[92].mxu1 }
 0x29a   : > { %v3548_v22 = vpop.f32.mrb[28].mxu0  ;;  %v3100_v9 = vpop.f32.mrb[93].mxu1 }
 0x29b   : > { %v6663_v16 = vadd.f32 %v3548_v22, %v2682_v36  ;;  %v3550_v21 = vpop.f32.mrb[29].mxu0  ;;  %v6665_v60 = vpop.f32.mrb[94].mxu1 }
 0x29c   : > { %v3551_v14 = vpop.f32.mrb[30].mxu0  ;;  %v3103_v27 = vpop.f32.mrb[95].mxu1 }
 0x29d   : > { %v6667_v33 = vadd.f32 %v3551_v14, %v2685_v39  ;;  %v3553_v35 = vpop.f32.mrb[31].mxu0 }
 0x2a1   : > { %v6671_v30 = vpop.f32.mrb[96].mxu1 }
 0x2a2   : > { %v3556_v45 = vpop.f32.mrb[32].mxu0  ;;  %v3108_v51 = vpop.f32.mrb[97].mxu1 }
 0x2a3   : > { %v6675_v6 = vadd.f32 %v4948_v44, %v3556_v45  ;;  %v3558_v19 = vpop.f32.mrb[33].mxu0  ;;  %v6677_v36 = vpop.f32.mrb[98].mxu1 }
 0x2a4   : > { %7021 = vst [vmem:[#allocation2_spill] sm:$0xff] %v6677_v36  ;;  %v3559_v22 = vpop.f32.mrb[34].mxu0  ;;  %v3111_v9 = vpop.f32.mrb[99].mxu1 }
 0x2a5   : > { %v6679_v39 = vadd.f32 %v4950_v48, %v3559_v22  ;;  %v3561_v21 = vpop.f32.mrb[35].mxu0 }
 0x2a9   : > { %v6683_v14 = vpop.f32.mrb[100].mxu1 }
 0x2aa   : > { %7022 = vst [vmem:[#allocation3_spill] sm:$0xff] %v6683_v14  ;;  %v3564_v27 = vpop.f32.mrb[36].mxu0  ;;  %v3116_v35 = vpop.f32.mrb[101].mxu1 }
 0x2ab   : > { %v6687_v44 = vadd.f32 %v4952_v59, %v3564_v27  ;;  %v3566_v45 = vpop.f32.mrb[37].mxu0  ;;  %v6689_v51 = vpop.f32.mrb[102].mxu1 }
 0x2ac   : > { %7023 = vst [vmem:[#allocation4_spill] sm:$0xff] %v6689_v51  ;;  %v3567_v19 = vpop.f32.mrb[38].mxu0  ;;  %v3119_v9 = vpop.f32.mrb[103].mxu1 }
 0x2ad   : > { %v6691_v48 = vadd.f32 %v4954_v63, %v3567_v19  ;;  %v3569_v22 = vpop.f32.mrb[39].mxu0 }
 0x2b1   : > { %v6695_v21 = vpop.f32.mrb[104].mxu1 }
 0x2b2   : > { %7024 = vst [vmem:[#allocation5_spill] sm:$0xff] %v6695_v21  ;;  %v3572_v14 = vpop.f32.mrb[40].mxu0  ;;  %v3124_v35 = vpop.f32.mrb[105].mxu1 }
 0x2b3   : > { %v6699_v59 = vadd.f32 %v4956_v8, %v3572_v14  ;;  %v3574_v27 = vpop.f32.mrb[41].mxu0  ;;  %v6701_v45 = vpop.f32.mrb[106].mxu1 }
 0x2b4   : > { %7025 = vst [vmem:[#allocation6_spill] sm:$0xff] %v6701_v45  ;;  %v3575_v51 = vpop.f32.mrb[42].mxu0  ;;  %v3127_v9 = vpop.f32.mrb[107].mxu1 }
 0x2b5   : > { %v6703_v63 = vadd.f32 %v4958_v12, %v3575_v51  ;;  %v3577_v19 = vpop.f32.mrb[43].mxu0 }
 0x2b9   : > { %v6707_v22 = vpop.f32.mrb[108].mxu1 }
 0x2ba   : > { %7026 = vst [vmem:[#allocation7_spill] sm:$0xff] %v6707_v22  ;;  %v3580_v21 = vpop.f32.mrb[44].mxu0  ;;  %v3132_v35 = vpop.f32.mrb[109].mxu1 }
 0x2bb   : > { %v6711_v14 = vadd.f32 %v4960_v18, %v3580_v21  ;;  %v3582_v8 = vpop.f32.mrb[45].mxu0  ;;  %v6713_v27 = vpop.f32.mrb[110].mxu1 }
 0x2bc   : > { %7027 = vst [vmem:[#allocation8_spill] sm:$0xff] %v6713_v27  ;;  %v3583_v45 = vpop.f32.mrb[46].mxu0  ;;  %v3135_v9 = vpop.f32.mrb[111].mxu1 }
 0x2bd   : > { %v6715_v51 = vadd.f32 %v4962_v23, %v3583_v45  ;;  %v3585_v12 = vpop.f32.mrb[47].mxu0 }
 0x2c1   : > { %v6719_v19 = vpop.f32.mrb[112].mxu1 }
 0x2c2   : > { %7028 = vst [vmem:[#allocation9_spill] sm:$0xff] %v6719_v19  ;;  %v3588_v22 = vpop.f32.mrb[48].mxu0  ;;  %v3140_v35 = vpop.f32.mrb[113].mxu1 }
 0x2c3   : > { %v6723_v21 = vadd.f32 %v4964_v29, %v3588_v22  ;;  %v3590_v18 = vpop.f32.mrb[49].mxu0  ;;  %v6725_v8 = vpop.f32.mrb[114].mxu1 }
 0x2c4   : > { %7029 = vst [vmem:[#allocation10_spill] sm:$0xff] %v6725_v8  ;;  %v3591_v27 = vpop.f32.mrb[50].mxu0  ;;  %v3143_v9 = vpop.f32.mrb[115].mxu1 }
 0x2c5   : > { %v6727_v45 = vadd.f32 %v4966_v1, %v3591_v27  ;;  %v3593_v23 = vpop.f32.mrb[51].mxu0 }
 0x2c9   : > { %v6731_v12 = vpop.f32.mrb[116].mxu1 }
 0x2ca   : > { %7030 = vst [vmem:[#allocation11_spill] sm:$0xff] %v6731_v12  ;;  %v3596_v19 = vpop.f32.mrb[52].mxu0  ;;  %v3148_v35 = vpop.f32.mrb[117].mxu1 }
 0x2cb   : > { %v6735_v22 = vadd.f32 %v4968_v38, %v3596_v19  ;;  %v3598_v29 = vpop.f32.mrb[53].mxu0  ;;  %v6737_v18 = vpop.f32.mrb[118].mxu1 }
 0x2cc   : > { %7031 = vst [vmem:[#allocation12_spill] sm:$0xff] %v6737_v18  ;;  %v3599_v8 = vpop.f32.mrb[54].mxu0  ;;  %v3151_v9 = vpop.f32.mrb[119].mxu1 }
 0x2cd   : > { %v6739_v27 = vadd.f32 %v4970_v42, %v3599_v8  ;;  %v3601_v1 = vpop.f32.mrb[55].mxu0 }
 0x2d1   : > { %v6743_v23 = vpop.f32.mrb[120].mxu1 }
 0x2d2   : > { %7032 = vst [vmem:[#allocation13_spill] sm:$0xff] %v6743_v23  ;;  %v3604_v12 = vpop.f32.mrb[56].mxu0  ;;  %v3156_v35 = vpop.f32.mrb[121].mxu1 }
 0x2d3   : > { %v6747_v19 = vadd.f32 %v4972_v47, %v3604_v12  ;;  %v3606_v38 = vpop.f32.mrb[57].mxu0  ;;  %v6749_v29 = vpop.f32.mrb[122].mxu1 }
 0x2d4   : > { %7033 = vst [vmem:[#allocation14_spill] sm:$0xff] %v6749_v29  ;;  %v3607_v18 = vpop.f32.mrb[58].mxu0  ;;  %v3159_v8 = vpop.f32.mrb[123].mxu1 }
 0x2d5   : > { %v6751_v42 = vadd.f32 %v4974_v53, %v3607_v18  ;;  %v3609_v9 = vpop.f32.mrb[59].mxu0 }
 0x2d9   : > { %v6755_v1 = vpop.f32.mrb[124].mxu1 }
 0x2da   : > { %7034 = vst [vmem:[#allocation15_spill] sm:$0xff] %v6755_v1  ;;  %v3612_v35 = vpop.f32.mrb[60].mxu0  ;;  %v3164_v23 = vpop.f32.mrb[125].mxu1 }
 0x2db   : > { %v6759_v12 = vadd.f32 %v4976_v61, %v3612_v35  ;;  %v3614_v47 = vpop.f32.mrb[61].mxu0  ;;  %v6761_v38 = vpop.f32.mrb[126].mxu1 }
 0x2dc   : > { %7035 = vst [vmem:[#allocation16_spill] sm:$0xff] %v6761_v38  ;;  %v3615_v29 = vpop.f32.mrb[62].mxu0  ;;  %v3167_v8 = vpop.f32.mrb[127].mxu1 }
 0x2dd   : > { %v6763_v18 = vadd.f32 %v4978_v3, %v3615_v29  ;;  %v3617_v53 = vpop.f32.mrb[63].mxu0  ;;  %v4982_v29 = vadd.f32 %v6553_v26, %v6564_v41 }
 0x2e1   : > { %v4822_v17 = vpop.f32.mrb[128].mxu1 }
 0x2e2   : > { %v3620_v23 = vpop.f32.mrb[64].mxu0  ;;  %v3790_v9 = vadd.f32 %v6578_v0, %v4822_v17  ;;  %v3781_v61 = vpop.f32.mrb[129].mxu1 }
 0x2e3   : > { %v6776_v35 = vadd.f32 %v4980_v13, %v3620_v23  ;;  %v3622_v31 = vpop.f32.mrb[65].mxu0  ;;  %v3782_v3 = vadd.f32 %v6562_v37, %v3781_v61  ;;  %v4823_v47 = vpop.f32.mrb[130].mxu1  ;;  %v4984_v37 = vadd.f32 %v6553_v26, %v6573_v54 }
 0x2e4   : > { %4038 = vst [vmem:[%s6771_s10 + $0x10] sm:$0xff] %v3790_v9  ;;  %v3623_v8 = vpop.f32.mrb[66].mxu0  ;;  %v3793_v53 = vadd.f32 %v6585_v57, %v4823_v47  ;;  %v3784_v38 = vpop.f32.mrb[131].mxu1  ;;  %v4172_v23 = vmul.f32 %v3790_v9, %v3790_v9 }
 0x2e5   : > { %7036 = vst [vmem:[#allocation17_spill] sm:$0xff] %v6776_v35  ;;  %4036 = vst [vmem:[%s6771_s10] sm:$0xff] %v3782_v3  ;;  %v6782_v1 = vadd.f32 %v4982_v29, %v3623_v8  ;;  %v3625_v0 = vpop.f32.mrb[67].mxu0  ;;  %v3785_v17 = vadd.f32 %v6569_v49, %v3784_v38  ;;  %v4170_v36 = vmul.f32 %v3782_v3, %v3782_v3 }
 0x2e6   : > { %4039 = vst [vmem:[%s6771_s10 + $0x18] sm:$0xff] %v3793_v53  ;;  %v4986_v29 = vadd.f32 %v6553_v26, %v6580_v7  ;;  %v4173_v47 = vmul.f32 %v3793_v53, %v3793_v53 }
 0x2e7   : > { %7037 = vst [vmem:[#allocation18_spill] sm:$0xff] %v6782_v1  ;;  %4037 = vst [vmem:[%s6771_s10 + $0x8] sm:$0xff] %v3785_v17  ;;  %v4100_v41 = vadd.f32 %v3785_v17, %v3782_v3  ;;  %v4171_v13 = vmul.f32 %v3785_v17, %v3785_v17 }
 0x2e9   : > { %v4101_v61 = vadd.f32 %v4100_v41, %v3790_v9  ;;  %v4234_v31 = vadd.f32 %v4171_v13, %v4170_v36  ;;  %v4826_v57 = vpop.f32.mrb[132].mxu1 }
 0x2ea   : > { %v3628_v8 = vpop.f32.mrb[68].mxu0  ;;  %v3806_v49 = vadd.f32 %v6610_v4, %v4826_v57  ;;  %v3797_v38 = vpop.f32.mrb[133].mxu1 }
 0x2eb   : > { %v4235_v0 = vadd.f32 %v4234_v31, %v4172_v23  ;;  %v6792_v3 = vadd.f32 %v4984_v37, %v3628_v8  ;;  %v3630_v17 = vpop.f32.mrb[69].mxu0  ;;  %v3798_v54 = vadd.f32 %v6594_v34, %v3797_v38  ;;  %v4102_v9 = vadd.f32 %v4101_v61, %v3793_v53  ;;  %v4827_v36 = vpop.f32.mrb[134].mxu1 }
 0x2ec   : > { %4042 = vst [vmem:[%s6771_s10 + $0x30] sm:$0xff] %v3806_v49  ;;  %v3631_v41 = vpop.f32.mrb[70].mxu0  ;;  %v3809_v13 = vadd.f32 %v6617_v11, %v4827_v36  ;;  %v3800_v7 = vpop.f32.mrb[135].mxu1  ;;  %v4988_v61 = vadd.f32 %v6553_v26, %v6589_v24  ;;  %v4176_v8 = vmul.f32 %v3806_v49, %v3806_v49 }
 0x2ed   : > { %4040 = vst [vmem:[%s6771_s10 + $0x20] sm:$0xff] %v3798_v54  ;;  %v4103_v1 = vadd.f32 %v4102_v9, %v3798_v54  ;;  %v4174_v35 = vmul.f32 %v3798_v54, %v3798_v54  ;;  %v4236_v4 = vadd.f32 %v4235_v0, %v4173_v47  ;;  %v6798_v57 = vadd.f32 %v4986_v29, %v3631_v41  ;;  %v3633_v23 = vpop.f32.mrb[71].mxu0 }
 0x2ee   : > { %4043 = vst [vmem:[%s6771_s10 + $0x38] sm:$0xff] %v3809_v13  ;;  %v3801_v37 = vadd.f32 %v6601_v2, %v3800_v7  ;;  %v4990_v2 = vadd.f32 %v6553_v26, %v6596_v40  ;;  %v4177_v24 = vmul.f32 %v3809_v13, %v3809_v13 }
 0x2ef   : > { %v4237_v31 = vadd.f32 %v4236_v4, %v4174_v35 }
 0x2f0   : > { %4041 = vst [vmem:[%s6771_s10 + $0x28] sm:$0xff] %v3801_v37  ;;  %v4104_v34 = vadd.f32 %v4103_v1, %v3801_v37  ;;  %v4175_v53 = vmul.f32 %v3801_v37, %v3801_v37 }
 0x2f1   : > { %v4830_v11 = vpop.f32.mrb[136].mxu1 }
 0x2f2   : > { %v4105_v38 = vadd.f32 %v4104_v34, %v3806_v49  ;;  %v4238_v17 = vadd.f32 %v4237_v31, %v4175_v53  ;;  %v3636_v47 = vpop.f32.mrb[72].mxu0  ;;  %v3822_v29 = vadd.f32 %v6639_v15, %v4830_v11  ;;  %v3813_v0 = vpop.f32.mrb[137].mxu1 }
 0x2f3   : > { %v6808_v35 = vadd.f32 %v4988_v61, %v3636_v47  ;;  %v3638_v1 = vpop.f32.mrb[73].mxu0  ;;  %v3814_v54 = vadd.f32 %v6626_v43, %v3813_v0  ;;  %v4831_v9 = vpop.f32.mrb[138].mxu1  ;;  %v4994_v0 = vadd.f32 %v6553_v26, %v6612_v10 }
 0x2f4   : > { %v4239_v36 = vadd.f32 %v4238_v17, %v4176_v8  ;;  %4046 = vst [vmem:[%s6771_s10 + $0x50] sm:$0xff] %v3822_v29  ;;  %v4106_v49 = vadd.f32 %v4105_v38, %v3809_v13  ;;  %v3639_v41 = vpop.f32.mrb[74].mxu0  ;;  %v3825_v7 = vadd.f32 %v6643_v25, %v4831_v9  ;;  %v3816_v15 = vpop.f32.mrb[139].mxu1  ;;  %v4992_v13 = vadd.f32 %v6553_v26, %v6605_v52 }
 0x2f5   : > { %4044 = vst [vmem:[%s6771_s10 + $0x40] sm:$0xff] %v3814_v54  ;;  %v4178_v4 = vmul.f32 %v3814_v54, %v3814_v54  ;;  %v6814_v23 = vadd.f32 %v4990_v2, %v3639_v41  ;;  %v3641_v40 = vpop.f32.mrb[75].mxu0  ;;  %v3817_v37 = vadd.f32 %v6631_v55, %v3816_v15  ;;  %v4180_v11 = vmul.f32 %v3822_v29, %v3822_v29 }
 0x2f6   : > { %v4107_v31 = vadd.f32 %v4106_v49, %v3814_v54  ;;  %v4240_v43 = vadd.f32 %v4239_v36, %v4177_v24  ;;  %4047 = vst [vmem:[%s6771_s10 + $0x58] sm:$0xff] %v3825_v7  ;;  %v4181_v52 = vmul.f32 %v3825_v7, %v3825_v7 }
 0x2f7   : > { %4045 = vst [vmem:[%s6771_s10 + $0x48] sm:$0xff] %v3817_v37  ;;  %v4179_v34 = vmul.f32 %v3817_v37, %v3817_v37 }
 0x2f8   : > { %v4241_v53 = vadd.f32 %v4240_v43, %v4178_v4  ;;  %v4108_v61 = vadd.f32 %v4107_v31, %v3817_v37 }
 0x2f9   : > { %v4834_v25 = vpop.f32.mrb[140].mxu1 }
 0x2fa   : > { %v4109_v8 = vadd.f32 %v4108_v61, %v3822_v29  ;;  %v4242_v38 = vadd.f32 %v4241_v53, %v4179_v34  ;;  %v3644_v17 = vpop.f32.mrb[76].mxu0  ;;  %v3838_v47 = vadd.f32 %v6663_v16, %v4834_v25  ;;  %v3829_v55 = vpop.f32.mrb[141].mxu1 }
 0x2fb   : > { %v6824_v2 = vadd.f32 %v4992_v13, %v3644_v17  ;;  %v3646_v1 = vpop.f32.mrb[77].mxu0  ;;  %v3830_v54 = vadd.f32 %v6651_v5, %v3829_v55  ;;  %v4835_v9 = vpop.f32.mrb[142].mxu1 }
 0x2fc   : > { %v4243_v24 = vadd.f32 %v4242_v38, %v4180_v11  ;;  %4050 = vst [vmem:[%s6771_s10 + $0x70] sm:$0xff] %v3838_v47  ;;  %v4110_v29 = vadd.f32 %v4109_v8, %v3825_v7  ;;  %v3647_v36 = vpop.f32.mrb[78].mxu0  ;;  %v3841_v49 = vadd.f32 %v6667_v33, %v4835_v9  ;;  %v3832_v16 = vpop.f32.mrb[143].mxu1  ;;  %v4996_v7 = vadd.f32 %v6553_v26, %v6621_v28 }
 0x2fd   : > { %4048 = vst [vmem:[%s6771_s10 + $0x60] sm:$0xff] %v3830_v54  ;;  %v4182_v41 = vmul.f32 %v3830_v54, %v3830_v54  ;;  %v6830_v15 = vadd.f32 %v4994_v0, %v3647_v36  ;;  %v3649_v10 = vpop.f32.mrb[79].mxu0  ;;  %v3833_v4 = vadd.f32 %v6655_v56, %v3832_v16  ;;  %v4184_v34 = vmul.f32 %v3838_v47, %v3838_v47 }
 0x2fe   : > { %v4111_v40 = vadd.f32 %v4110_v29, %v3830_v54  ;;  %v4244_v5 = vadd.f32 %v4243_v24, %v4181_v52  ;;  %4051 = vst [vmem:[%s6771_s10 + $0x78] sm:$0xff] %v3841_v49  ;;  %v4998_v11 = vadd.f32 %v6553_v26, %v6628_v46  ;;  %v4185_v28 = vmul.f32 %v3841_v49, %v3841_v49 }
 0x2ff   : > { %4049 = vst [vmem:[%s6771_s10 + $0x68] sm:$0xff] %v3833_v4  ;;  %v4183_v37 = vmul.f32 %v3833_v4, %v3833_v4 }
 0x300   : > { %v4245_v31 = vadd.f32 %v4244_v5, %v4182_v41  ;;  %v4112_v43 = vadd.f32 %v4111_v40, %v3833_v4 }
 0x301   : > { %v4838_v33 = vpop.f32.mrb[144].mxu1 }
 0x302   : > { %v4113_v53 = vadd.f32 %v4112_v43, %v3838_v47  ;;  %v4246_v61 = vadd.f32 %v4245_v31, %v4183_v37  ;;  %v3652_v13 = vpop.f32.mrb[80].mxu0  ;;  %v3854_v25 = vadd.f32 %v6687_v44, %v4838_v33  ;;  %v3845_v56 = vpop.f32.mrb[145].mxu1  ;;  %v5002_v31 = vadd.f32 %v6553_v26, %v6641_v20 }
 0x303   : > { %v6840_v8 = vadd.f32 %v4996_v7, %v3652_v13  ;;  %v3654_v38 = vpop.f32.mrb[81].mxu0  ;;  %v3846_v17 = vadd.f32 %v6675_v6, %v3845_v56  ;;  %v4839_v55 = vpop.f32.mrb[146].mxu1 }
 0x304   : > { %v4247_v0 = vadd.f32 %v4246_v61, %v4184_v34  ;;  %4054 = vst [vmem:[%s6771_s10 + $0x90] sm:$0xff] %v3854_v25  ;;  %v4114_v47 = vadd.f32 %v4113_v53, %v3841_v49  ;;  %v3655_v1 = vpop.f32.mrb[82].mxu0  ;;  %v3857_v54 = vadd.f32 %v6691_v48, %v4839_v55  ;;  %v3848_v44 = vpop.f32.mrb[147].mxu1  ;;  %v5000_v49 = vadd.f32 %v6553_v26, %v6635_v58 }
 0x305   : > { %4052 = vst [vmem:[%s6771_s10 + $0x80] sm:$0xff] %v3846_v17  ;;  %v4186_v9 = vmul.f32 %v3846_v17, %v3846_v17  ;;  %v6846_v52 = vadd.f32 %v4998_v11, %v3655_v1  ;;  %v3657_v46 = vpop.f32.mrb[83].mxu0  ;;  %v3849_v24 = vadd.f32 %v6679_v39, %v3848_v44  ;;  %v4188_v10 = vmul.f32 %v3854_v25, %v3854_v25 }
 0x306   : > { %v4115_v29 = vadd.f32 %v4114_v47, %v3846_v17  ;;  %v4248_v6 = vadd.f32 %v4247_v0, %v4185_v28  ;;  %4055 = vst [vmem:[%s6771_s10 + $0x98] sm:$0xff] %v3857_v54  ;;  %v4189_v58 = vmul.f32 %v3857_v54, %v3857_v54  ;;  %v5004_v47 = vadd.f32 %v6553_v26, %v6647_v32 }
 0x307   : > { %4053 = vst [vmem:[%s6771_s10 + $0x88] sm:$0xff] %v3849_v24  ;;  %v4187_v36 = vmul.f32 %v3849_v24, %v3849_v24 }
 0x308   : > { %v4249_v16 = vadd.f32 %v4248_v6, %v4186_v9  ;;  %v4116_v41 = vadd.f32 %v4115_v29, %v3849_v24  ;;  %v5006_v24 = vadd.f32 %v6553_v26, %v6653_v50 }
 0x309   : > { %v4842_v48 = vpop.f32.mrb[148].mxu1 }
 0x30a   : > { %v4117_v4 = vadd.f32 %v4116_v41, %v3854_v25  ;;  %v4250_v40 = vadd.f32 %v4249_v16, %v4187_v36  ;;  %v3660_v5 = vpop.f32.mrb[84].mxu0  ;;  %v3870_v37 = vadd.f32 %v6711_v14, %v4842_v48  ;;  %v3861_v39 = vpop.f32.mrb[149].mxu1 }
 0x30b   : > { %v6856_v43 = vadd.f32 %v5000_v49, %v3660_v5  ;;  %v3662_v7 = vpop.f32.mrb[85].mxu0  ;;  %v3862_v33 = vadd.f32 %v6699_v59, %v3861_v39  ;;  %v4843_v34 = vpop.f32.mrb[150].mxu1 }
 0x30c   : > { %v4251_v53 = vadd.f32 %v4250_v40, %v4188_v10  ;;  %4058 = vst [vmem:[%s6771_s10 + $0xb0] sm:$0xff] %v3870_v37  ;;  %v4118_v61 = vadd.f32 %v4117_v4, %v3857_v54  ;;  %v3663_v13 = vpop.f32.mrb[86].mxu0  ;;  %v3873_v25 = vadd.f32 %v6715_v51, %v4843_v34  ;;  %v3864_v14 = vpop.f32.mrb[151].mxu1  ;;  %v4192_v1 = vmul.f32 %v3870_v37, %v3870_v37 }
 0x30d   : > { %4056 = vst [vmem:[%s6771_s10 + $0xa0] sm:$0xff] %v3862_v33  ;;  %v4190_v56 = vmul.f32 %v3862_v33, %v3862_v33  ;;  %v6862_v11 = vadd.f32 %v5002_v31, %v3663_v13  ;;  %v3665_v20 = vpop.f32.mrb[87].mxu0  ;;  %v3865_v38 = vadd.f32 %v6703_v63, %v3864_v14 }
 0x30e   : > { %v4119_v17 = vadd.f32 %v4118_v61, %v3862_v33  ;;  %v4252_v59 = vadd.f32 %v4251_v53, %v4189_v58  ;;  %4059 = vst [vmem:[%s6771_s10 + $0xb8] sm:$0xff] %v3873_v25  ;;  %v4193_v32 = vmul.f32 %v3873_v25, %v3873_v25  ;;  %v5008_v33 = vadd.f32 %v6553_v26, %v6659_v62 }
 0x30f   : > { %4057 = vst [vmem:[%s6771_s10 + $0xa8] sm:$0xff] %v3865_v38  ;;  %v4191_v55 = vmul.f32 %v3865_v38, %v3865_v38 }
 0x310   : > { %v4253_v28 = vadd.f32 %v4252_v59, %v4190_v56  ;;  %v4120_v0 = vadd.f32 %v4119_v17, %v3865_v38 }
 0x311   : > { %v4846_v51 = vpop.f32.mrb[152].mxu1 }
 0x312   : > { %v4121_v54 = vadd.f32 %v4120_v0, %v3870_v37  ;;  %v4254_v44 = vadd.f32 %v4253_v28, %v4191_v55  ;;  %v3668_v9 = vpop.f32.mrb[88].mxu0  ;;  %v3886_v46 = vadd.f32 %v6735_v22, %v4846_v51  ;;  %v3877_v63 = vpop.f32.mrb[153].mxu1 }
 0x313   : > { %v6872_v29 = vadd.f32 %v5004_v47, %v3668_v9  ;;  %v3670_v6 = vpop.f32.mrb[89].mxu0  ;;  %v3878_v36 = vadd.f32 %v6723_v21, %v3877_v63  ;;  %v4847_v16 = vpop.f32.mrb[154].mxu1 }
 0x314   : > { %v4255_v41 = vadd.f32 %v4254_v44, %v4192_v1  ;;  %4062 = vst [vmem:[%s6771_s10 + $0xd0] sm:$0xff] %v3886_v46  ;;  %v4122_v49 = vadd.f32 %v4121_v54, %v3873_v25  ;;  %v3671_v48 = vpop.f32.mrb[90].mxu0  ;;  %v3889_v10 = vadd.f32 %v6739_v27, %v4847_v16  ;;  %v3880_v22 = vpop.f32.mrb[155].mxu1  ;;  %v4196_v34 = vmul.f32 %v3886_v46, %v3886_v46 }
 0x315   : > { %4060 = vst [vmem:[%s6771_s10 + $0xc0] sm:$0xff] %v3878_v36  ;;  %v4194_v4 = vmul.f32 %v3878_v36, %v3878_v36  ;;  %v6878_v40 = vadd.f32 %v5006_v24, %v3671_v48  ;;  %v3673_v50 = vpop.f32.mrb[91].mxu0  ;;  %v3881_v5 = vadd.f32 %v6727_v45, %v3880_v22  ;;  %v5010_v25 = vadd.f32 %v6553_v26, %v6665_v60 }
 0x316   : > { %v4123_v37 = vadd.f32 %v4122_v49, %v3878_v36  ;;  %v4256_v21 = vadd.f32 %v4255_v41, %v4193_v32  ;;  %4063 = vst [vmem:[%s6771_s10 + $0xd8] sm:$0xff] %v3889_v10  ;;  %v4197_v62 = vmul.f32 %v3889_v10, %v3889_v10  ;;  %v7038_v32 = vld [vmem:[#allocation2_spill] sm:$0xff] }
 0x317   : > { %4061 = vst [vmem:[%s6771_s10 + $0xc8] sm:$0xff] %v3881_v5  ;;  %v4195_v39 = vmul.f32 %v3881_v5, %v3881_v5  ;;  %v5014_v41 = vadd.f32 %v6553_v26, %v7038_v32  ;;  %v7043_v32 = vld [vmem:[#allocation5_spill] sm:$0xff] }
 0x318   : > { %v4257_v31 = vadd.f32 %v4256_v21, %v4194_v4  ;;  %v4124_v7 = vadd.f32 %v4123_v37, %v3881_v5 }
 0x319   : > { %v4850_v27 = vpop.f32.mrb[156].mxu1 }
 0x31a   : > { %v4125_v58 = vadd.f32 %v4124_v7, %v3886_v46  ;;  %v4258_v53 = vadd.f32 %v4257_v31, %v4195_v39  ;;  %v3676_v61 = vpop.f32.mrb[92].mxu0  ;;  %v3902_v13 = vadd.f32 %v6759_v12, %v4850_v27  ;;  %v3893_v45 = vpop.f32.mrb[157].mxu1  ;;  %v5012_v46 = vadd.f32 %v6553_v26, %v6671_v30  ;;  %v7040_v7 = vld [vmem:[#allocation18_spill] sm:$0xff] }
 0x31b   : > { %v6888_v14 = vadd.f32 %v5008_v33, %v3676_v61  ;;  %v3678_v56 = vpop.f32.mrb[93].mxu0  ;;  %v3894_v20 = vadd.f32 %v6747_v19, %v3893_v45  ;;  %v4851_v38 = vpop.f32.mrb[158].mxu1 }
 0x31c   : > { %v4259_v17 = vadd.f32 %v4258_v53, %v4196_v34  ;;  %4066 = vst [vmem:[%s6771_s10 + $0xf0] sm:$0xff] %v3902_v13  ;;  %v4126_v59 = vadd.f32 %v4125_v58, %v3889_v10  ;;  %v3679_v55 = vpop.f32.mrb[94].mxu0  ;;  %v3905_v28 = vadd.f32 %v6763_v18, %v4851_v38  ;;  %v3896_v12 = vpop.f32.mrb[159].mxu1  ;;  %v4200_v63 = vmul.f32 %v3902_v13, %v3902_v13  ;;  %v7039_v10 = vld [vmem:[#allocation17_spill] sm:$0xff] }
 0x31d   : > { %4064 = vst [vmem:[%s6771_s10 + $0xe0] sm:$0xff] %v3894_v20  ;;  %v4198_v0 = vmul.f32 %v3894_v20, %v3894_v20  ;;  %v6894_v47 = vadd.f32 %v5010_v25, %v3679_v55  ;;  %v3681_v60 = vpop.f32.mrb[95].mxu0  ;;  %v3897_v51 = vadd.f32 %v6751_v42, %v3896_v12  ;;  %v7042_v55 = vld [vmem:[#allocation4_spill] sm:$0xff] }
 0x31e   : > { %v4127_v1 = vadd.f32 %v4126_v59, %v3894_v20  ;;  %v4260_v19 = vadd.f32 %v4259_v17, %v4197_v62  ;;  %4067 = vst [vmem:[%s6771_s10 + $0xf8] sm:$0xff] %v3905_v28  ;;  %v4201_v30 = vmul.f32 %v3905_v28, %v3905_v28 }
 0x31f   : > { %4065 = vst [vmem:[%s6771_s10 + $0xe8] sm:$0xff] %v3897_v51  ;;  %v4199_v54 = vmul.f32 %v3897_v51, %v3897_v51 }
 0x320   : > { %v4261_v44 = vadd.f32 %v4260_v19, %v4198_v0  ;;  %v4128_v9 = vadd.f32 %v4127_v1, %v3897_v51 }
 0x321   : > { %v4854_v18 = vpop.f32.mrb[160].mxu1 }
 0x322   : > { %v4129_v24 = vadd.f32 %v4128_v9, %v3902_v13  ;;  %v4262_v6 = vadd.f32 %v4261_v44, %v4199_v54  ;;  %v3684_v36 = vpop.f32.mrb[96].mxu0  ;;  %v3918_v16 = vadd.f32 %v6792_v3, %v4854_v18  ;;  %v3909_v42 = vpop.f32.mrb[161].mxu1  ;;  %v6918_v13 = vld [vmem:[%s7018_s2] ss:$0 sm:$0xff] }
 0x323   : > { %v6904_v49 = vadd.f32 %v5012_v46, %v3684_v36  ;;  %v3686_v48 = vpop.f32.mrb[97].mxu0  ;;  %v3910_v22 = vadd.f32 %v7039_v10, %v3909_v42  ;;  %v4855_v4 = vpop.f32.mrb[162].mxu1 }
 0x324   : > { %v4263_v50 = vadd.f32 %v4262_v6, %v4200_v63  ;;  %4070 = vst [vmem:[%s6771_s10 + $0x110] sm:$0xff] %v3918_v16  ;;  %v4130_v5 = vadd.f32 %v4129_v24, %v3905_v28  ;;  %v3687_v37 = vpop.f32.mrb[98].mxu0  ;;  %v3921_v21 = vadd.f32 %v6798_v57, %v4855_v4  ;;  %v3912_v3 = vpop.f32.mrb[163].mxu1  ;;  %v7041_v57 = vld [vmem:[#allocation3_spill] sm:$0xff]  ;;  %v4204_v56 = vmul.f32 %v3918_v16, %v3918_v16 }
 0x325   : > { %4068 = vst [vmem:[%s6771_s10 + $0x100] sm:$0xff] %v3910_v22  ;;  %v4202_v39 = vmul.f32 %v3910_v22, %v3910_v22  ;;  %v6910_v31 = vadd.f32 %v5014_v41, %v3687_v37  ;;  %v3689_v26 = vpop.f32.mrb[99].mxu0  ;;  %v3913_v33 = vadd.f32 %v7040_v7, %v3912_v3  ;;  %v5016_v45 = vadd.f32 %v6918_v13, %v7041_v57 }
 0x326   : > { %v4131_v27 = vadd.f32 %v4130_v5, %v3910_v22  ;;  %v4264_v34 = vadd.f32 %v4263_v50, %v4201_v30  ;;  %4071 = vst [vmem:[%s6771_s10 + $0x118] sm:$0xff] %v3921_v21  ;;  %v5018_v28 = vadd.f32 %v6918_v13, %v7042_v55  ;;  %v4205_v1 = vmul.f32 %v3921_v21, %v3921_v21  ;;  %v7044_v50 = vld [vmem:[#allocation6_spill] sm:$0xff] }
 0x327   : > { %4069 = vst [vmem:[%s6771_s10 + $0x108] sm:$0xff] %v3913_v33  ;;  %v4203_v58 = vmul.f32 %v3913_v33, %v3913_v33  ;;  %v5020_v41 = vadd.f32 %v6918_v13, %v7043_v32  ;;  %v5022_v5 = vadd.f32 %v6918_v13, %v7044_v50 }
 0x328   : > { %v4265_v53 = vadd.f32 %v4264_v34, %v4202_v39  ;;  %v4132_v61 = vadd.f32 %v4131_v27, %v3913_v33 }
 0x329   : > { %v4858_v25 = vpop.f32.mrb[164].mxu1 }
 0x32a   : > { %v4133_v20 = vadd.f32 %v4132_v61, %v3918_v16  ;;  %v4266_v38 = vadd.f32 %v4265_v53, %v4203_v58  ;;  %v3692_v62 = vpop.f32.mrb[100].mxu0  ;;  %v3934_v17 = vadd.f32 %v6824_v2, %v4858_v25  ;;  %v3925_v59 = vpop.f32.mrb[165].mxu1 }
 0x32b   : > { %v6925_v12 = vadd.f32 %v5016_v45, %v3692_v62  ;;  %v3694_v0 = vpop.f32.mrb[101].mxu0  ;;  %v3926_v60 = vadd.f32 %v6808_v35, %v3925_v59  ;;  %v4859_v51 = vpop.f32.mrb[166].mxu1 }
 0x32c   : > { %v4267_v19 = vadd.f32 %v4266_v38, %v4204_v56  ;;  %4074 = vst [vmem:[%s6771_s10 + $0x130] sm:$0xff] %v3934_v17  ;;  %v4134_v54 = vadd.f32 %v4133_v20, %v3921_v21  ;;  %v3695_v44 = vpop.f32.mrb[102].mxu0  ;;  %v3937_v9 = vadd.f32 %v6830_v15, %v4859_v51  ;;  %v3928_v2 = vpop.f32.mrb[167].mxu1  ;;  %v4208_v48 = vmul.f32 %v3934_v17, %v3934_v17  ;;  %v7045_v38 = vld [vmem:[#allocation7_spill] sm:$0xff] }
 0x32d   : > { %4072 = vst [vmem:[%s6771_s10 + $0x120] sm:$0xff] %v3926_v60  ;;  %v4206_v46 = vmul.f32 %v3926_v60, %v3926_v60  ;;  %v6931_v18 = vadd.f32 %v5018_v28, %v3695_v44  ;;  %v3697_v63 = vpop.f32.mrb[103].mxu0  ;;  %v3929_v24 = vadd.f32 %v6814_v23, %v3928_v2  ;;  %v5024_v62 = vadd.f32 %v6918_v13, %v7045_v38 }
 0x32e   : > { %v4135_v6 = vadd.f32 %v4134_v54, %v3926_v60  ;;  %v4268_v35 = vadd.f32 %v4267_v19, %v4205_v1  ;;  %4075 = vst [vmem:[%s6771_s10 + $0x138] sm:$0xff] %v3937_v9  ;;  %v4209_v26 = vmul.f32 %v3937_v9, %v3937_v9  ;;  %v7046_v60 = vld [vmem:[#allocation8_spill] sm:$0xff] }
 0x32f   : > { %4073 = vst [vmem:[%s6771_s10 + $0x128] sm:$0xff] %v3929_v24  ;;  %v4207_v36 = vmul.f32 %v3929_v24, %v3929_v24  ;;  %v5026_v51 = vadd.f32 %v6918_v13, %v7046_v60 }
 0x330   : > { %v4269_v16 = vadd.f32 %v4268_v35, %v4206_v46  ;;  %v4136_v42 = vadd.f32 %v4135_v6, %v3929_v24 }
 0x331   : > { %v4862_v15 = vpop.f32.mrb[168].mxu1 }
 0x332   : > { %v4137_v10 = vadd.f32 %v4136_v42, %v3934_v17  ;;  %v4270_v22 = vadd.f32 %v4269_v16, %v4207_v36  ;;  %v3700_v4 = vpop.f32.mrb[104].mxu0  ;;  %v3950_v30 = vadd.f32 %v6856_v43, %v4862_v15  ;;  %v3941_v23 = vpop.f32.mrb[169].mxu1 }
 0x333   : > { %v6941_v37 = vadd.f32 %v5020_v41, %v3700_v4  ;;  %v3702_v21 = vpop.f32.mrb[105].mxu0  ;;  %v3942_v3 = vadd.f32 %v6840_v8, %v3941_v23  ;;  %v4863_v39 = vpop.f32.mrb[170].mxu1 }
 0x334   : > { %v4271_v7 = vadd.f32 %v4270_v22, %v4208_v48  ;;  %4078 = vst [vmem:[%s6771_s10 + $0x150] sm:$0xff] %v3950_v30  ;;  %v4138_v33 = vadd.f32 %v4137_v10, %v3937_v9  ;;  %v3703_v27 = vpop.f32.mrb[106].mxu0  ;;  %v3953_v34 = vadd.f32 %v6862_v11, %v4863_v39  ;;  %v3944_v43 = vpop.f32.mrb[171].mxu1  ;;  %v4212_v17 = vmul.f32 %v3950_v30, %v3950_v30  ;;  %v7047_v48 = vld [vmem:[#allocation9_spill] sm:$0xff] }
 0x335   : > { %4076 = vst [vmem:[%s6771_s10 + $0x140] sm:$0xff] %v3942_v3  ;;  %v4210_v58 = vmul.f32 %v3942_v3, %v3942_v3  ;;  %v6947_v53 = vadd.f32 %v5022_v5, %v3703_v27  ;;  %v3705_v61 = vpop.f32.mrb[107].mxu0  ;;  %v3945_v57 = vadd.f32 %v6846_v52, %v3944_v43  ;;  %v5028_v10 = vadd.f32 %v6918_v13, %v7047_v48  ;;  %v7048_v5 = vld [vmem:[#allocation10_spill] sm:$0xff] }
 0x336   : > { %v4139_v45 = vadd.f32 %v4138_v33, %v3942_v3  ;;  %v4272_v8 = vadd.f32 %v4271_v7, %v4209_v26  ;;  %4079 = vst [vmem:[%s6771_s10 + $0x158] sm:$0xff] %v3953_v34  ;;  %v4213_v9 = vmul.f32 %v3953_v34, %v3953_v34  ;;  %v5030_v21 = vadd.f32 %v6918_v13, %v7048_v5 }
 0x337   : > { %4077 = vst [vmem:[%s6771_s10 + $0x148] sm:$0xff] %v3945_v57  ;;  %v4211_v25 = vmul.f32 %v3945_v57, %v3945_v57 }
 0x338   : > { %v4273_v56 = vadd.f32 %v4272_v8, %v4210_v58  ;;  %v4140_v20 = vadd.f32 %v4139_v45, %v3945_v57 }
 0x339   : > { %v4866_v11 = vpop.f32.mrb[172].mxu1 }
 0x33a   : > { %v4141_v59 = vadd.f32 %v4140_v20, %v3950_v30  ;;  %v4274_v55 = vadd.f32 %v4273_v56, %v4211_v25  ;;  %v3708_v28 = vpop.f32.mrb[108].mxu0  ;;  %v3966_v0 = vadd.f32 %v6888_v14, %v4866_v11  ;;  %v3957_v52 = vpop.f32.mrb[173].mxu1 }
 0x33b   : > { %v5025_v1 = vadd.f32 %v5024_v62, %v3708_v28  ;;  %v3710_v19 = vpop.f32.mrb[109].mxu0  ;;  %v3958_v54 = vadd.f32 %v6872_v29, %v3957_v52  ;;  %v4867_v44 = vpop.f32.mrb[174].mxu1  ;;  %v7049_v62 = vld [vmem:[#allocation11_spill] sm:$0xff] }
 0x33c   : > { %v4275_v2 = vadd.f32 %v4274_v55, %v4212_v17  ;;  %4082 = vst [vmem:[%s6771_s10 + $0x170] sm:$0xff] %v3966_v0  ;;  %v4142_v46 = vadd.f32 %v4141_v59, %v3953_v34  ;;  %v3711_v63 = vpop.f32.mrb[110].mxu0  ;;  %v3969_v24 = vadd.f32 %v6894_v47, %v4867_v44  ;;  %v3960_v6 = vpop.f32.mrb[175].mxu1  ;;  %v4216_v47 = vmul.f32 %v3966_v0, %v3966_v0 }
 0x33d   : > { %4080 = vst [vmem:[%s6771_s10 + $0x160] sm:$0xff] %v3958_v54  ;;  %v4214_v14 = vmul.f32 %v3958_v54, %v3958_v54  ;;  %v5027_v35 = vadd.f32 %v5026_v51, %v3711_v63  ;;  %v3713_v36 = vpop.f32.mrb[111].mxu0  ;;  %v3961_v16 = vadd.f32 %v6878_v40, %v3960_v6  ;;  %v5032_v11 = vadd.f32 %v6918_v13, %v7049_v62 }
 0x33e   : > { %v4143_v42 = vadd.f32 %v4142_v46, %v3958_v54  ;;  %v4276_v32 = vadd.f32 %v4275_v2, %v4213_v9  ;;  %4083 = vst [vmem:[%s6771_s10 + $0x178] sm:$0xff] %v3969_v24  ;;  %v4217_v33 = vmul.f32 %v3969_v24, %v3969_v24 }
 0x33f   : > { %4081 = vst [vmem:[%s6771_s10 + $0x168] sm:$0xff] %v3961_v16  ;;  %v4215_v29 = vmul.f32 %v3961_v16, %v3961_v16 }
 0x340   : > { %v4277_v41 = vadd.f32 %v4276_v32, %v4214_v14  ;;  %v4144_v15 = vadd.f32 %v4143_v42, %v3961_v16 }
 0x341   : > { %v4870_v22 = vpop.f32.mrb[176].mxu1 }
 0x342   : > { %v4145_v4 = vadd.f32 %v4144_v15, %v3966_v0  ;;  %v4278_v30 = vadd.f32 %v4277_v41, %v4215_v29  ;;  %v3716_v23 = vpop.f32.mrb[112].mxu0  ;;  %v3982_v50 = vadd.f32 %v6925_v12, %v4870_v22  ;;  %v3973_v40 = vpop.f32.mrb[177].mxu1  ;;  %v7051_v15 = vld [vmem:[#allocation13_spill] sm:$0xff] }
 0x343   : > { %v6969_v3 = vadd.f32 %v5028_v10, %v3716_v23  ;;  %v3718_v39 = vpop.f32.mrb[113].mxu0  ;;  %v3974_v26 = vadd.f32 %v6904_v49, %v3973_v40  ;;  %v4871_v7 = vpop.f32.mrb[178].mxu1  ;;  %v5036_v48 = vadd.f32 %v6918_v13, %v7051_v15 }
 0x344   : > { %v4279_v27 = vadd.f32 %v4278_v30, %v4216_v47  ;;  %4086 = vst [vmem:[%s6771_s10 + $0x190] sm:$0xff] %v3982_v50  ;;  %v4146_v34 = vadd.f32 %v4145_v4, %v3969_v24  ;;  %v3719_v43 = vpop.f32.mrb[114].mxu0  ;;  %v3985_v58 = vadd.f32 %v6931_v18, %v4871_v7  ;;  %v3976_v12 = vpop.f32.mrb[179].mxu1  ;;  %v4220_v17 = vmul.f32 %v3982_v50, %v3982_v50 }
 0x345   : > { %4084 = vst [vmem:[%s6771_s10 + $0x180] sm:$0xff] %v3974_v26  ;;  %v4218_v61 = vmul.f32 %v3974_v26, %v3974_v26  ;;  %v6975_v57 = vadd.f32 %v5030_v21, %v3719_v43  ;;  %v3721_v45 = vpop.f32.mrb[115].mxu0  ;;  %v3977_v8 = vadd.f32 %v6910_v31, %v3976_v12  ;;  %v7050_v31 = vld [vmem:[#allocation12_spill] sm:$0xff] }
 0x346   : > { %v4147_v25 = vadd.f32 %v4146_v34, %v3974_v26  ;;  %v4280_v49 = vadd.f32 %v4279_v27, %v4217_v33  ;;  %4087 = vst [vmem:[%s6771_s10 + $0x198] sm:$0xff] %v3985_v58  ;;  %v5034_v60 = vadd.f32 %v6918_v13, %v7050_v31  ;;  %v4221_v9 = vmul.f32 %v3985_v58, %v3985_v58 }
 0x347   : > { %4085 = vst [vmem:[%s6771_s10 + $0x188] sm:$0xff] %v3977_v8  ;;  %v4219_v56 = vmul.f32 %v3977_v8, %v3977_v8 }
 0x348   : > { %v4281_v20 = vadd.f32 %v4280_v49, %v4218_v61  ;;  %v4148_v38 = vadd.f32 %v4147_v25, %v3977_v8 }
 0x349   : > { %v4874_v18 = vpop.f32.mrb[180].mxu1 }
 0x34a   : > { %v4149_v59 = vadd.f32 %v4148_v38, %v3982_v50  ;;  %v4282_v55 = vadd.f32 %v4281_v20, %v4219_v56  ;;  %v3724_v28 = vpop.f32.mrb[116].mxu0  ;;  %v3998_v0 = vadd.f32 %v5025_v1, %v4874_v18  ;;  %v3989_v52 = vpop.f32.mrb[181].mxu1  ;;  %v7053_v20 = vld [vmem:[#allocation15_spill] sm:$0xff] }
 0x34b   : > { %v5033_v51 = vadd.f32 %v5032_v11, %v3724_v28  ;;  %v3726_v19 = vpop.f32.mrb[117].mxu0  ;;  %v3990_v54 = vadd.f32 %v6941_v37, %v3989_v52  ;;  %v4875_v44 = vpop.f32.mrb[182].mxu1  ;;  %v5040_v38 = vadd.f32 %v6918_v13, %v7053_v20  ;;  %v7054_v28 = vld [vmem:[#allocation16_spill] sm:$0xff] }
 0x34c   : > { %v4283_v2 = vadd.f32 %v4282_v55, %v4220_v17  ;;  %4090 = vst [vmem:[%s6771_s10 + $0x1b0] sm:$0xff] %v3998_v0  ;;  %v4150_v46 = vadd.f32 %v4149_v59, %v3985_v58  ;;  %v3727_v63 = vpop.f32.mrb[118].mxu0  ;;  %v4001_v24 = vadd.f32 %v5027_v35, %v4875_v44  ;;  %v3992_v6 = vpop.f32.mrb[183].mxu1  ;;  %v4224_v35 = vmul.f32 %v3998_v0, %v3998_v0 }
 0x34d   : > { %4088 = vst [vmem:[%s6771_s10 + $0x1a0] sm:$0xff] %v3990_v54  ;;  %v4222_v1 = vmul.f32 %v3990_v54, %v3990_v54  ;;  %v5035_v14 = vadd.f32 %v5034_v60, %v3727_v63  ;;  %v3729_v36 = vpop.f32.mrb[119].mxu0  ;;  %v3993_v16 = vadd.f32 %v6947_v53, %v3992_v6  ;;  %v7052_v53 = vld [vmem:[#allocation14_spill] sm:$0xff] }
 0x34e   : > { %v4151_v42 = vadd.f32 %v4150_v46, %v3990_v54  ;;  %v4284_v32 = vadd.f32 %v4283_v2, %v4221_v9  ;;  %4091 = vst [vmem:[%s6771_s10 + $0x1b8] sm:$0xff] %v4001_v24  ;;  %v5038_v50 = vadd.f32 %v6918_v13, %v7052_v53  ;;  %v4225_v26 = vmul.f32 %v4001_v24, %v4001_v24 }
 0x34f   : > { %4089 = vst [vmem:[%s6771_s10 + $0x1a8] sm:$0xff] %v3993_v16  ;;  %v4223_v37 = vmul.f32 %v3993_v16, %v3993_v16 }
 0x350   : > { %v4285_v29 = vadd.f32 %v4284_v32, %v4222_v1  ;;  %v4152_v41 = vadd.f32 %v4151_v42, %v3993_v16 }
 0x351   : > { %v4878_v10 = vpop.f32.mrb[184].mxu1 }
 0x352   : > { %v4153_v22 = vadd.f32 %v4152_v41, %v3998_v0  ;;  %v4286_v47 = vadd.f32 %v4285_v29, %v4223_v37  ;;  %v3732_v4 = vpop.f32.mrb[120].mxu0  ;;  %v4014_v30 = vadd.f32 %v5033_v51, %v4878_v10  ;;  %v4005_v23 = vpop.f32.mrb[185].mxu1 }
 0x353   : > { %v5037_v40 = vadd.f32 %v5036_v48, %v3732_v4  ;;  %v3734_v5 = vpop.f32.mrb[121].mxu0  ;;  %v4006_v21 = vadd.f32 %v6969_v3, %v4005_v23  ;;  %v4879_v39 = vpop.f32.mrb[186].mxu1 }
 0x354   : > { %v4287_v7 = vadd.f32 %v4286_v47, %v4224_v35  ;;  %4094 = vst [vmem:[%s6771_s10 + $0x1d0] sm:$0xff] %v4014_v30  ;;  %v4154_v33 = vadd.f32 %v4153_v22, %v4001_v24  ;;  %v3735_v27 = vpop.f32.mrb[122].mxu0  ;;  %v4017_v34 = vadd.f32 %v5035_v14, %v4879_v39  ;;  %v4008_v43 = vpop.f32.mrb[187].mxu1  ;;  %v4228_v11 = vmul.f32 %v4014_v30, %v4014_v30 }
 0x355   : > { %4092 = vst [vmem:[%s6771_s10 + $0x1c0] sm:$0xff] %v4006_v21  ;;  %v4226_v58 = vmul.f32 %v4006_v21, %v4006_v21  ;;  %v5039_v12 = vadd.f32 %v5038_v50, %v3735_v27  ;;  %v3737_v61 = vpop.f32.mrb[123].mxu0  ;;  %v4009_v45 = vadd.f32 %v6975_v57, %v4008_v43  ;;  %v5042_v57 = vadd.f32 %v6918_v13, %v7054_v28 }
 0x356   : > { %v4155_v8 = vadd.f32 %v4154_v33, %v4006_v21  ;;  %v4288_v25 = vadd.f32 %v4287_v7, %v4225_v26  ;;  %4095 = vst [vmem:[%s6771_s10 + $0x1d8] sm:$0xff] %v4017_v34  ;;  %v4229_v51 = vmul.f32 %v4017_v34, %v4017_v34 }
 0x357   : > { %4093 = vst [vmem:[%s6771_s10 + $0x1c8] sm:$0xff] %v4009_v45  ;;  %v4227_v3 = vmul.f32 %v4009_v45, %v4009_v45 }
 0x358   : > { %v4289_v49 = vadd.f32 %v4288_v25, %v4226_v58  ;;  %v4156_v56 = vadd.f32 %v4155_v8, %v4009_v45 }
 0x359   : > { %v4882_v62 = vpop.f32.mrb[188].mxu1 }
 0x35a   : > { %v4157_v18 = vadd.f32 %v4156_v56, %v4014_v30  ;;  %v4290_v17 = vadd.f32 %v4289_v49, %v4227_v3  ;;  %v3740_v59 = vpop.f32.mrb[124].mxu0  ;;  %v4021_v55 = vpop.f32.mrb[189].mxu1 }
 0x35b   : > { %v5041_v0 = vadd.f32 %v5040_v38, %v3740_v59  ;;  %v3742_v52 = vpop.f32.mrb[125].mxu0  ;;  %v4022_v31 = vadd.f32 %v5037_v40, %v4021_v55  ;;  %v4883_v60 = vpop.f32.mrb[190].mxu1 }
 0x35c   : > { %v4291_v19 = vadd.f32 %v4290_v17, %v4228_v11  ;;  %v4158_v54 = vadd.f32 %v4157_v18, %v4017_v34  ;;  %v3743_v44 = vpop.f32.mrb[126].mxu0  ;;  %v4024_v9 = vpop.f32.mrb[191].mxu1 }
 0x35d   : > { %v4030_v2 = vadd.f32 %v5041_v0, %v4882_v62  ;;  %4096 = vst [vmem:[%s6771_s10 + $0x1e0] sm:$0xff] %v4022_v31  ;;  %v4230_v46 = vmul.f32 %v4022_v31, %v4022_v31  ;;  %v5043_v63 = vadd.f32 %v5042_v57, %v3743_v44  ;;  %v3745_v24 = vpop.f32.mrb[127].mxu0  ;;  %v4025_v6 = vadd.f32 %v5039_v12, %v4024_v9 }
 0x35e   : > { %v4159_v13 = vadd.f32 %v4158_v54, %v4022_v31  ;;  %v4292_v1 = vadd.f32 %v4291_v19, %v4229_v51 }
 0x35f   : > { %4098 = vst [vmem:[%s6771_s10 + $0x1f0] sm:$0xff] %v4030_v2  ;;  %v4033_v14 = vadd.f32 %v5043_v63, %v4883_v60  ;;  %4097 = vst [vmem:[%s6771_s10 + $0x1e8] sm:$0xff] %v4025_v6  ;;  %v4231_v36 = vmul.f32 %v4025_v6, %v4025_v6  ;;  %v4232_v32 = vmul.f32 %v4030_v2, %v4030_v2 }
 0x360   : > { %v4293_v16 = vadd.f32 %v4292_v1, %v4230_v46  ;;  %v4160_v42 = vadd.f32 %v4159_v13, %v4025_v6 }
 0x361   : > { %4099 = vst [vmem:[%s6771_s10 + $0x1f8] sm:$0xff] %v4033_v14  ;;  %v4233_v41 = vmul.f32 %v4033_v14, %v4033_v14 }
 0x362   : > { %v4161_v37 = vadd.f32 %v4160_v42, %v4030_v2  ;;  %v4294_v29 = vadd.f32 %v4293_v16, %v4231_v36 }
 0x364   : > { %v4162_v15 = vadd.f32 %v4161_v37, %v4033_v14  ;;  %v4295_v48 = vadd.f32 %v4294_v29, %v4232_v32 }
 0x366   : > { %v4163_v10 = vrot.slane %v4162_v15, 4  ;;  %v4296_v35 = vadd.f32 %v4295_v48, %v4233_v41 }
 0x368   : > { %v4164_v22 = vadd.f32 %v4163_v10, %v4162_v15  ;;  %v4297_v47 = vrot.slane %v4296_v35, 4 }
 0x36a   : > { %v4165_v4 = vrot.slane %v4164_v22, 2  ;;  %v4298_v30 = vadd.f32 %v4297_v47, %v4296_v35 }
 0x36c   : > { %v4166_v23 = vadd.f32 %v4165_v4, %v4164_v22  ;;  %v4299_v53 = vrot.slane %v4298_v30, 2 }
 0x36e   : > { %v4167_v50 = vrot.slane %v4166_v23, 1  ;;  %v4300_v40 = vadd.f32 %v4299_v53, %v4298_v30 }
 0x370   : > { %v4168_v5 = vadd.f32 %v4167_v50, %v4166_v23  ;;  %v4301_v21 = vrot.slane %v4300_v40, 1 }
 0x372   : > { %4169 = vst [vmem:[%s214_s18] sm:$0x1] %v4168_v5  ;;  %v4302_v39 = vadd.f32 %v4301_v21, %v4300_v40 }
 0x374   : > { %4303 = vst [vmem:[%s214_s18 + $0x1] sm:$0x1] %v4302_v39 }
 0x375 PF: > { %s15_s15 = sadd.s32 1, %s5805_s15  }
 0x376   : > { %p12_p5 = scmp.ge.s32.totalorder %s15_s15, 6  }
 0x378   :  { %14 = sbr.rel (!%p12_p5) target bundleno = 1 (0x1), region = 74 }

</bundles_post_ra>
